<compile_context>
chip_gen: v7x
topology: tpu7x:2x2x1
jax: 0.10.0
libtpu: 0.0.40
codegen_flags: <defaults>
</compile_context>

<pallas_src>
import functools

import jax
import jax.numpy as jnp
from jax.experimental import pallas as pl
from jax.experimental.pallas import tpu as pltpu

_VMEM_LIMIT = 32 * 1024 * 1024  # conservative: fits v7x's 64 MiB physical VMEM


def _cparams():
    return pltpu.CompilerParams(
        dimension_semantics=("parallel",),
        vmem_limit_bytes=_VMEM_LIMIT,
    )


# --------------------------------------------------------------------------
# Pallas kernel 1: fused (x @ w + b) with optional activation  (1x1 conv core)
# x/w arrive bf16 (MXU-native, halves HBM bytes); accumulate + elementwise in f32.
# --------------------------------------------------------------------------
def _mm_bias_act_kernel(x_ref, w_ref, b_ref, o_ref, *, activation):
    acc = jnp.dot(x_ref[...], w_ref[...], preferred_element_type=jnp.float32)
    acc = acc + b_ref[...]
    if activation == "relu":
        acc = jnp.maximum(acc, 0.0)
    elif activation == "sigmoid":
        acc = jax.nn.sigmoid(acc)
    o_ref[...] = acc.astype(o_ref.dtype)


def conv1x1(x_nhwc, w, b, activation="none", *, out_dtype=jnp.bfloat16, tm=1024):
    """Pointwise conv as an M-tiled Pallas matmul. x:(N,H,W,Cin) w:(Cin,Cout) b:(Cout,)."""
    N, H, W, Cin = x_nhwc.shape
    Cout = w.shape[1]
    M = N * H * W
    xm = x_nhwc.reshape(M, Cin).astype(jnp.bfloat16)
    wm = w.astype(jnp.bfloat16)
    bm = b.reshape(1, Cout).astype(jnp.float32)

    tm = min(tm, M)  # tm=1024 is a multiple of 8; if tm==M it equals the full dim
    kern = functools.partial(_mm_bias_act_kernel, activation=activation)
    out = pl.pallas_call(
        kern,
        out_shape=jax.ShapeDtypeStruct((M, Cout), out_dtype),
        grid=(pl.cdiv(M, tm),),
        in_specs=[
            pl.BlockSpec((tm, Cin), lambda i: (i, 0)),     # activation tile (pipelined)
            pl.BlockSpec((Cin, Cout), lambda i: (0, 0)),   # weights: VMEM-resident
            pl.BlockSpec((1, Cout), lambda i: (0, 0)),     # bias:    VMEM-resident
        ],
        out_specs=pl.BlockSpec((tm, Cout), lambda i: (i, 0)),
        compiler_params=_cparams(),
    )(xm, wm, bm)
    return out.reshape(N, H, W, Cout)


# --------------------------------------------------------------------------
# Pallas kernel 2: fused even/odd head — relu(x@W1+b1) then sigmoid(h@W2+b2)
# Both branches run in one kernel via concatenated / block-diagonal weights.
# --------------------------------------------------------------------------
def _head_kernel(x_ref, w1_ref, b1_ref, w2_ref, b2_ref, o_ref):
    h = jnp.dot(x_ref[...], w1_ref[...], preferred_element_type=jnp.float32)
    h = jnp.maximum(h + b1_ref[...], 0.0)
    y = jnp.dot(h.astype(jnp.bfloat16), w2_ref[...], preferred_element_type=jnp.float32)
    o_ref[...] = jax.nn.sigmoid(y + b2_ref[...]).astype(o_ref.dtype)


def head_fused(neck, params, *, tm=1024):
    """neck:(N,Hn,Wn,24) -> (N,Hn,Wn,2) with col0=even prob, col1=odd prob."""
    N, Hn, Wn, Cn = neck.shape
    Ch = params["he1_w"].shape[1]  # hidden width per branch (16)

    w1 = jnp.concatenate([params["he1_w"], params["ho1_w"]], axis=1).astype(jnp.bfloat16)
    b1 = jnp.concatenate([params["he1_b"], params["ho1_b"]]).reshape(1, 2 * Ch)
    b1 = b1.astype(jnp.float32)
    w2 = jnp.zeros((2 * Ch, 2), jnp.float32)
    w2 = w2.at[:Ch, 0:1].set(params["he2_w"]).at[Ch:, 1:2].set(params["ho2_w"])
    w2 = w2.astype(jnp.bfloat16)
    b2 = jnp.concatenate([params["he2_b"], params["ho2_b"]]).reshape(1, 2)
    b2 = b2.astype(jnp.float32)

    M = N * Hn * Wn
    xm = neck.reshape(M, Cn).astype(jnp.bfloat16)
    tm = min(tm, M)
    out = pl.pallas_call(
        _head_kernel,
        out_shape=jax.ShapeDtypeStruct((M, 2), jnp.float32),
        grid=(pl.cdiv(M, tm),),
        in_specs=[
            pl.BlockSpec((tm, Cn), lambda i: (i, 0)),
            pl.BlockSpec((Cn, 2 * Ch), lambda i: (0, 0)),
            pl.BlockSpec((1, 2 * Ch), lambda i: (0, 0)),
            pl.BlockSpec((2 * Ch, 2), lambda i: (0, 0)),
            pl.BlockSpec((1, 2), lambda i: (0, 0)),
        ],
        out_specs=pl.BlockSpec((tm, 2), lambda i: (i, 0)),
        compiler_params=_cparams(),
    )(xm, w1, b1, w2, b2)
    return out.reshape(N, Hn, Wn, 2)


# --------------------------------------------------------------------------
# Bilinear (align_corners=True) interpolation matrices
# --------------------------------------------------------------------------
def _interp_matrix(out_size, in_size):
    """Row-interpolation matrix equivalent to bilinear, align_corners=True."""
    if in_size == out_size:
        return jnp.eye(out_size, dtype=jnp.float32)
    if in_size == 1:
        return jnp.ones((out_size, 1), dtype=jnp.float32)
    if out_size == 1:
        return jnp.eye(1, in_size, dtype=jnp.float32)  # [[1, 0, ..., 0]]
    src = jnp.arange(out_size, dtype=jnp.float32) * (in_size - 1) / (out_size - 1)
    i0 = jnp.clip(jnp.floor(src).astype(jnp.int32), 0, in_size - 2)
    frac = src - i0.astype(jnp.float32)
    oh0 = jax.nn.one_hot(i0, in_size, dtype=jnp.float32)
    oh1 = jax.nn.one_hot(i0 + 1, in_size, dtype=jnp.float32)
    return (1.0 - frac)[:, None] * oh0 + frac[:, None] * oh1


# --------------------------------------------------------------------------
# Pallas kernel 3: NHWC bilinear resize, one image per grid step.
#   out = A_h @ X(h, w*C) @ kron(A_w^T, I_C)   -- two lane-dense 2-D matmuls,
#   no in-kernel reshapes/transposes, no wrapper transpose passes.
# --------------------------------------------------------------------------
def _resize_nhwc_kernel(x_ref, ah_ref, kw_ref, o_ref):
    x = x_ref[0, :, :].astype(jnp.float32)                                # (h, w*C)
    tmp = jnp.dot(ah_ref[...], x, preferred_element_type=jnp.float32)     # (H, w*C)
    out = jnp.dot(tmp, kw_ref[...], preferred_element_type=jnp.float32)   # (H, W*C)
    o_ref[0, :, :] = out.astype(o_ref.dtype)


def bilinear_resize_nhwc(x_nhwc, out_h, out_w, out_dtype=None):
    """F.interpolate(..., mode='bilinear', align_corners=True) on NHWC input."""
    N, h, w, C = x_nhwc.shape
    out_dtype = x_nhwc.dtype if out_dtype is None else out_dtype
    if (h, w) == (out_h, out_w):
        return x_nhwc.astype(out_dtype)
    ah = _interp_matrix(out_h, h)                                          # (out_h, h)
    aw = _interp_matrix(out_w, w)                                          # (out_w, w)
    kw = jnp.kron(aw.T, jnp.eye(C, dtype=jnp.float32))                     # (w*C, out_w*C)
    xr = x_nhwc.reshape(N, h, w * C)                                       # free reshape
    out = pl.pallas_call(
        _resize_nhwc_kernel,
        out_shape=jax.ShapeDtypeStruct((N, out_h, out_w * C), out_dtype),
        grid=(N,),
        in_specs=[
            pl.BlockSpec((1, h, w * C), lambda n: (n, 0, 0)),
            pl.BlockSpec((out_h, h), lambda n: (0, 0)),
            pl.BlockSpec((w * C, out_w * C), lambda n: (0, 0)),
        ],
        out_specs=pl.BlockSpec((1, out_h, out_w * C), lambda n: (n, 0, 0)),
        compiler_params=_cparams(),
    )(xr, ah, kw)
    return out.reshape(N, out_h, out_w, C)


# --------------------------------------------------------------------------
# Pallas kernel 4: final 1-channel upsample, emitted directly as NCHW so the
# (H, W) map stores with W on the lane axis and no output transpose is needed.
# --------------------------------------------------------------------------
def _resize_to_nchw_kernel(x_ref, awt_ref, ah_ref, o_ref):
    x = x_ref[0, :, :].astype(jnp.float32)                                 # (h, w)
    t = jnp.dot(x, awt_ref[...], preferred_element_type=jnp.float32)       # (h, W)
    out = jnp.dot(ah_ref[...], t, preferred_element_type=jnp.float32)      # (H, W)
    o_ref[0, 0, :, :] = out.astype(o_ref.dtype)


def upsample_to_nchw(y_nhw1, out_h, out_w):
    """(N, h, w, 1) probability map -> (N, 1, out_h, out_w), align_corners=True."""
    N, h, w, _ = y_nhw1.shape
    ah = _interp_matrix(out_h, h)                                          # (out_h, h)
    awt = _interp_matrix(out_w, w).T                                       # (w, out_w)
    xr = y_nhw1.reshape(N, h, w)                                           # free reshape
    return pl.pallas_call(
        _resize_to_nchw_kernel,
        out_shape=jax.ShapeDtypeStruct((N, 1, out_h, out_w), jnp.float32),
        grid=(N,),
        in_specs=[
            pl.BlockSpec((1, h, w), lambda n: (n, 0, 0)),
            pl.BlockSpec((w, out_w), lambda n: (0, 0)),
            pl.BlockSpec((out_h, h), lambda n: (0, 0)),
        ],
        out_specs=pl.BlockSpec((1, 1, out_h, out_w), lambda n: (n, 0, 0, 0)),
        compiler_params=_cparams(),
    )(xr, awt, ah)


# --------------------------------------------------------------------------
# Plain-JAX glue
# --------------------------------------------------------------------------
def avgpool2(x_nhwc):
    N, H, W, C = x_nhwc.shape
    assert H % 2 == 0 and W % 2 == 0, "avgpool2 expects even spatial dims"
    return x_nhwc.reshape(N, H // 2, 2, W // 2, 2, C).mean(axis=(2, 4))


def make_params(key):
    """Deterministic synthetic parameters (shapes implied by the synthetic cfg)."""
    shapes = {
        # backbone (1x1 conv stages)
        "b1": (4, 16), "b2": (16, 32), "b3": (32, 64),
        # neck: FPN laterals to 32 ch, per-level outputs to 8 ch
        "l1": (16, 32), "l2": (32, 32), "l3": (64, 32),
        "o1": (32, 8), "o2": (32, 8), "o3": (32, 8),
        # head: even / odd branches on 24-ch concatenated neck output
        "he1": (24, 16), "he2": (16, 1),
        "ho1": (24, 16), "ho2": (16, 1),
    }
    params = {}
    keys = jax.random.split(key, len(shapes))
    for k, (name, shp) in zip(keys, sorted(shapes.items())):
        params[f"{name}_w"] = 0.1 * jax.random.normal(k, shp, dtype=jnp.float32)
        params[f"{name}_b"] = jnp.zeros((shp[1],), dtype=jnp.float32)
    return params


def db_cism_even_odd_lines_forward(params, x_nchw):
    """Forward pass: backbone -> neck -> head -> bilinear upsample to (H, W)."""
    N, _, H, W = x_nchw.shape
    x = jnp.transpose(x_nchw, (0, 2, 3, 1))                     # NCHW -> NHWC (once)

    # ---- backbone: three stages at strides 2 / 4 / 8 ------------------------
    f1 = avgpool2(conv1x1(x,  params["b1_w"], params["b1_b"], "relu"))   # (N, H/2, W/2, 16)
    f2 = avgpool2(conv1x1(f1, params["b2_w"], params["b2_b"], "relu"))   # (N, H/4, W/4, 32)
    f3 = avgpool2(conv1x1(f2, params["b3_w"], params["b3_b"], "relu"))   # (N, H/8, W/8, 64)

    # ---- neck: FPN -----------------------------------------------------------
    l3 = conv1x1(f3, params["l3_w"], params["l3_b"])
    l2 = conv1x1(f2, params["l2_w"], params["l2_b"])
    l1 = conv1x1(f1, params["l1_w"], params["l1_b"])
    t3 = l3
    t2 = l2 + bilinear_resize_nhwc(t3, l2.shape[1], l2.shape[2], jnp.bfloat16)
    t1 = l1 + bilinear_resize_nhwc(t2, l1.shape[1], l1.shape[2], jnp.bfloat16)
    o3 = conv1x1(t3, params["o3_w"], params["o3_b"], "relu")
    o2 = conv1x1(t2, params["o2_w"], params["o2_b"], "relu")
    o1 = conv1x1(t1, params["o1_w"], params["o1_b"], "relu")
    Hn, Wn = o1.shape[1], o1.shape[2]
    neck = jnp.concatenate(
        [o1,
         bilinear_resize_nhwc(o2, Hn, Wn, jnp.bfloat16),
         bilinear_resize_nhwc(o3, Hn, Wn, jnp.bfloat16)], axis=-1)       # (N, H/2, W/2, 24)

    # ---- head: both probability maps in one fused kernel ---------------------
    y2 = head_fused(neck, params)                                        # (N, H/2, W/2, 2)

    # ---- final: bilinear to (H, W), align_corners=True, written as NCHW ------
    y_even = upsample_to_nchw(y2[..., 0:1], H, W)                        # (N, 1, H, W)
    y_odd = upsample_to_nchw(y2[..., 1:2], H, W)
    return y_even, y_odd


if __name__ == "__main__":
    key = jax.random.PRNGKey(0)
    x = jax.random.normal(key, (2, 4, 16, 16), dtype=jnp.float32)  # NCHW, like PyTorch
    params = make_params(jax.random.PRNGKey(42))

    fwd = jax.jit(db_cism_even_odd_lines_forward)
    y_even, y_odd = fwd(params, x)
    jax.block_until_ready(y_even)
    jax.block_until_ready(y_odd)

    assert y_even.shape == (2, 1, 16, 16) and y_odd.shape == (2, 1, 16, 16)
    assert bool(jnp.all(jnp.isfinite(y_even))) and bool(jnp.all(jnp.isfinite(y_odd)))
    assert bool(jnp.all((y_even >= 0) & (y_even <= 1)))
    assert bool(jnp.all((y_odd >= 0) & (y_odd <= 1)))
    print("KERNEL_OK")
</pallas_src>

<mosaic_0001>
module attributes {stable_mosaic.version = 11 : i64} {
  func.func @_mm_bias_act_kernel(%arg0: i32, %arg1: memref<512x4xbf16, #tpu.memory_space<vmem>>, %arg2: memref<4x16xbf16, #tpu.memory_space<vmem>>, %arg3: memref<1x16xf32, #tpu.memory_space<vmem>>, %arg4: memref<512x16xbf16, #tpu.memory_space<vmem>>) attributes {dimension_semantics = [#tpu.dimension_semantics<parallel>], iteration_bounds = array<i64: 1>, scalar_prefetch = 0 : i64, scratch_operands = 0 : i64, tpu.core_type = #tpu.core_type<tc>, window_params = [{transform_indices = @transform_0, window_bounds = array<i64: 512, 4>}, {pipeline_mode = #tpu.pipeline_mode<synchronous>, transform_indices = @transform_1, window_bounds = array<i64: 4, 16>}, {pipeline_mode = #tpu.pipeline_mode<synchronous>, transform_indices = @transform_2, window_bounds = array<i64: 1, 16>}, {transform_indices = @transform_3, window_bounds = array<i64: 512, 16>}]} {
    %c0 = arith.constant 0 : index
    %c0_0 = arith.constant 0 : index
    %0 = vector.load %arg1[%c0, %c0_0] : memref<512x4xbf16, #tpu.memory_space<vmem>>, vector<512x4xbf16>
    %c0_1 = arith.constant 0 : index
    %c0_2 = arith.constant 0 : index
    %1 = vector.load %arg2[%c0_1, %c0_2] : memref<4x16xbf16, #tpu.memory_space<vmem>>, vector<4x16xbf16>
    %cst = arith.constant dense<0.000000e+00> : vector<512x16xf32>
    %2 = tpu.matmul %0, %1, %cst {dimension_numbers = #tpu.dot_dimension_numbers<[1], [0], [0], [1], [0, 0, 1, 1], [], []>} : vector<512x4xbf16>, vector<4x16xbf16>, vector<512x16xf32> -> vector<512x16xf32>
    %c0_3 = arith.constant 0 : index
    %c0_4 = arith.constant 0 : index
    %3 = vector.load %arg3[%c0_3, %c0_4] : memref<1x16xf32, #tpu.memory_space<vmem>>, vector<1x16xf32>
    %4 = vector.broadcast %3 : vector<1x16xf32> to vector<512x16xf32>
    %5 = arith.addf %2, %4 : vector<512x16xf32>
    %cst_5 = arith.constant 0.000000e+00 : f32
    %6 = vector.broadcast %cst_5 : f32 to vector<512x16xf32>
    %7 = arith.maximumf %5, %6 : vector<512x16xf32>
    %8 = arith.truncf %7 : vector<512x16xf32> to vector<512x16xbf16>
    %c0_6 = arith.constant 0 : index
    %c0_7 = arith.constant 0 : index
    %9 = vector.load %arg4[%c0_6, %c0_7] : memref<512x16xbf16, #tpu.memory_space<vmem>>, vector<512x16xbf16>
    tpu.vector_store %arg4[%c0_6, %c0_7], %8 {strides = array<i32>} : memref<512x16xbf16, #tpu.memory_space<vmem>>, vector<512x16xbf16>,
    return
  }
  func.func @transform_0(%arg0: i32) -> (i32, i32) {
    %c0_i32 = arith.constant 0 : i32
    %c0_i32_0 = arith.constant 0 : i32
    return %arg0, %c0_i32 : i32, i32
  }
  func.func @transform_1(%arg0: i32) -> (i32, i32) {
    %c0_i32 = arith.constant 0 : i32
    %c0_i32_0 = arith.constant 0 : i32
    %c0_i32_1 = arith.constant 0 : i32
    return %c0_i32, %c0_i32_0 : i32, i32
  }
  func.func @transform_2(%arg0: i32) -> (i32, i32) {
    %c0_i32 = arith.constant 0 : i32
    %c0_i32_0 = arith.constant 0 : i32
    %c0_i32_1 = arith.constant 0 : i32
    return %c0_i32, %c0_i32_0 : i32, i32
  }
  func.func @transform_3(%arg0: i32) -> (i32, i32) {
    %c0_i32 = arith.constant 0 : i32
    %c0_i32_0 = arith.constant 0 : i32
    return %arg0, %c0_i32 : i32, i32
  }
}

module attributes {stable_mosaic.version = 11 : i64} {
  func.func @_mm_bias_act_kernel(%arg0: i32, %arg1: memref<128x16xbf16, #tpu.memory_space<vmem>>, %arg2: memref<16x32xbf16, #tpu.memory_space<vmem>>, %arg3: memref<1x32xf32, #tpu.memory_space<vmem>>, %arg4: memref<128x32xbf16, #tpu.memory_space<vmem>>) attributes {dimension_semantics = [#tpu.dimension_semantics<parallel>], iteration_bounds = array<i64: 1>, scalar_prefetch = 0 : i64, scratch_operands = 0 : i64, tpu.core_type = #tpu.core_type<tc>, window_params = [{transform_indices = @transform_0, window_bounds = array<i64: 128, 16>}, {pipeline_mode = #tpu.pipeline_mode<synchronous>, transform_indices = @transform_1, window_bounds = array<i64: 16, 32>}, {pipeline_mode = #tpu.pipeline_mode<synchronous>, transform_indices = @transform_2, window_bounds = array<i64: 1, 32>}, {transform_indices = @transform_3, window_bounds = array<i64: 128, 32>}]} {
    %c0 = arith.constant 0 : index
    %c0_0 = arith.constant 0 : index
    %0 = vector.load %arg1[%c0, %c0_0] : memref<128x16xbf16, #tpu.memory_space<vmem>>, vector<128x16xbf16>
    %c0_1 = arith.constant 0 : index
    %c0_2 = arith.constant 0 : index
    %1 = vector.load %arg2[%c0_1, %c0_2] : memref<16x32xbf16, #tpu.memory_space<vmem>>, vector<16x32xbf16>
    %cst = arith.constant dense<0.000000e+00> : vector<128x32xf32>
    %2 = tpu.matmul %0, %1, %cst {dimension_numbers = #tpu.dot_dimension_numbers<[1], [0], [0], [1], [0, 0, 1, 1], [], []>} : vector<128x16xbf16>, vector<16x32xbf16>, vector<128x32xf32> -> vector<128x32xf32>
    %c0_3 = arith.constant 0 : index
    %c0_4 = arith.constant 0 : index
    %3 = vector.load %arg3[%c0_3, %c0_4] : memref<1x32xf32, #tpu.memory_space<vmem>>, vector<1x32xf32>
    %4 = vector.broadcast %3 : vector<1x32xf32> to vector<128x32xf32>
    %5 = arith.addf %2, %4 : vector<128x32xf32>
    %cst_5 = arith.constant 0.000000e+00 : f32
    %6 = vector.broadcast %cst_5 : f32 to vector<128x32xf32>
    %7 = arith.maximumf %5, %6 : vector<128x32xf32>
    %8 = arith.truncf %7 : vector<128x32xf32> to vector<128x32xbf16>
    %c0_6 = arith.constant 0 : index
    %c0_7 = arith.constant 0 : index
    %9 = vector.load %arg4[%c0_6, %c0_7] : memref<128x32xbf16, #tpu.memory_space<vmem>>, vector<128x32xbf16>
    tpu.vector_store %arg4[%c0_6, %c0_7], %8 {strides = array<i32>} : memref<128x32xbf16, #tpu.memory_space<vmem>>, vector<128x32xbf16>,
    return
  }
  func.func @transform_0(%arg0: i32) -> (i32, i32) {
    %c0_i32 = arith.constant 0 : i32
    %c0_i32_0 = arith.constant 0 : i32
    return %arg0, %c0_i32 : i32, i32
  }
  func.func @transform_1(%arg0: i32) -> (i32, i32) {
    %c0_i32 = arith.constant 0 : i32
    %c0_i32_0 = arith.constant 0 : i32
    %c0_i32_1 = arith.constant 0 : i32
    return %c0_i32, %c0_i32_0 : i32, i32
  }
  func.func @transform_2(%arg0: i32) -> (i32, i32) {
    %c0_i32 = arith.constant 0 : i32
    %c0_i32_0 = arith.constant 0 : i32
    %c0_i32_1 = arith.constant 0 : i32
    return %c0_i32, %c0_i32_0 : i32, i32
  }
  func.func @transform_3(%arg0: i32) -> (i32, i32) {
    %c0_i32 = arith.constant 0 : i32
    %c0_i32_0 = arith.constant 0 : i32
    return %arg0, %c0_i32 : i32, i32
  }
}

module attributes {stable_mosaic.version = 11 : i64} {
  func.func @_mm_bias_act_kernel(%arg0: i32, %arg1: memref<32x32xbf16, #tpu.memory_space<vmem>>, %arg2: memref<32x64xbf16, #tpu.memory_space<vmem>>, %arg3: memref<1x64xf32, #tpu.memory_space<vmem>>, %arg4: memref<32x64xbf16, #tpu.memory_space<vmem>>) attributes {dimension_semantics = [#tpu.dimension_semantics<parallel>], iteration_bounds = array<i64: 1>, scalar_prefetch = 0 : i64, scratch_operands = 0 : i64, tpu.core_type = #tpu.core_type<tc>, window_params = [{transform_indices = @transform_0, window_bounds = array<i64: 32, 32>}, {pipeline_mode = #tpu.pipeline_mode<synchronous>, transform_indices = @transform_1, window_bounds = array<i64: 32, 64>}, {pipeline_mode = #tpu.pipeline_mode<synchronous>, transform_indices = @transform_2, window_bounds = array<i64: 1, 64>}, {transform_indices = @transform_3, window_bounds = array<i64: 32, 64>}]} {
    %c0 = arith.constant 0 : index
    %c0_0 = arith.constant 0 : index
    %0 = vector.load %arg1[%c0, %c0_0] : memref<32x32xbf16, #tpu.memory_space<vmem>>, vector<32x32xbf16>
    %c0_1 = arith.constant 0 : index
    %c0_2 = arith.constant 0 : index
    %1 = vector.load %arg2[%c0_1, %c0_2] : memref<32x64xbf16, #tpu.memory_space<vmem>>, vector<32x64xbf16>
    %cst = arith.constant dense<0.000000e+00> : vector<32x64xf32>
    %2 = tpu.matmul %0, %1, %cst {dimension_numbers = #tpu.dot_dimension_numbers<[1], [0], [0], [1], [0, 0, 1, 1], [], []>} : vector<32x32xbf16>, vector<32x64xbf16>, vector<32x64xf32> -> vector<32x64xf32>
    %c0_3 = arith.constant 0 : index
    %c0_4 = arith.constant 0 : index
    %3 = vector.load %arg3[%c0_3, %c0_4] : memref<1x64xf32, #tpu.memory_space<vmem>>, vector<1x64xf32>
    %4 = vector.broadcast %3 : vector<1x64xf32> to vector<32x64xf32>
    %5 = arith.addf %2, %4 : vector<32x64xf32>
    %cst_5 = arith.constant 0.000000e+00 : f32
    %6 = vector.broadcast %cst_5 : f32 to vector<32x64xf32>
    %7 = arith.maximumf %5, %6 : vector<32x64xf32>
    %8 = arith.truncf %7 : vector<32x64xf32> to vector<32x64xbf16>
    %c0_6 = arith.constant 0 : index
    %c0_7 = arith.constant 0 : index
    %9 = vector.load %arg4[%c0_6, %c0_7] : memref<32x64xbf16, #tpu.memory_space<vmem>>, vector<32x64xbf16>
    tpu.vector_store %arg4[%c0_6, %c0_7], %8 {strides = array<i32>} : memref<32x64xbf16, #tpu.memory_space<vmem>>, vector<32x64xbf16>,
    return
  }
  func.func @transform_0(%arg0: i32) -> (i32, i32) {
    %c0_i32 = arith.constant 0 : i32
    %c0_i32_0 = arith.constant 0 : i32
    return %arg0, %c0_i32 : i32, i32
  }
  func.func @transform_1(%arg0: i32) -> (i32, i32) {
    %c0_i32 = arith.constant 0 : i32
    %c0_i32_0 = arith.constant 0 : i32
    %c0_i32_1 = arith.constant 0 : i32
    return %c0_i32, %c0_i32_0 : i32, i32
  }
  func.func @transform_2(%arg0: i32) -> (i32, i32) {
    %c0_i32 = arith.constant 0 : i32
    %c0_i32_0 = arith.constant 0 : i32
    %c0_i32_1 = arith.constant 0 : i32
    return %c0_i32, %c0_i32_0 : i32, i32
  }
  func.func @transform_3(%arg0: i32) -> (i32, i32) {
    %c0_i32 = arith.constant 0 : i32
    %c0_i32_0 = arith.constant 0 : i32
    return %arg0, %c0_i32 : i32, i32
  }
}

module attributes {stable_mosaic.version = 11 : i64} {
  func.func @_resize_nhwc_kernel(%arg0: i32, %arg1: memref<1x2x64xbf16, #tpu.memory_space<vmem>>, %arg2: memref<4x2xf32, #tpu.memory_space<vmem>>, %arg3: memref<64x128xf32, #tpu.memory_space<vmem>>, %arg4: memref<1x4x128xbf16, #tpu.memory_space<vmem>>) attributes {dimension_semantics = [#tpu.dimension_semantics<parallel>], iteration_bounds = array<i64: 2>, scalar_prefetch = 0 : i64, scratch_operands = 0 : i64, tpu.core_type = #tpu.core_type<tc>, window_params = [{transform_indices = @transform_0, window_bounds = array<i64: 1, 2, 64>}, {pipeline_mode = #tpu.pipeline_mode<synchronous>, transform_indices = @transform_1, window_bounds = array<i64: 4, 2>}, {pipeline_mode = #tpu.pipeline_mode<synchronous>, transform_indices = @transform_2, window_bounds = array<i64: 64, 128>}, {transform_indices = @transform_3, window_bounds = array<i64: 1, 4, 128>}]} {
    %c0 = arith.constant 0 : index
    %c0_0 = arith.constant 0 : index
    %c0_1 = arith.constant 0 : index
    %0 = vector.load %arg1[%c0, %c0_0, %c0_1] : memref<1x2x64xbf16, #tpu.memory_space<vmem>>, vector<1x2x64xbf16>
    %1 = vector.shape_cast %0 : vector<1x2x64xbf16> to vector<2x64xbf16>
    %2 = arith.extf %1 : vector<2x64xbf16> to vector<2x64xf32>
    %c0_2 = arith.constant 0 : index
    %c0_3 = arith.constant 0 : index
    %3 = vector.load %arg2[%c0_2, %c0_3] : memref<4x2xf32, #tpu.memory_space<vmem>>, vector<4x2xf32>
    %cst = arith.constant dense<0.000000e+00> : vector<4x64xf32>
    %4 = tpu.matmul %3, %2, %cst {dimension_numbers = #tpu.dot_dimension_numbers<[1], [0], [0], [1], [0, 0, 1, 1], [], []>} : vector<4x2xf32>, vector<2x64xf32>, vector<4x64xf32> -> vector<4x64xf32>
    %c0_4 = arith.constant 0 : index
    %c0_5 = arith.constant 0 : index
    %5 = vector.load %arg3[%c0_4, %c0_5] : memref<64x128xf32, #tpu.memory_space<vmem>>, vector<64x128xf32>
    %cst_6 = arith.constant dense<0.000000e+00> : vector<4x128xf32>
    %6 = tpu.matmul %4, %5, %cst_6 {dimension_numbers = #tpu.dot_dimension_numbers<[1], [0], [0], [1], [0, 0, 1, 1], [], []>} : vector<4x64xf32>, vector<64x128xf32>, vector<4x128xf32> -> vector<4x128xf32>
    %7 = arith.truncf %6 : vector<4x128xf32> to vector<4x128xbf16>
    %c0_7 = arith.constant 0 : index
    %c0_8 = arith.constant 0 : index
    %c0_9 = arith.constant 0 : index
    %8 = vector.load %arg4[%c0_7, %c0_8, %c0_9] : memref<1x4x128xbf16, #tpu.memory_space<vmem>>, vector<1x4x128xbf16>
    %9 = vector.shape_cast %8 : vector<1x4x128xbf16> to vector<4x128xbf16>
    %10 = vector.shape_cast %7 : vector<4x128xbf16> to vector<1x4x128xbf16>
    tpu.vector_store %arg4[%c0_7, %c0_8, %c0_9], %10 {strides = array<i32>} : memref<1x4x128xbf16, #tpu.memory_space<vmem>>, vector<1x4x128xbf16>,
    return
  }
  func.func @transform_0(%arg0: i32) -> (i32, i32, i32) {
    %c0_i32 = arith.constant 0 : i32
    %c0_i32_0 = arith.constant 0 : i32
    %c0_i32_1 = arith.constant 0 : i32
    return %arg0, %c0_i32, %c0_i32_0 : i32, i32, i32
  }
  func.func @transform_1(%arg0: i32) -> (i32, i32) {
    %c0_i32 = arith.constant 0 : i32
    %c0_i32_0 = arith.constant 0 : i32
    %c0_i32_1 = arith.constant 0 : i32
    return %c0_i32, %c0_i32_0 : i32, i32
  }
  func.func @transform_2(%arg0: i32) -> (i32, i32) {
    %c0_i32 = arith.constant 0 : i32
    %c0_i32_0 = arith.constant 0 : i32
    %c0_i32_1 = arith.constant 0 : i32
    return %c0_i32, %c0_i32_0 : i32, i32
  }
  func.func @transform_3(%arg0: i32) -> (i32, i32, i32) {
    %c0_i32 = arith.constant 0 : i32
    %c0_i32_0 = arith.constant 0 : i32
    %c0_i32_1 = arith.constant 0 : i32
    return %arg0, %c0_i32, %c0_i32_0 : i32, i32, i32
  }
}

module attributes {stable_mosaic.version = 11 : i64} {
  func.func @_mm_bias_act_kernel(%arg0: i32, %arg1: memref<32x32xbf16, #tpu.memory_space<vmem>>, %arg2: memref<32x32xbf16, #tpu.memory_space<vmem>>, %arg3: memref<1x32xf32, #tpu.memory_space<vmem>>, %arg4: memref<32x32xbf16, #tpu.memory_space<vmem>>) attributes {dimension_semantics = [#tpu.dimension_semantics<parallel>], iteration_bounds = array<i64: 1>, scalar_prefetch = 0 : i64, scratch_operands = 0 : i64, tpu.core_type = #tpu.core_type<tc>, window_params = [{transform_indices = @transform_0, window_bounds = array<i64: 32, 32>}, {pipeline_mode = #tpu.pipeline_mode<synchronous>, transform_indices = @transform_1, window_bounds = array<i64: 32, 32>}, {pipeline_mode = #tpu.pipeline_mode<synchronous>, transform_indices = @transform_2, window_bounds = array<i64: 1, 32>}, {transform_indices = @transform_3, window_bounds = array<i64: 32, 32>}]} {
    %c0 = arith.constant 0 : index
    %c0_0 = arith.constant 0 : index
    %0 = vector.load %arg1[%c0, %c0_0] : memref<32x32xbf16, #tpu.memory_space<vmem>>, vector<32x32xbf16>
    %c0_1 = arith.constant 0 : index
    %c0_2 = arith.constant 0 : index
    %1 = vector.load %arg2[%c0_1, %c0_2] : memref<32x32xbf16, #tpu.memory_space<vmem>>, vector<32x32xbf16>
    %cst = arith.constant dense<0.000000e+00> : vector<32x32xf32>
    %2 = tpu.matmul %0, %1, %cst {dimension_numbers = #tpu.dot_dimension_numbers<[1], [0], [0], [1], [0, 0, 1, 1], [], []>} : vector<32x32xbf16>, vector<32x32xbf16>, vector<32x32xf32> -> vector<32x32xf32>
    %c0_3 = arith.constant 0 : index
    %c0_4 = arith.constant 0 : index
    %3 = vector.load %arg3[%c0_3, %c0_4] : memref<1x32xf32, #tpu.memory_space<vmem>>, vector<1x32xf32>
    %4 = vector.broadcast %3 : vector<1x32xf32> to vector<32x32xf32>
    %5 = arith.addf %2, %4 : vector<32x32xf32>
    %6 = arith.truncf %5 : vector<32x32xf32> to vector<32x32xbf16>
    %c0_5 = arith.constant 0 : index
    %c0_6 = arith.constant 0 : index
    %7 = vector.load %arg4[%c0_5, %c0_6] : memref<32x32xbf16, #tpu.memory_space<vmem>>, vector<32x32xbf16>
    tpu.vector_store %arg4[%c0_5, %c0_6], %6 {strides = array<i32>} : memref<32x32xbf16, #tpu.memory_space<vmem>>, vector<32x32xbf16>,
    return
  }
  func.func @transform_0(%arg0: i32) -> (i32, i32) {
    %c0_i32 = arith.constant 0 : i32
    %c0_i32_0 = arith.constant 0 : i32
    return %arg0, %c0_i32 : i32, i32
  }
  func.func @transform_1(%arg0: i32) -> (i32, i32) {
    %c0_i32 = arith.constant 0 : i32
    %c0_i32_0 = arith.constant 0 : i32
    %c0_i32_1 = arith.constant 0 : i32
    return %c0_i32, %c0_i32_0 : i32, i32
  }
  func.func @transform_2(%arg0: i32) -> (i32, i32) {
    %c0_i32 = arith.constant 0 : i32
    %c0_i32_0 = arith.constant 0 : i32
    %c0_i32_1 = arith.constant 0 : i32
    return %c0_i32, %c0_i32_0 : i32, i32
  }
  func.func @transform_3(%arg0: i32) -> (i32, i32) {
    %c0_i32 = arith.constant 0 : i32
    %c0_i32_0 = arith.constant 0 : i32
    return %arg0, %c0_i32 : i32, i32
  }
}

module attributes {stable_mosaic.version = 11 : i64} {
  func.func @_mm_bias_act_kernel(%arg0: i32, %arg1: memref<8x64xbf16, #tpu.memory_space<vmem>>, %arg2: memref<64x32xbf16, #tpu.memory_space<vmem>>, %arg3: memref<1x32xf32, #tpu.memory_space<vmem>>, %arg4: memref<8x32xbf16, #tpu.memory_space<vmem>>) attributes {dimension_semantics = [#tpu.dimension_semantics<parallel>], iteration_bounds = array<i64: 1>, scalar_prefetch = 0 : i64, scratch_operands = 0 : i64, tpu.core_type = #tpu.core_type<tc>, window_params = [{transform_indices = @transform_0, window_bounds = array<i64: 8, 64>}, {pipeline_mode = #tpu.pipeline_mode<synchronous>, transform_indices = @transform_1, window_bounds = array<i64: 64, 32>}, {pipeline_mode = #tpu.pipeline_mode<synchronous>, transform_indices = @transform_2, window_bounds = array<i64: 1, 32>}, {transform_indices = @transform_3, window_bounds = array<i64: 8, 32>}]} {
    %c0 = arith.constant 0 : index
    %c0_0 = arith.constant 0 : index
    %0 = vector.load %arg1[%c0, %c0_0] : memref<8x64xbf16, #tpu.memory_space<vmem>>, vector<8x64xbf16>
    %c0_1 = arith.constant 0 : index
    %c0_2 = arith.constant 0 : index
    %1 = vector.load %arg2[%c0_1, %c0_2] : memref<64x32xbf16, #tpu.memory_space<vmem>>, vector<64x32xbf16>
    %cst = arith.constant dense<0.000000e+00> : vector<8x32xf32>
    %2 = tpu.matmul %0, %1, %cst {dimension_numbers = #tpu.dot_dimension_numbers<[1], [0], [0], [1], [0, 0, 1, 1], [], []>} : vector<8x64xbf16>, vector<64x32xbf16>, vector<8x32xf32> -> vector<8x32xf32>
    %c0_3 = arith.constant 0 : index
    %c0_4 = arith.constant 0 : index
    %3 = vector.load %arg3[%c0_3, %c0_4] : memref<1x32xf32, #tpu.memory_space<vmem>>, vector<1x32xf32>
    %4 = vector.broadcast %3 : vector<1x32xf32> to vector<8x32xf32>
    %5 = arith.addf %2, %4 : vector<8x32xf32>
    %6 = arith.truncf %5 : vector<8x32xf32> to vector<8x32xbf16>
    %c0_5 = arith.constant 0 : index
    %c0_6 = arith.constant 0 : index
    %7 = vector.load %arg4[%c0_5, %c0_6] : memref<8x32xbf16, #tpu.memory_space<vmem>>, vector<8x32xbf16>
    tpu.vector_store %arg4[%c0_5, %c0_6], %6 {strides = array<i32>} : memref<8x32xbf16, #tpu.memory_space<vmem>>, vector<8x32xbf16>,
    return
  }
  func.func @transform_0(%arg0: i32) -> (i32, i32) {
    %c0_i32 = arith.constant 0 : i32
    %c0_i32_0 = arith.constant 0 : i32
    return %arg0, %c0_i32 : i32, i32
  }
  func.func @transform_1(%arg0: i32) -> (i32, i32) {
    %c0_i32 = arith.constant 0 : i32
    %c0_i32_0 = arith.constant 0 : i32
    %c0_i32_1 = arith.constant 0 : i32
    return %c0_i32, %c0_i32_0 : i32, i32
  }
  func.func @transform_2(%arg0: i32) -> (i32, i32) {
    %c0_i32 = arith.constant 0 : i32
    %c0_i32_0 = arith.constant 0 : i32
    %c0_i32_1 = arith.constant 0 : i32
    return %c0_i32, %c0_i32_0 : i32, i32
  }
  func.func @transform_3(%arg0: i32) -> (i32, i32) {
    %c0_i32 = arith.constant 0 : i32
    %c0_i32_0 = arith.constant 0 : i32
    return %arg0, %c0_i32 : i32, i32
  }
}

module attributes {stable_mosaic.version = 11 : i64} {
  func.func @_mm_bias_act_kernel(%arg0: i32, %arg1: memref<128x16xbf16, #tpu.memory_space<vmem>>, %arg2: memref<16x32xbf16, #tpu.memory_space<vmem>>, %arg3: memref<1x32xf32, #tpu.memory_space<vmem>>, %arg4: memref<128x32xbf16, #tpu.memory_space<vmem>>) attributes {dimension_semantics = [#tpu.dimension_semantics<parallel>], iteration_bounds = array<i64: 1>, scalar_prefetch = 0 : i64, scratch_operands = 0 : i64, tpu.core_type = #tpu.core_type<tc>, window_params = [{transform_indices = @transform_0, window_bounds = array<i64: 128, 16>}, {pipeline_mode = #tpu.pipeline_mode<synchronous>, transform_indices = @transform_1, window_bounds = array<i64: 16, 32>}, {pipeline_mode = #tpu.pipeline_mode<synchronous>, transform_indices = @transform_2, window_bounds = array<i64: 1, 32>}, {transform_indices = @transform_3, window_bounds = array<i64: 128, 32>}]} {
    %c0 = arith.constant 0 : index
    %c0_0 = arith.constant 0 : index
    %0 = vector.load %arg1[%c0, %c0_0] : memref<128x16xbf16, #tpu.memory_space<vmem>>, vector<128x16xbf16>
    %c0_1 = arith.constant 0 : index
    %c0_2 = arith.constant 0 : index
    %1 = vector.load %arg2[%c0_1, %c0_2] : memref<16x32xbf16, #tpu.memory_space<vmem>>, vector<16x32xbf16>
    %cst = arith.constant dense<0.000000e+00> : vector<128x32xf32>
    %2 = tpu.matmul %0, %1, %cst {dimension_numbers = #tpu.dot_dimension_numbers<[1], [0], [0], [1], [0, 0, 1, 1], [], []>} : vector<128x16xbf16>, vector<16x32xbf16>, vector<128x32xf32> -> vector<128x32xf32>
    %c0_3 = arith.constant 0 : index
    %c0_4 = arith.constant 0 : index
    %3 = vector.load %arg3[%c0_3, %c0_4] : memref<1x32xf32, #tpu.memory_space<vmem>>, vector<1x32xf32>
    %4 = vector.broadcast %3 : vector<1x32xf32> to vector<128x32xf32>
    %5 = arith.addf %2, %4 : vector<128x32xf32>
    %6 = arith.truncf %5 : vector<128x32xf32> to vector<128x32xbf16>
    %c0_5 = arith.constant 0 : index
    %c0_6 = arith.constant 0 : index
    %7 = vector.load %arg4[%c0_5, %c0_6] : memref<128x32xbf16, #tpu.memory_space<vmem>>, vector<128x32xbf16>
    tpu.vector_store %arg4[%c0_5, %c0_6], %6 {strides = array<i32>} : memref<128x32xbf16, #tpu.memory_space<vmem>>, vector<128x32xbf16>,
    return
  }
  func.func @transform_0(%arg0: i32) -> (i32, i32) {
    %c0_i32 = arith.constant 0 : i32
    %c0_i32_0 = arith.constant 0 : i32
    return %arg0, %c0_i32 : i32, i32
  }
  func.func @transform_1(%arg0: i32) -> (i32, i32) {
    %c0_i32 = arith.constant 0 : i32
    %c0_i32_0 = arith.constant 0 : i32
    %c0_i32_1 = arith.constant 0 : i32
    return %c0_i32, %c0_i32_0 : i32, i32
  }
  func.func @transform_2(%arg0: i32) -> (i32, i32) {
    %c0_i32 = arith.constant 0 : i32
    %c0_i32_0 = arith.constant 0 : i32
    %c0_i32_1 = arith.constant 0 : i32
    return %c0_i32, %c0_i32_0 : i32, i32
  }
  func.func @transform_3(%arg0: i32) -> (i32, i32) {
    %c0_i32 = arith.constant 0 : i32
    %c0_i32_0 = arith.constant 0 : i32
    return %arg0, %c0_i32 : i32, i32
  }
}

module attributes {stable_mosaic.version = 11 : i64} {
  func.func @_resize_nhwc_kernel(%arg0: i32, %arg1: memref<1x4x128xbf16, #tpu.memory_space<vmem>>, %arg2: memref<8x4xf32, #tpu.memory_space<vmem>>, %arg3: memref<128x256xf32, #tpu.memory_space<vmem>>, %arg4: memref<1x8x256xbf16, #tpu.memory_space<vmem>>) attributes {dimension_semantics = [#tpu.dimension_semantics<parallel>], iteration_bounds = array<i64: 2>, scalar_prefetch = 0 : i64, scratch_operands = 0 : i64, tpu.core_type = #tpu.core_type<tc>, window_params = [{transform_indices = @transform_0, window_bounds = array<i64: 1, 4, 128>}, {pipeline_mode = #tpu.pipeline_mode<synchronous>, transform_indices = @transform_1, window_bounds = array<i64: 8, 4>}, {pipeline_mode = #tpu.pipeline_mode<synchronous>, transform_indices = @transform_2, window_bounds = array<i64: 128, 256>}, {transform_indices = @transform_3, window_bounds = array<i64: 1, 8, 256>}]} {
    %c0 = arith.constant 0 : index
    %c0_0 = arith.constant 0 : index
    %c0_1 = arith.constant 0 : index
    %0 = vector.load %arg1[%c0, %c0_0, %c0_1] : memref<1x4x128xbf16, #tpu.memory_space<vmem>>, vector<1x4x128xbf16>
    %1 = vector.shape_cast %0 : vector<1x4x128xbf16> to vector<4x128xbf16>
    %2 = arith.extf %1 : vector<4x128xbf16> to vector<4x128xf32>
    %c0_2 = arith.constant 0 : index
    %c0_3 = arith.constant 0 : index
    %3 = vector.load %arg2[%c0_2, %c0_3] : memref<8x4xf32, #tpu.memory_space<vmem>>, vector<8x4xf32>
    %cst = arith.constant dense<0.000000e+00> : vector<8x128xf32>
    %4 = tpu.matmul %3, %2, %cst {dimension_numbers = #tpu.dot_dimension_numbers<[1], [0], [0], [1], [0, 0, 1, 1], [], []>} : vector<8x4xf32>, vector<4x128xf32>, vector<8x128xf32> -> vector<8x128xf32>
    %c0_4 = arith.constant 0 : index
    %c0_5 = arith.constant 0 : index
    %5 = vector.load %arg3[%c0_4, %c0_5] : memref<128x256xf32, #tpu.memory_space<vmem>>, vector<128x256xf32>
    %cst_6 = arith.constant dense<0.000000e+00> : vector<8x256xf32>
    %6 = tpu.matmul %4, %5, %cst_6 {dimension_numbers = #tpu.dot_dimension_numbers<[1], [0], [0], [1], [0, 0, 1, 1], [], []>} : vector<8x128xf32>, vector<128x256xf32>, vector<8x256xf32> -> vector<8x256xf32>
    %7 = arith.truncf %6 : vector<8x256xf32> to vector<8x256xbf16>
    %c0_7 = arith.constant 0 : index
    %c0_8 = arith.constant 0 : index
    %c0_9 = arith.constant 0 : index
    %8 = vector.load %arg4[%c0_7, %c0_8, %c0_9] : memref<1x8x256xbf16, #tpu.memory_space<vmem>>, vector<1x8x256xbf16>
    %9 = vector.shape_cast %8 : vector<1x8x256xbf16> to vector<8x256xbf16>
    %10 = vector.shape_cast %7 : vector<8x256xbf16> to vector<1x8x256xbf16>
    tpu.vector_store %arg4[%c0_7, %c0_8, %c0_9], %10 {strides = array<i32>} : memref<1x8x256xbf16, #tpu.memory_space<vmem>>, vector<1x8x256xbf16>,
    return
  }
  func.func @transform_0(%arg0: i32) -> (i32, i32, i32) {
    %c0_i32 = arith.constant 0 : i32
    %c0_i32_0 = arith.constant 0 : i32
    %c0_i32_1 = arith.constant 0 : i32
    return %arg0, %c0_i32, %c0_i32_0 : i32, i32, i32
  }
  func.func @transform_1(%arg0: i32) -> (i32, i32) {
    %c0_i32 = arith.constant 0 : i32
    %c0_i32_0 = arith.constant 0 : i32
    %c0_i32_1 = arith.constant 0 : i32
    return %c0_i32, %c0_i32_0 : i32, i32
  }
  func.func @transform_2(%arg0: i32) -> (i32, i32) {
    %c0_i32 = arith.constant 0 : i32
    %c0_i32_0 = arith.constant 0 : i32
    %c0_i32_1 = arith.constant 0 : i32
    return %c0_i32, %c0_i32_0 : i32, i32
  }
  func.func @transform_3(%arg0: i32) -> (i32, i32, i32) {
    %c0_i32 = arith.constant 0 : i32
    %c0_i32_0 = arith.constant 0 : i32
    %c0_i32_1 = arith.constant 0 : i32
    return %arg0, %c0_i32, %c0_i32_0 : i32, i32, i32
  }
}

module attributes {stable_mosaic.version = 11 : i64} {
  func.func @_mm_bias_act_kernel(%arg0: i32, %arg1: memref<128x32xbf16, #tpu.memory_space<vmem>>, %arg2: memref<32x8xbf16, #tpu.memory_space<vmem>>, %arg3: memref<1x8xf32, #tpu.memory_space<vmem>>, %arg4: memref<128x8xbf16, #tpu.memory_space<vmem>>) attributes {dimension_semantics = [#tpu.dimension_semantics<parallel>], iteration_bounds = array<i64: 1>, scalar_prefetch = 0 : i64, scratch_operands = 0 : i64, tpu.core_type = #tpu.core_type<tc>, window_params = [{transform_indices = @transform_0, window_bounds = array<i64: 128, 32>}, {pipeline_mode = #tpu.pipeline_mode<synchronous>, transform_indices = @transform_1, window_bounds = array<i64: 32, 8>}, {pipeline_mode = #tpu.pipeline_mode<synchronous>, transform_indices = @transform_2, window_bounds = array<i64: 1, 8>}, {transform_indices = @transform_3, window_bounds = array<i64: 128, 8>}]} {
    %c0 = arith.constant 0 : index
    %c0_0 = arith.constant 0 : index
    %0 = vector.load %arg1[%c0, %c0_0] : memref<128x32xbf16, #tpu.memory_space<vmem>>, vector<128x32xbf16>
    %c0_1 = arith.constant 0 : index
    %c0_2 = arith.constant 0 : index
    %1 = vector.load %arg2[%c0_1, %c0_2] : memref<32x8xbf16, #tpu.memory_space<vmem>>, vector<32x8xbf16>
    %cst = arith.constant dense<0.000000e+00> : vector<128x8xf32>
    %2 = tpu.matmul %0, %1, %cst {dimension_numbers = #tpu.dot_dimension_numbers<[1], [0], [0], [1], [0, 0, 1, 1], [], []>} : vector<128x32xbf16>, vector<32x8xbf16>, vector<128x8xf32> -> vector<128x8xf32>
    %c0_3 = arith.constant 0 : index
    %c0_4 = arith.constant 0 : index
    %3 = vector.load %arg3[%c0_3, %c0_4] : memref<1x8xf32, #tpu.memory_space<vmem>>, vector<1x8xf32>
    %4 = vector.broadcast %3 : vector<1x8xf32> to vector<128x8xf32>
    %5 = arith.addf %2, %4 : vector<128x8xf32>
    %cst_5 = arith.constant 0.000000e+00 : f32
    %6 = vector.broadcast %cst_5 : f32 to vector<128x8xf32>
    %7 = arith.maximumf %5, %6 : vector<128x8xf32>
    %8 = arith.truncf %7 : vector<128x8xf32> to vector<128x8xbf16>
    %c0_6 = arith.constant 0 : index
    %c0_7 = arith.constant 0 : index
    %9 = vector.load %arg4[%c0_6, %c0_7] : memref<128x8xbf16, #tpu.memory_space<vmem>>, vector<128x8xbf16>
    tpu.vector_store %arg4[%c0_6, %c0_7], %8 {strides = array<i32>} : memref<128x8xbf16, #tpu.memory_space<vmem>>, vector<128x8xbf16>,
    return
  }
  func.func @transform_0(%arg0: i32) -> (i32, i32) {
    %c0_i32 = arith.constant 0 : i32
    %c0_i32_0 = arith.constant 0 : i32
    return %arg0, %c0_i32 : i32, i32
  }
  func.func @transform_1(%arg0: i32) -> (i32, i32) {
    %c0_i32 = arith.constant 0 : i32
    %c0_i32_0 = arith.constant 0 : i32
    %c0_i32_1 = arith.constant 0 : i32
    return %c0_i32, %c0_i32_0 : i32, i32
  }
  func.func @transform_2(%arg0: i32) -> (i32, i32) {
    %c0_i32 = arith.constant 0 : i32
    %c0_i32_0 = arith.constant 0 : i32
    %c0_i32_1 = arith.constant 0 : i32
    return %c0_i32, %c0_i32_0 : i32, i32
  }
  func.func @transform_3(%arg0: i32) -> (i32, i32) {
    %c0_i32 = arith.constant 0 : i32
    %c0_i32_0 = arith.constant 0 : i32
    return %arg0, %c0_i32 : i32, i32
  }
}

module attributes {stable_mosaic.version = 11 : i64} {
  func.func @_mm_bias_act_kernel(%arg0: i32, %arg1: memref<32x32xbf16, #tpu.memory_space<vmem>>, %arg2: memref<32x8xbf16, #tpu.memory_space<vmem>>, %arg3: memref<1x8xf32, #tpu.memory_space<vmem>>, %arg4: memref<32x8xbf16, #tpu.memory_space<vmem>>) attributes {dimension_semantics = [#tpu.dimension_semantics<parallel>], iteration_bounds = array<i64: 1>, scalar_prefetch = 0 : i64, scratch_operands = 0 : i64, tpu.core_type = #tpu.core_type<tc>, window_params = [{transform_indices = @transform_0, window_bounds = array<i64: 32, 32>}, {pipeline_mode = #tpu.pipeline_mode<synchronous>, transform_indices = @transform_1, window_bounds = array<i64: 32, 8>}, {pipeline_mode = #tpu.pipeline_mode<synchronous>, transform_indices = @transform_2, window_bounds = array<i64: 1, 8>}, {transform_indices = @transform_3, window_bounds = array<i64: 32, 8>}]} {
    %c0 = arith.constant 0 : index
    %c0_0 = arith.constant 0 : index
    %0 = vector.load %arg1[%c0, %c0_0] : memref<32x32xbf16, #tpu.memory_space<vmem>>, vector<32x32xbf16>
    %c0_1 = arith.constant 0 : index
    %c0_2 = arith.constant 0 : index
    %1 = vector.load %arg2[%c0_1, %c0_2] : memref<32x8xbf16, #tpu.memory_space<vmem>>, vector<32x8xbf16>
    %cst = arith.constant dense<0.000000e+00> : vector<32x8xf32>
    %2 = tpu.matmul %0, %1, %cst {dimension_numbers = #tpu.dot_dimension_numbers<[1], [0], [0], [1], [0, 0, 1, 1], [], []>} : vector<32x32xbf16>, vector<32x8xbf16>, vector<32x8xf32> -> vector<32x8xf32>
    %c0_3 = arith.constant 0 : index
    %c0_4 = arith.constant 0 : index
    %3 = vector.load %arg3[%c0_3, %c0_4] : memref<1x8xf32, #tpu.memory_space<vmem>>, vector<1x8xf32>
    %4 = vector.broadcast %3 : vector<1x8xf32> to vector<32x8xf32>
    %5 = arith.addf %2, %4 : vector<32x8xf32>
    %cst_5 = arith.constant 0.000000e+00 : f32
    %6 = vector.broadcast %cst_5 : f32 to vector<32x8xf32>
    %7 = arith.maximumf %5, %6 : vector<32x8xf32>
    %8 = arith.truncf %7 : vector<32x8xf32> to vector<32x8xbf16>
    %c0_6 = arith.constant 0 : index
    %c0_7 = arith.constant 0 : index
    %9 = vector.load %arg4[%c0_6, %c0_7] : memref<32x8xbf16, #tpu.memory_space<vmem>>, vector<32x8xbf16>
    tpu.vector_store %arg4[%c0_6, %c0_7], %8 {strides = array<i32>} : memref<32x8xbf16, #tpu.memory_space<vmem>>, vector<32x8xbf16>,
    return
  }
  func.func @transform_0(%arg0: i32) -> (i32, i32) {
    %c0_i32 = arith.constant 0 : i32
    %c0_i32_0 = arith.constant 0 : i32
    return %arg0, %c0_i32 : i32, i32
  }
  func.func @transform_1(%arg0: i32) -> (i32, i32) {
    %c0_i32 = arith.constant 0 : i32
    %c0_i32_0 = arith.constant 0 : i32
    %c0_i32_1 = arith.constant 0 : i32
    return %c0_i32, %c0_i32_0 : i32, i32
  }
  func.func @transform_2(%arg0: i32) -> (i32, i32) {
    %c0_i32 = arith.constant 0 : i32
    %c0_i32_0 = arith.constant 0 : i32
    %c0_i32_1 = arith.constant 0 : i32
    return %c0_i32, %c0_i32_0 : i32, i32
  }
  func.func @transform_3(%arg0: i32) -> (i32, i32) {
    %c0_i32 = arith.constant 0 : i32
    %c0_i32_0 = arith.constant 0 : i32
    return %arg0, %c0_i32 : i32, i32
  }
}

module attributes {stable_mosaic.version = 11 : i64} {
  func.func @_resize_nhwc_kernel(%arg0: i32, %arg1: memref<1x4x32xbf16, #tpu.memory_space<vmem>>, %arg2: memref<8x4xf32, #tpu.memory_space<vmem>>, %arg3: memref<32x64xf32, #tpu.memory_space<vmem>>, %arg4: memref<1x8x64xbf16, #tpu.memory_space<vmem>>) attributes {dimension_semantics = [#tpu.dimension_semantics<parallel>], iteration_bounds = array<i64: 2>, scalar_prefetch = 0 : i64, scratch_operands = 0 : i64, tpu.core_type = #tpu.core_type<tc>, window_params = [{transform_indices = @transform_0, window_bounds = array<i64: 1, 4, 32>}, {pipeline_mode = #tpu.pipeline_mode<synchronous>, transform_indices = @transform_1, window_bounds = array<i64: 8, 4>}, {pipeline_mode = #tpu.pipeline_mode<synchronous>, transform_indices = @transform_2, window_bounds = array<i64: 32, 64>}, {transform_indices = @transform_3, window_bounds = array<i64: 1, 8, 64>}]} {
    %c0 = arith.constant 0 : index
    %c0_0 = arith.constant 0 : index
    %c0_1 = arith.constant 0 : index
    %0 = vector.load %arg1[%c0, %c0_0, %c0_1] : memref<1x4x32xbf16, #tpu.memory_space<vmem>>, vector<1x4x32xbf16>
    %1 = vector.shape_cast %0 : vector<1x4x32xbf16> to vector<4x32xbf16>
    %2 = arith.extf %1 : vector<4x32xbf16> to vector<4x32xf32>
    %c0_2 = arith.constant 0 : index
    %c0_3 = arith.constant 0 : index
    %3 = vector.load %arg2[%c0_2, %c0_3] : memref<8x4xf32, #tpu.memory_space<vmem>>, vector<8x4xf32>
    %cst = arith.constant dense<0.000000e+00> : vector<8x32xf32>
    %4 = tpu.matmul %3, %2, %cst {dimension_numbers = #tpu.dot_dimension_numbers<[1], [0], [0], [1], [0, 0, 1, 1], [], []>} : vector<8x4xf32>, vector<4x32xf32>, vector<8x32xf32> -> vector<8x32xf32>
    %c0_4 = arith.constant 0 : index
    %c0_5 = arith.constant 0 : index
    %5 = vector.load %arg3[%c0_4, %c0_5] : memref<32x64xf32, #tpu.memory_space<vmem>>, vector<32x64xf32>
    %cst_6 = arith.constant dense<0.000000e+00> : vector<8x64xf32>
    %6 = tpu.matmul %4, %5, %cst_6 {dimension_numbers = #tpu.dot_dimension_numbers<[1], [0], [0], [1], [0, 0, 1, 1], [], []>} : vector<8x32xf32>, vector<32x64xf32>, vector<8x64xf32> -> vector<8x64xf32>
    %7 = arith.truncf %6 : vector<8x64xf32> to vector<8x64xbf16>
    %c0_7 = arith.constant 0 : index
    %c0_8 = arith.constant 0 : index
    %c0_9 = arith.constant 0 : index
    %8 = vector.load %arg4[%c0_7, %c0_8, %c0_9] : memref<1x8x64xbf16, #tpu.memory_space<vmem>>, vector<1x8x64xbf16>
    %9 = vector.shape_cast %8 : vector<1x8x64xbf16> to vector<8x64xbf16>
    %10 = vector.shape_cast %7 : vector<8x64xbf16> to vector<1x8x64xbf16>
    tpu.vector_store %arg4[%c0_7, %c0_8, %c0_9], %10 {strides = array<i32>} : memref<1x8x64xbf16, #tpu.memory_space<vmem>>, vector<1x8x64xbf16>,
    return
  }
  func.func @transform_0(%arg0: i32) -> (i32, i32, i32) {
    %c0_i32 = arith.constant 0 : i32
    %c0_i32_0 = arith.constant 0 : i32
    %c0_i32_1 = arith.constant 0 : i32
    return %arg0, %c0_i32, %c0_i32_0 : i32, i32, i32
  }
  func.func @transform_1(%arg0: i32) -> (i32, i32) {
    %c0_i32 = arith.constant 0 : i32
    %c0_i32_0 = arith.constant 0 : i32
    %c0_i32_1 = arith.constant 0 : i32
    return %c0_i32, %c0_i32_0 : i32, i32
  }
  func.func @transform_2(%arg0: i32) -> (i32, i32) {
    %c0_i32 = arith.constant 0 : i32
    %c0_i32_0 = arith.constant 0 : i32
    %c0_i32_1 = arith.constant 0 : i32
    return %c0_i32, %c0_i32_0 : i32, i32
  }
  func.func @transform_3(%arg0: i32) -> (i32, i32, i32) {
    %c0_i32 = arith.constant 0 : i32
    %c0_i32_0 = arith.constant 0 : i32
    %c0_i32_1 = arith.constant 0 : i32
    return %arg0, %c0_i32, %c0_i32_0 : i32, i32, i32
  }
}

module attributes {stable_mosaic.version = 11 : i64} {
  func.func @_mm_bias_act_kernel(%arg0: i32, %arg1: memref<8x32xbf16, #tpu.memory_space<vmem>>, %arg2: memref<32x8xbf16, #tpu.memory_space<vmem>>, %arg3: memref<1x8xf32, #tpu.memory_space<vmem>>, %arg4: memref<8x8xbf16, #tpu.memory_space<vmem>>) attributes {dimension_semantics = [#tpu.dimension_semantics<parallel>], iteration_bounds = array<i64: 1>, scalar_prefetch = 0 : i64, scratch_operands = 0 : i64, tpu.core_type = #tpu.core_type<tc>, window_params = [{transform_indices = @transform_0, window_bounds = array<i64: 8, 32>}, {pipeline_mode = #tpu.pipeline_mode<synchronous>, transform_indices = @transform_1, window_bounds = array<i64: 32, 8>}, {pipeline_mode = #tpu.pipeline_mode<synchronous>, transform_indices = @transform_2, window_bounds = array<i64: 1, 8>}, {transform_indices = @transform_3, window_bounds = array<i64: 8, 8>}]} {
    %c0 = arith.constant 0 : index
    %c0_0 = arith.constant 0 : index
    %0 = vector.load %arg1[%c0, %c0_0] : memref<8x32xbf16, #tpu.memory_space<vmem>>, vector<8x32xbf16>
    %c0_1 = arith.constant 0 : index
    %c0_2 = arith.constant 0 : index
    %1 = vector.load %arg2[%c0_1, %c0_2] : memref<32x8xbf16, #tpu.memory_space<vmem>>, vector<32x8xbf16>
    %cst = arith.constant dense<0.000000e+00> : vector<8x8xf32>
    %2 = tpu.matmul %0, %1, %cst {dimension_numbers = #tpu.dot_dimension_numbers<[1], [0], [0], [1], [0, 0, 1, 1], [], []>} : vector<8x32xbf16>, vector<32x8xbf16>, vector<8x8xf32> -> vector<8x8xf32>
    %c0_3 = arith.constant 0 : index
    %c0_4 = arith.constant 0 : index
    %3 = vector.load %arg3[%c0_3, %c0_4] : memref<1x8xf32, #tpu.memory_space<vmem>>, vector<1x8xf32>
    %4 = vector.broadcast %3 : vector<1x8xf32> to vector<8x8xf32>
    %5 = arith.addf %2, %4 : vector<8x8xf32>
    %cst_5 = arith.constant 0.000000e+00 : f32
    %6 = vector.broadcast %cst_5 : f32 to vector<8x8xf32>
    %7 = arith.maximumf %5, %6 : vector<8x8xf32>
    %8 = arith.truncf %7 : vector<8x8xf32> to vector<8x8xbf16>
    %c0_6 = arith.constant 0 : index
    %c0_7 = arith.constant 0 : index
    %9 = vector.load %arg4[%c0_6, %c0_7] : memref<8x8xbf16, #tpu.memory_space<vmem>>, vector<8x8xbf16>
    tpu.vector_store %arg4[%c0_6, %c0_7], %8 {strides = array<i32>} : memref<8x8xbf16, #tpu.memory_space<vmem>>, vector<8x8xbf16>,
    return
  }
  func.func @transform_0(%arg0: i32) -> (i32, i32) {
    %c0_i32 = arith.constant 0 : i32
    %c0_i32_0 = arith.constant 0 : i32
    return %arg0, %c0_i32 : i32, i32
  }
  func.func @transform_1(%arg0: i32) -> (i32, i32) {
    %c0_i32 = arith.constant 0 : i32
    %c0_i32_0 = arith.constant 0 : i32
    %c0_i32_1 = arith.constant 0 : i32
    return %c0_i32, %c0_i32_0 : i32, i32
  }
  func.func @transform_2(%arg0: i32) -> (i32, i32) {
    %c0_i32 = arith.constant 0 : i32
    %c0_i32_0 = arith.constant 0 : i32
    %c0_i32_1 = arith.constant 0 : i32
    return %c0_i32, %c0_i32_0 : i32, i32
  }
  func.func @transform_3(%arg0: i32) -> (i32, i32) {
    %c0_i32 = arith.constant 0 : i32
    %c0_i32_0 = arith.constant 0 : i32
    return %arg0, %c0_i32 : i32, i32
  }
}

module attributes {stable_mosaic.version = 11 : i64} {
  func.func @_resize_nhwc_kernel(%arg0: i32, %arg1: memref<1x2x16xbf16, #tpu.memory_space<vmem>>, %arg2: memref<8x2xf32, #tpu.memory_space<vmem>>, %arg3: memref<16x64xf32, #tpu.memory_space<vmem>>, %arg4: memref<1x8x64xbf16, #tpu.memory_space<vmem>>) attributes {dimension_semantics = [#tpu.dimension_semantics<parallel>], iteration_bounds = array<i64: 2>, scalar_prefetch = 0 : i64, scratch_operands = 0 : i64, tpu.core_type = #tpu.core_type<tc>, window_params = [{transform_indices = @transform_0, window_bounds = array<i64: 1, 2, 16>}, {pipeline_mode = #tpu.pipeline_mode<synchronous>, transform_indices = @transform_1, window_bounds = array<i64: 8, 2>}, {pipeline_mode = #tpu.pipeline_mode<synchronous>, transform_indices = @transform_2, window_bounds = array<i64: 16, 64>}, {transform_indices = @transform_3, window_bounds = array<i64: 1, 8, 64>}]} {
    %c0 = arith.constant 0 : index
    %c0_0 = arith.constant 0 : index
    %c0_1 = arith.constant 0 : index
    %0 = vector.load %arg1[%c0, %c0_0, %c0_1] : memref<1x2x16xbf16, #tpu.memory_space<vmem>>, vector<1x2x16xbf16>
    %1 = vector.shape_cast %0 : vector<1x2x16xbf16> to vector<2x16xbf16>
    %2 = arith.extf %1 : vector<2x16xbf16> to vector<2x16xf32>
    %c0_2 = arith.constant 0 : index
    %c0_3 = arith.constant 0 : index
    %3 = vector.load %arg2[%c0_2, %c0_3] : memref<8x2xf32, #tpu.memory_space<vmem>>, vector<8x2xf32>
    %cst = arith.constant dense<0.000000e+00> : vector<8x16xf32>
    %4 = tpu.matmul %3, %2, %cst {dimension_numbers = #tpu.dot_dimension_numbers<[1], [0], [0], [1], [0, 0, 1, 1], [], []>} : vector<8x2xf32>, vector<2x16xf32>, vector<8x16xf32> -> vector<8x16xf32>
    %c0_4 = arith.constant 0 : index
    %c0_5 = arith.constant 0 : index
    %5 = vector.load %arg3[%c0_4, %c0_5] : memref<16x64xf32, #tpu.memory_space<vmem>>, vector<16x64xf32>
    %cst_6 = arith.constant dense<0.000000e+00> : vector<8x64xf32>
    %6 = tpu.matmul %4, %5, %cst_6 {dimension_numbers = #tpu.dot_dimension_numbers<[1], [0], [0], [1], [0, 0, 1, 1], [], []>} : vector<8x16xf32>, vector<16x64xf32>, vector<8x64xf32> -> vector<8x64xf32>
    %7 = arith.truncf %6 : vector<8x64xf32> to vector<8x64xbf16>
    %c0_7 = arith.constant 0 : index
    %c0_8 = arith.constant 0 : index
    %c0_9 = arith.constant 0 : index
    %8 = vector.load %arg4[%c0_7, %c0_8, %c0_9] : memref<1x8x64xbf16, #tpu.memory_space<vmem>>, vector<1x8x64xbf16>
    %9 = vector.shape_cast %8 : vector<1x8x64xbf16> to vector<8x64xbf16>
    %10 = vector.shape_cast %7 : vector<8x64xbf16> to vector<1x8x64xbf16>
    tpu.vector_store %arg4[%c0_7, %c0_8, %c0_9], %10 {strides = array<i32>} : memref<1x8x64xbf16, #tpu.memory_space<vmem>>, vector<1x8x64xbf16>,
    return
  }
  func.func @transform_0(%arg0: i32) -> (i32, i32, i32) {
    %c0_i32 = arith.constant 0 : i32
    %c0_i32_0 = arith.constant 0 : i32
    %c0_i32_1 = arith.constant 0 : i32
    return %arg0, %c0_i32, %c0_i32_0 : i32, i32, i32
  }
  func.func @transform_1(%arg0: i32) -> (i32, i32) {
    %c0_i32 = arith.constant 0 : i32
    %c0_i32_0 = arith.constant 0 : i32
    %c0_i32_1 = arith.constant 0 : i32
    return %c0_i32, %c0_i32_0 : i32, i32
  }
  func.func @transform_2(%arg0: i32) -> (i32, i32) {
    %c0_i32 = arith.constant 0 : i32
    %c0_i32_0 = arith.constant 0 : i32
    %c0_i32_1 = arith.constant 0 : i32
    return %c0_i32, %c0_i32_0 : i32, i32
  }
  func.func @transform_3(%arg0: i32) -> (i32, i32, i32) {
    %c0_i32 = arith.constant 0 : i32
    %c0_i32_0 = arith.constant 0 : i32
    %c0_i32_1 = arith.constant 0 : i32
    return %arg0, %c0_i32, %c0_i32_0 : i32, i32, i32
  }
}

module attributes {stable_mosaic.version = 11 : i64} {
  func.func @_head_kernel(%arg0: i32, %arg1: memref<128x24xbf16, #tpu.memory_space<vmem>>, %arg2: memref<24x32xbf16, #tpu.memory_space<vmem>>, %arg3: memref<1x32xf32, #tpu.memory_space<vmem>>, %arg4: memref<32x2xbf16, #tpu.memory_space<vmem>>, %arg5: memref<1x2xf32, #tpu.memory_space<vmem>>, %arg6: memref<128x2xf32, #tpu.memory_space<vmem>>) attributes {dimension_semantics = [#tpu.dimension_semantics<parallel>], iteration_bounds = array<i64: 1>, scalar_prefetch = 0 : i64, scratch_operands = 0 : i64, tpu.core_type = #tpu.core_type<tc>, window_params = [{transform_indices = @transform_0, window_bounds = array<i64: 128, 24>}, {pipeline_mode = #tpu.pipeline_mode<synchronous>, transform_indices = @transform_1, window_bounds = array<i64: 24, 32>}, {pipeline_mode = #tpu.pipeline_mode<synchronous>, transform_indices = @transform_2, window_bounds = array<i64: 1, 32>}, {pipeline_mode = #tpu.pipeline_mode<synchronous>, transform_indices = @transform_3, window_bounds = array<i64: 32, 2>}, {pipeline_mode = #tpu.pipeline_mode<synchronous>, transform_indices = @transform_4, window_bounds = array<i64: 1, 2>}, {transform_indices = @transform_5, window_bounds = array<i64: 128, 2>}]} {
    %c0 = arith.constant 0 : index
    %c0_0 = arith.constant 0 : index
    %0 = vector.load %arg1[%c0, %c0_0] : memref<128x24xbf16, #tpu.memory_space<vmem>>, vector<128x24xbf16>
    %c0_1 = arith.constant 0 : index
    %c0_2 = arith.constant 0 : index
    %1 = vector.load %arg2[%c0_1, %c0_2] : memref<24x32xbf16, #tpu.memory_space<vmem>>, vector<24x32xbf16>
    %cst = arith.constant dense<0.000000e+00> : vector<128x32xf32>
    %2 = tpu.matmul %0, %1, %cst {dimension_numbers = #tpu.dot_dimension_numbers<[1], [0], [0], [1], [0, 0, 1, 1], [], []>} : vector<128x24xbf16>, vector<24x32xbf16>, vector<128x32xf32> -> vector<128x32xf32>
    %c0_3 = arith.constant 0 : index
    %c0_4 = arith.constant 0 : index
    %3 = vector.load %arg3[%c0_3, %c0_4] : memref<1x32xf32, #tpu.memory_space<vmem>>, vector<1x32xf32>
    %4 = vector.broadcast %3 : vector<1x32xf32> to vector<128x32xf32>
    %5 = arith.addf %2, %4 : vector<128x32xf32>
    %cst_5 = arith.constant 0.000000e+00 : f32
    %6 = vector.broadcast %cst_5 : f32 to vector<128x32xf32>
    %7 = arith.maximumf %5, %6 : vector<128x32xf32>
    %8 = arith.truncf %7 : vector<128x32xf32> to vector<128x32xbf16>
    %c0_6 = arith.constant 0 : index
    %c0_7 = arith.constant 0 : index
    %9 = vector.load %arg4[%c0_6, %c0_7] : memref<32x2xbf16, #tpu.memory_space<vmem>>, vector<32x2xbf16>
    %cst_8 = arith.constant dense<0.000000e+00> : vector<128x2xf32>
    %10 = tpu.matmul %8, %9, %cst_8 {dimension_numbers = #tpu.dot_dimension_numbers<[1], [0], [0], [1], [0, 0, 1, 1], [], []>} : vector<128x32xbf16>, vector<32x2xbf16>, vector<128x2xf32> -> vector<128x2xf32>
    %c0_9 = arith.constant 0 : index
    %c0_10 = arith.constant 0 : index
    %11 = vector.load %arg5[%c0_9, %c0_10] : memref<1x2xf32, #tpu.memory_space<vmem>>, vector<1x2xf32>
    %12 = vector.broadcast %11 : vector<1x2xf32> to vector<128x2xf32>
    %13 = arith.addf %10, %12 : vector<128x2xf32>
    %14 = arith.negf %13 : vector<128x2xf32>
    %15 = math.exp %14 : vector<128x2xf32>
    %cst_11 = arith.constant 1.000000e+00 : f32
    %16 = vector.broadcast %cst_11 : f32 to vector<128x2xf32>
    %17 = arith.addf %16, %15 : vector<128x2xf32>
    %18 = arith.divf %16, %17 : vector<128x2xf32>
    %c0_12 = arith.constant 0 : index
    %c0_13 = arith.constant 0 : index
    %19 = vector.load %arg6[%c0_12, %c0_13] : memref<128x2xf32, #tpu.memory_space<vmem>>, vector<128x2xf32>
    tpu.vector_store %arg6[%c0_12, %c0_13], %18 {strides = array<i32>} : memref<128x2xf32, #tpu.memory_space<vmem>>, vector<128x2xf32>,
    return
  }
  func.func @transform_0(%arg0: i32) -> (i32, i32) {
    %c0_i32 = arith.constant 0 : i32
    %c0_i32_0 = arith.constant 0 : i32
    return %arg0, %c0_i32 : i32, i32
  }
  func.func @transform_1(%arg0: i32) -> (i32, i32) {
    %c0_i32 = arith.constant 0 : i32
    %c0_i32_0 = arith.constant 0 : i32
    %c0_i32_1 = arith.constant 0 : i32
    return %c0_i32, %c0_i32_0 : i32, i32
  }
  func.func @transform_2(%arg0: i32) -> (i32, i32) {
    %c0_i32 = arith.constant 0 : i32
    %c0_i32_0 = arith.constant 0 : i32
    %c0_i32_1 = arith.constant 0 : i32
    return %c0_i32, %c0_i32_0 : i32, i32
  }
  func.func @transform_3(%arg0: i32) -> (i32, i32) {
    %c0_i32 = arith.constant 0 : i32
    %c0_i32_0 = arith.constant 0 : i32
    %c0_i32_1 = arith.constant 0 : i32
    return %c0_i32, %c0_i32_0 : i32, i32
  }
  func.func @transform_4(%arg0: i32) -> (i32, i32) {
    %c0_i32 = arith.constant 0 : i32
    %c0_i32_0 = arith.constant 0 : i32
    %c0_i32_1 = arith.constant 0 : i32
    return %c0_i32, %c0_i32_0 : i32, i32
  }
  func.func @transform_5(%arg0: i32) -> (i32, i32) {
    %c0_i32 = arith.constant 0 : i32
    %c0_i32_0 = arith.constant 0 : i32
    return %arg0, %c0_i32 : i32, i32
  }
}

module attributes {stable_mosaic.version = 11 : i64} {
  func.func @_resize_to_nchw_kernel(%arg0: i32, %arg1: memref<1x8x8xf32, #tpu.memory_space<vmem>>, %arg2: memref<8x16xf32, #tpu.memory_space<vmem>>, %arg3: memref<16x8xf32, #tpu.memory_space<vmem>>, %arg4: memref<1x1x16x16xf32, #tpu.memory_space<vmem>>) attributes {dimension_semantics = [#tpu.dimension_semantics<parallel>], iteration_bounds = array<i64: 2>, scalar_prefetch = 0 : i64, scratch_operands = 0 : i64, tpu.core_type = #tpu.core_type<tc>, window_params = [{transform_indices = @transform_0, window_bounds = array<i64: 1, 8, 8>}, {pipeline_mode = #tpu.pipeline_mode<synchronous>, transform_indices = @transform_1, window_bounds = array<i64: 8, 16>}, {pipeline_mode = #tpu.pipeline_mode<synchronous>, transform_indices = @transform_2, window_bounds = array<i64: 16, 8>}, {transform_indices = @transform_3, window_bounds = array<i64: 1, 1, 16, 16>}]} {
    %c0 = arith.constant 0 : index
    %c0_0 = arith.constant 0 : index
    %c0_1 = arith.constant 0 : index
    %0 = vector.load %arg1[%c0, %c0_0, %c0_1] : memref<1x8x8xf32, #tpu.memory_space<vmem>>, vector<1x8x8xf32>
    %1 = vector.shape_cast %0 : vector<1x8x8xf32> to vector<8x8xf32>
    %c0_2 = arith.constant 0 : index
    %c0_3 = arith.constant 0 : index
    %2 = vector.load %arg2[%c0_2, %c0_3] : memref<8x16xf32, #tpu.memory_space<vmem>>, vector<8x16xf32>
    %cst = arith.constant dense<0.000000e+00> : vector<8x16xf32>
    %3 = tpu.matmul %1, %2, %cst {dimension_numbers = #tpu.dot_dimension_numbers<[1], [0], [0], [1], [0, 0, 1, 1], [], []>} : vector<8x8xf32>, vector<8x16xf32>, vector<8x16xf32> -> vector<8x16xf32>
    %c0_4 = arith.constant 0 : index
    %c0_5 = arith.constant 0 : index
    %4 = vector.load %arg3[%c0_4, %c0_5] : memref<16x8xf32, #tpu.memory_space<vmem>>, vector<16x8xf32>
    %cst_6 = arith.constant dense<0.000000e+00> : vector<16x16xf32>
    %5 = tpu.matmul %4, %3, %cst_6 {dimension_numbers = #tpu.dot_dimension_numbers<[1], [0], [0], [1], [0, 0, 1, 1], [], []>} : vector<16x8xf32>, vector<8x16xf32>, vector<16x16xf32> -> vector<16x16xf32>
    %c0_7 = arith.constant 0 : index
    %c0_8 = arith.constant 0 : index
    %c0_9 = arith.constant 0 : index
    %c0_10 = arith.constant 0 : index
    %6 = vector.load %arg4[%c0_7, %c0_8, %c0_9, %c0_10] : memref<1x1x16x16xf32, #tpu.memory_space<vmem>>, vector<1x1x16x16xf32>
    %7 = vector.shape_cast %6 : vector<1x1x16x16xf32> to vector<16x16xf32>
    %8 = vector.shape_cast %5 : vector<16x16xf32> to vector<1x1x16x16xf32>
    tpu.vector_store %arg4[%c0_7, %c0_8, %c0_9, %c0_10], %8 {strides = array<i32>} : memref<1x1x16x16xf32, #tpu.memory_space<vmem>>, vector<1x1x16x16xf32>,
    return
  }
  func.func @transform_0(%arg0: i32) -> (i32, i32, i32) {
    %c0_i32 = arith.constant 0 : i32
    %c0_i32_0 = arith.constant 0 : i32
    %c0_i32_1 = arith.constant 0 : i32
    return %arg0, %c0_i32, %c0_i32_0 : i32, i32, i32
  }
  func.func @transform_1(%arg0: i32) -> (i32, i32) {
    %c0_i32 = arith.constant 0 : i32
    %c0_i32_0 = arith.constant 0 : i32
    %c0_i32_1 = arith.constant 0 : i32
    return %c0_i32, %c0_i32_0 : i32, i32
  }
  func.func @transform_2(%arg0: i32) -> (i32, i32) {
    %c0_i32 = arith.constant 0 : i32
    %c0_i32_0 = arith.constant 0 : i32
    %c0_i32_1 = arith.constant 0 : i32
    return %c0_i32, %c0_i32_0 : i32, i32
  }
  func.func @transform_3(%arg0: i32) -> (i32, i32, i32, i32) {
    %c0_i32 = arith.constant 0 : i32
    %c0_i32_0 = arith.constant 0 : i32
    %c0_i32_1 = arith.constant 0 : i32
    %c0_i32_2 = arith.constant 0 : i32
    return %arg0, %c0_i32, %c0_i32_0, %c0_i32_1 : i32, i32, i32, i32
  }
}

</mosaic_0001>

<bundles_post_ra>
// kernel: db_cism_even_odd_lines_forward.18
= control target key start
LH: loop header
LB: loop body
LE: loop exit
PB: predicated region body
PF: predicated region fallthrough
CT: control target
= control target key end

     0   :  { %vm52_vm0 = vcmask 261120   ;;  %vm128_vm1 = vcmask 519168   ;;  %s215_s1 = inlined_call_operand.vmem [shape: bf16[32,64], index: 1, kind: input, shape index: {}]   ;;  %s216_s0 = inlined_call_operand.vmem [shape: bf16[32,32], index: 0, kind: input, shape index: {}]   ;;  %s217_s2 = inlined_call_operand.vmem [shape: f32[1,64], index: 2, kind: input, shape index: {}]   ;;  %s218_s3 = inlined_call_operand.vmem [shape: bf16[32,64], index: 3, kind: output, shape index: {}]  }
   0x1   :  { %v164_v0 = vld [vmem:[%s215_s1] sm:$0xff]   ;;  %v165_v1 = vld [vmem:[%s215_s1 + $0x8] sm:$0xff]  }
   0x2   :  { %156 = vmatprep.subr.bf16.mxu0 %v164_v0  ;;  %v166_v2 = vld [vmem:[%s216_s0] sm:$0xff]   ;;  %v167_v3 = vld [vmem:[%s216_s0 + $0x8] sm:$0xff]  }
   0x3   :  { %157 = vmatpush3.bf16.msra.mxu0 %v164_v0  ;;  %160 = vmatprep.mubr.msk.bf16.mxu0 %vm52_vm0, %v166_v2  ;;  %v137_v4 = vld [vmem:[%s217_s2] ss:$0 sm:$0xff] }
   0x4   :  { %158 = vmatprep.subr.bf16.mxu0 %v165_v1 }
   0x7   :  { %159 = vmatpush3.bf16.msra.mxu0 %v165_v1 }
   0xa   :  { %161 = vmatmul.mubr.msk.bf16.vlgmr.msra.gmra.mrb[0].mxu0 %vm52_vm0, %v167_v3 }
  0xdd   :  { %v162_v5 = vpop.f32.mrb[0].mxu0 }
  0xde   :  { %v102_v6 = vadd.f32 %v162_v5, %v137_v4  ;;  %v93_v7 = vpop.f32.mrb[1].mxu0 }
  0xdf   :  { %v94_v8 = vadd.f32 %v137_v4, %v93_v7  ;;  %v163_v9 = vpop.f32.mrb[2].mxu0 }
  0xe0   :  { %v110_v10 = vmax.f32 %v102_v6, 0.0  ;;  %v105_v11 = vadd.f32 %v163_v9, %v137_v4  ;;  %v96_v12 = vpop.f32.mrb[3].mxu0 }
  0xe1   :  { %v108_v13 = vmax.f32 %v94_v8, 0.0  ;;  %v97_v14 = vadd.f32 %v137_v4, %v96_v12 }
  0xe2   :  { %v150_v15 = vpack.c.bf16 %v110_v10, %v110_v10  ;;  %v111_v16 = vmax.f32 %v105_v11, 0.0 }
  0xe3   :  { %v148_v17 = vpack.c.bf16 %v108_v13, %v108_v13  ;;  %v109_v18 = vmax.f32 %v97_v14, 0.0 }
  0xe4   :  { %131 = vst.msk [vmem:[%s218_s3 + $0x8] sm:$0xf] %vm128_vm1, %v150_v15  ;;  %v151_v19 = vpack.c.bf16 %v111_v16, %v111_v16 }
  0xe5   :  { %129 = vst.msk [vmem:[%s218_s3] sm:$0xf] %vm128_vm1, %v148_v17  ;;  %v149_v20 = vpack.c.bf16 %v109_v18, %v109_v18 }
  0xe6   :  { %132 = vst.msk [vmem:[%s218_s3 + $0xc] sm:$0xf] %vm128_vm1, %v151_v19 }
  0xe7   :  { %130 = vst.msk [vmem:[%s218_s3 + $0x4] sm:$0xf] %vm128_vm1, %v149_v20 }

// kernel: db_cism_even_odd_lines_forward.17
= control target key start
LH: loop header
LB: loop body
LE: loop exit
PB: predicated region body
PF: predicated region fallthrough
CT: control target
= control target key end

     0   :  { %vm86_vm0 = vcmask 130048   ;;  %vm288_vm1 = vcmask 257024   ;;  %s519_s1 = inlined_call_operand.vmem [shape: bf16[16,32], index: 1, kind: input, shape index: {}]   ;;  %s520_s0 = inlined_call_operand.vmem [shape: bf16[128,16], index: 0, kind: input, shape index: {}]   ;;  %s521_s2 = inlined_call_operand.vmem [shape: f32[1,32], index: 2, kind: input, shape index: {}]   ;;  %s522_s3 = inlined_call_operand.vmem [shape: bf16[128,32], index: 3, kind: output, shape index: {}]  }
   0x1   :  { %v388_v0 = vld [vmem:[%s519_s1] sm:$0xff]   ;;  %v391_v3 = vld [vmem:[%s520_s0 + $0x8] sm:$0xff]   ;;  %v393_v5 = vld [vmem:[%s520_s0 + $0x10] sm:$0xff]  }
   0x2   :  { %v389_v1 = vld [vmem:[%s520_s0] sm:$0xff]   ;;  %368 = vmatprep.subr.bf16.mxu0 %v388_v0  ;;  %386 = vmatprep.subr.bf16.mxu1 %v388_v0  ;;  %v392_v4 = vld [vmem:[%s520_s0 + $0x28] sm:$0xff]   ;;  %v394_v6 = vld [vmem:[%s520_s0 + $0x30] sm:$0xff]  }
   0x3   :  { %v390_v2 = vld [vmem:[%s520_s0 + $0x20] sm:$0xff]   ;;  %369 = vmatpush3.bf16.msra.mxu0 %v388_v0  ;;  %387 = vmatpush3.bf16.msra.mxu1 %v388_v0  ;;  %v395_v7 = vld [vmem:[%s520_s0 + $0x18] sm:$0xff]  }
   0x4   :  { %370 = vmatprep.mubr.msk.bf16.mxu0 %vm86_vm0, %v389_v1  ;;  %378 = vmatprep.mubr.msk.bf16.mxu1 %vm86_vm0, %v390_v2  ;;  %v396_v8 = vld [vmem:[%s520_s0 + $0x38] sm:$0xff]   ;;  %v309_v9 = vld [vmem:[%s521_s2] ss:$0 sm:$0xff] }
   0x6   :  { %371 = vmatmul.mubr.msk.bf16.vlgmr.msra.gmra.mrb[0].mxu0 %vm86_vm0, %v391_v3  ;;  %379 = vmatmul.mubr.msk.bf16.vlgmr.msra.gmra.mrb[0].mxu1 %vm86_vm0, %v392_v4 }
   0x7   :  { %374 = vmatprep.mubr.msk.bf16.mxu0 %vm86_vm0, %v393_v5  ;;  %382 = vmatprep.mubr.msk.bf16.mxu1 %vm86_vm0, %v394_v6 }
   0xe   :  { %375 = vmatmul.mubr.msk.bf16.gmra.mrb[4].mxu0 %vm86_vm0, %v395_v7  ;;  %383 = vmatmul.mubr.msk.bf16.gmra.mrb[4].mxu1 %vm86_vm0, %v396_v8 }
  0xd9   :  { %v372_v10 = vpop.f32.mrb[0].mxu0  ;;  %v380_v11 = vpop.f32.mrb[0].mxu1 }
  0xda   :  { %v154_v12 = vadd.f32 %v372_v10, %v309_v9  ;;  %v186_v13 = vadd.f32 %v380_v11, %v309_v9  ;;  %v145_v14 = vpop.f32.mrb[1].mxu0  ;;  %v177_v15 = vpop.f32.mrb[1].mxu1 }
  0xdb   :  { %v146_v16 = vadd.f32 %v309_v9, %v145_v14  ;;  %v178_v17 = vadd.f32 %v309_v9, %v177_v15  ;;  %v373_v18 = vpop.f32.mrb[2].mxu0  ;;  %v381_v19 = vpop.f32.mrb[2].mxu1 }
  0xdc   :  { %v210_v20 = vmax.f32 %v154_v12, 0.0  ;;  %v218_v21 = vmax.f32 %v186_v13, 0.0  ;;  %v157_v22 = vadd.f32 %v373_v18, %v309_v9  ;;  %v189_v23 = vadd.f32 %v381_v19, %v309_v9  ;;  %v148_v24 = vpop.f32.mrb[3].mxu0  ;;  %v180_v25 = vpop.f32.mrb[3].mxu1 }
  0xdd   :  { %v208_v26 = vmax.f32 %v146_v16, 0.0  ;;  %v216_v27 = vmax.f32 %v178_v17, 0.0  ;;  %v149_v28 = vadd.f32 %v309_v9, %v148_v24  ;;  %v181_v29 = vadd.f32 %v309_v9, %v180_v25 }
  0xde   :  { %v345_v30 = vpack.c.bf16 %v210_v20, %v210_v20  ;;  %v353_v31 = vpack.c.bf16 %v218_v21, %v218_v21  ;;  %v211_v32 = vmax.f32 %v157_v22, 0.0  ;;  %v219_v33 = vmax.f32 %v189_v23, 0.0 }
  0xdf   :  { %v343_v34 = vpack.c.bf16 %v208_v26, %v208_v26  ;;  %v351_v35 = vpack.c.bf16 %v216_v27, %v216_v27  ;;  %v209_v36 = vmax.f32 %v149_v28, 0.0  ;;  %v217_v37 = vmax.f32 %v181_v29, 0.0 }
  0xe0   :  { %291 = vst.msk [vmem:[%s522_s3 + $0x8] sm:$0xf] %vm288_vm1, %v345_v30  ;;  %299 = vst.msk [vmem:[%s522_s3 + $0x28] sm:$0xf] %vm288_vm1, %v353_v31  ;;  %v346_v38 = vpack.c.bf16 %v211_v32, %v211_v32  ;;  %v354_v39 = vpack.c.bf16 %v219_v33, %v219_v33 }
  0xe1   :  { %289 = vst.msk [vmem:[%s522_s3] sm:$0xf] %vm288_vm1, %v343_v34  ;;  %297 = vst.msk [vmem:[%s522_s3 + $0x20] sm:$0xf] %vm288_vm1, %v351_v35  ;;  %v344_v40 = vpack.c.bf16 %v209_v36, %v209_v36  ;;  %v352_v41 = vpack.c.bf16 %v217_v37, %v217_v37  ;;  %v376_v42 = vpop.f32.mrb[4].mxu0  ;;  %v384_v43 = vpop.f32.mrb[4].mxu1 }
  0xe2   :  { %292 = vst.msk [vmem:[%s522_s3 + $0xc] sm:$0xf] %vm288_vm1, %v346_v38  ;;  %300 = vst.msk [vmem:[%s522_s3 + $0x2c] sm:$0xf] %vm288_vm1, %v354_v39  ;;  %v170_v44 = vadd.f32 %v376_v42, %v309_v9  ;;  %v202_v45 = vadd.f32 %v384_v43, %v309_v9  ;;  %v161_v46 = vpop.f32.mrb[5].mxu0  ;;  %v193_v47 = vpop.f32.mrb[5].mxu1 }
  0xe3   :  { %290 = vst.msk [vmem:[%s522_s3 + $0x4] sm:$0xf] %vm288_vm1, %v344_v40  ;;  %298 = vst.msk [vmem:[%s522_s3 + $0x24] sm:$0xf] %vm288_vm1, %v352_v41  ;;  %v162_v48 = vadd.f32 %v309_v9, %v161_v46  ;;  %v194_v49 = vadd.f32 %v309_v9, %v193_v47  ;;  %v377_v50 = vpop.f32.mrb[6].mxu0  ;;  %v385_v51 = vpop.f32.mrb[6].mxu1 }
  0xe4   :  { %v214_v52 = vmax.f32 %v170_v44, 0.0  ;;  %v222_v53 = vmax.f32 %v202_v45, 0.0  ;;  %v173_v54 = vadd.f32 %v377_v50, %v309_v9  ;;  %v205_v55 = vadd.f32 %v385_v51, %v309_v9  ;;  %v164_v56 = vpop.f32.mrb[7].mxu0  ;;  %v196_v57 = vpop.f32.mrb[7].mxu1 }
  0xe5   :  { %v212_v58 = vmax.f32 %v162_v48, 0.0  ;;  %v220_v59 = vmax.f32 %v194_v49, 0.0  ;;  %v165_v60 = vadd.f32 %v309_v9, %v164_v56  ;;  %v197_v61 = vadd.f32 %v309_v9, %v196_v57 }
  0xe6   :  { %v349_v62 = vpack.c.bf16 %v214_v52, %v214_v52  ;;  %v357_v63 = vpack.c.bf16 %v222_v53, %v222_v53  ;;  %v215_v0 = vmax.f32 %v173_v54, 0.0  ;;  %v223_v1 = vmax.f32 %v205_v55, 0.0 }
  0xe7   :  { %v347_v2 = vpack.c.bf16 %v212_v58, %v212_v58  ;;  %v355_v3 = vpack.c.bf16 %v220_v59, %v220_v59  ;;  %v213_v4 = vmax.f32 %v165_v60, 0.0  ;;  %v221_v5 = vmax.f32 %v197_v61, 0.0 }
  0xe8   :  { %295 = vst.msk [vmem:[%s522_s3 + $0x18] sm:$0xf] %vm288_vm1, %v349_v62  ;;  %303 = vst.msk [vmem:[%s522_s3 + $0x38] sm:$0xf] %vm288_vm1, %v357_v63  ;;  %v350_v6 = vpack.c.bf16 %v215_v0, %v215_v0  ;;  %v358_v7 = vpack.c.bf16 %v223_v1, %v223_v1 }
  0xe9   :  { %293 = vst.msk [vmem:[%s522_s3 + $0x10] sm:$0xf] %vm288_vm1, %v347_v2  ;;  %301 = vst.msk [vmem:[%s522_s3 + $0x30] sm:$0xf] %vm288_vm1, %v355_v3  ;;  %v348_v8 = vpack.c.bf16 %v213_v4, %v213_v4  ;;  %v356_v9 = vpack.c.bf16 %v221_v5, %v221_v5 }
  0xea   :  { %296 = vst.msk [vmem:[%s522_s3 + $0x1c] sm:$0xf] %vm288_vm1, %v350_v6  ;;  %304 = vst.msk [vmem:[%s522_s3 + $0x3c] sm:$0xf] %vm288_vm1, %v358_v7 }
  0xeb   :  { %294 = vst.msk [vmem:[%s522_s3 + $0x14] sm:$0xf] %vm288_vm1, %v348_v8  ;;  %302 = vst.msk [vmem:[%s522_s3 + $0x34] sm:$0xf] %vm288_vm1, %v356_v9 }

// kernel: db_cism_even_odd_lines_forward.16
= control target key start
LH: loop header
LB: loop body
LE: loop exit
PB: predicated region body
PF: predicated region fallthrough
CT: control target
= control target key end

     0   :  { %vm344_vm0 = vcmask 1041408   ;;  %vm247_vm1 = vcmask 31744   ;;  %vm957_vm2 = vcmask 125952   ;;  %s1830_s1 = inlined_call_operand.vmem [shape: bf16[4,16], index: 1, kind: input, shape index: {}]   ;;  %s1831_s0 = inlined_call_operand.vmem [shape: bf16[512,4], index: 0, kind: input, shape index: {}]   ;;  %s1832_s2 = inlined_call_operand.vmem [shape: f32[1,16], index: 2, kind: input, shape index: {}]   ;;  %s1833_s3 = inlined_call_operand.vmem [shape: bf16[512,16], index: 3, kind: output, shape index: {}]  }
   0x1   :  { %v79_v0 = vld [vmem:[%s1830_s1] sm:$0x3]  ;;  %v1324_v4 = vld [vmem:[%s1831_s0 + $0x8] sm:$0xff]   ;;  %v1326_v6 = vld [vmem:[%s1831_s0 + $0x10] sm:$0xff]  }
   0x2   :  { %1320 = vmatprep.subr.msk.bf16.mxu0 %vm344_vm0, %v79_v0  ;;  %1321 = vmatprep.subr.msk.bf16.mxu1 %vm344_vm0, %v79_v0  ;;  %v346_v1 = vsel %vm344_vm0, %v79_v0, 0  ;;  %v1322_v2 = vld [vmem:[%s1831_s0] sm:$0xff]   ;;  %v1325_v5 = vld [vmem:[%s1831_s0 + $0x88] sm:$0xff]   ;;  %v1327_v7 = vld [vmem:[%s1831_s0 + $0x90] sm:$0xff]  }
   0x3   :  { %1253 = vmatpush3.bf16.msra.mxu0 %v346_v1  ;;  %1319 = vmatpush3.bf16.msra.mxu1 %v346_v1  ;;  %v1323_v3 = vld [vmem:[%s1831_s0 + $0x80] sm:$0xff]   ;;  %v1328_v8 = vld [vmem:[%s1831_s0 + $0x18] sm:$0xff]   ;;  %v1332_v12 = vld [vmem:[%s1831_s0 + $0x28] sm:$0xff]  }
   0x4   :  { %1254 = vmatprep.mubr.msk.bf16.mxu0 %vm247_vm1, %v1322_v2  ;;  %1286 = vmatprep.mubr.msk.bf16.mxu1 %vm247_vm1, %v1323_v3  ;;  %v1329_v9 = vld [vmem:[%s1831_s0 + $0x98] sm:$0xff]   ;;  %v1330_v10 = vld [vmem:[%s1831_s0 + $0x20] sm:$0xff]   ;;  %v1333_v13 = vld [vmem:[%s1831_s0 + $0xa8] sm:$0xff]  }
   0x5   :  { %v1331_v11 = vld [vmem:[%s1831_s0 + $0xa0] sm:$0xff]   ;;  %v1334_v14 = vld [vmem:[%s1831_s0 + $0x30] sm:$0xff]   ;;  %v1336_v16 = vld [vmem:[%s1831_s0 + $0x38] sm:$0xff]  }
   0x6   :  { %1255 = vmatmul.mubr.msk.bf16.vlgmr.msra.gmra.mrb[0].mxu0 %vm247_vm1, %v1324_v4  ;;  %1287 = vmatmul.mubr.msk.bf16.vlgmr.msra.gmra.mrb[0].mxu1 %vm247_vm1, %v1325_v5  ;;  %v1335_v15 = vld [vmem:[%s1831_s0 + $0xb0] sm:$0xff]   ;;  %v1337_v17 = vld [vmem:[%s1831_s0 + $0xb8] sm:$0xff]   ;;  %v1338_v18 = vld [vmem:[%s1831_s0 + $0x40] sm:$0xff]  }
   0x7   :  { %1258 = vmatprep.mubr.msk.bf16.mxu0 %vm247_vm1, %v1326_v6  ;;  %1290 = vmatprep.mubr.msk.bf16.mxu1 %vm247_vm1, %v1327_v7  ;;  %v1339_v19 = vld [vmem:[%s1831_s0 + $0xc0] sm:$0xff]   ;;  %v1340_v20 = vld [vmem:[%s1831_s0 + $0x48] sm:$0xff]   ;;  %v1342_v22 = vld [vmem:[%s1831_s0 + $0x50] sm:$0xff]  }
   0x8   :  { %v1341_v21 = vld [vmem:[%s1831_s0 + $0xc8] sm:$0xff]   ;;  %v1343_v23 = vld [vmem:[%s1831_s0 + $0xd0] sm:$0xff]   ;;  %v1344_v24 = vld [vmem:[%s1831_s0 + $0x58] sm:$0xff]  }
   0x9   :  { %v1345_v25 = vld [vmem:[%s1831_s0 + $0xd8] sm:$0xff]   ;;  %v1346_v26 = vld [vmem:[%s1831_s0 + $0x60] sm:$0xff]   ;;  %v1348_v28 = vld [vmem:[%s1831_s0 + $0x68] sm:$0xff]  }
   0xa   :  { %v1347_v27 = vld [vmem:[%s1831_s0 + $0xe0] sm:$0xff]   ;;  %v1349_v29 = vld [vmem:[%s1831_s0 + $0xe8] sm:$0xff]   ;;  %v1350_v30 = vld [vmem:[%s1831_s0 + $0x70] sm:$0xff]  }
   0xb   :  { %v1351_v31 = vld [vmem:[%s1831_s0 + $0xf0] sm:$0xff]   ;;  %v1352_v32 = vld [vmem:[%s1831_s0 + $0x78] sm:$0xff]   ;;  %v1508_v34 = vld [vmem:[%s1832_s2] ss:$0 sm:$0xff] }
   0xc   :  { %v1353_v33 = vld [vmem:[%s1831_s0 + $0xf8] sm:$0xff]  }
   0xe   :  { %1259 = vmatmul.mubr.msk.bf16.gmra.mrb[4].mxu0 %vm247_vm1, %v1328_v8  ;;  %1291 = vmatmul.mubr.msk.bf16.gmra.mrb[4].mxu1 %vm247_vm1, %v1329_v9 }
   0xf   :  { %1262 = vmatprep.mubr.msk.bf16.mxu0 %vm247_vm1, %v1330_v10  ;;  %1294 = vmatprep.mubr.msk.bf16.mxu1 %vm247_vm1, %v1331_v11 }
  0x16   :  { %1263 = vmatmul.mubr.msk.bf16.gmra.mrb[8].mxu0 %vm247_vm1, %v1332_v12  ;;  %1295 = vmatmul.mubr.msk.bf16.gmra.mrb[8].mxu1 %vm247_vm1, %v1333_v13 }
  0x17   :  { %1266 = vmatprep.mubr.msk.bf16.mxu0 %vm247_vm1, %v1334_v14  ;;  %1298 = vmatprep.mubr.msk.bf16.mxu1 %vm247_vm1, %v1335_v15 }
  0x1e   :  { %1267 = vmatmul.mubr.msk.bf16.gmra.mrb[12].mxu0 %vm247_vm1, %v1336_v16  ;;  %1299 = vmatmul.mubr.msk.bf16.gmra.mrb[12].mxu1 %vm247_vm1, %v1337_v17 }
  0x1f   :  { %1270 = vmatprep.mubr.msk.bf16.mxu0 %vm247_vm1, %v1338_v18  ;;  %1302 = vmatprep.mubr.msk.bf16.mxu1 %vm247_vm1, %v1339_v19 }
  0x26   :  { %1271 = vmatmul.mubr.msk.bf16.gmra.mrb[16].mxu0 %vm247_vm1, %v1340_v20  ;;  %1303 = vmatmul.mubr.msk.bf16.gmra.mrb[16].mxu1 %vm247_vm1, %v1341_v21 }
  0x27   :  { %1274 = vmatprep.mubr.msk.bf16.mxu0 %vm247_vm1, %v1342_v22  ;;  %1306 = vmatprep.mubr.msk.bf16.mxu1 %vm247_vm1, %v1343_v23 }
  0x2e   :  { %1275 = vmatmul.mubr.msk.bf16.gmra.mrb[20].mxu0 %vm247_vm1, %v1344_v24  ;;  %1307 = vmatmul.mubr.msk.bf16.gmra.mrb[20].mxu1 %vm247_vm1, %v1345_v25 }
  0x2f   :  { %1278 = vmatprep.mubr.msk.bf16.mxu0 %vm247_vm1, %v1346_v26  ;;  %1310 = vmatprep.mubr.msk.bf16.mxu1 %vm247_vm1, %v1347_v27 }
  0x36   :  { %1279 = vmatmul.mubr.msk.bf16.gmra.mrb[24].mxu0 %vm247_vm1, %v1348_v28  ;;  %1311 = vmatmul.mubr.msk.bf16.gmra.mrb[24].mxu1 %vm247_vm1, %v1349_v29 }
  0x37   :  { %1282 = vmatprep.mubr.msk.bf16.mxu0 %vm247_vm1, %v1350_v30  ;;  %1314 = vmatprep.mubr.msk.bf16.mxu1 %vm247_vm1, %v1351_v31 }
  0x3e   :  { %1283 = vmatmul.mubr.msk.bf16.gmra.mrb[28].mxu0 %vm247_vm1, %v1352_v32  ;;  %1315 = vmatmul.mubr.msk.bf16.gmra.mrb[28].mxu1 %vm247_vm1, %v1353_v33 }
  0xd9   :  { %v1256_v35 = vpop.f32.mrb[0].mxu0  ;;  %v1288_v37 = vpop.f32.mrb[0].mxu1 }
  0xda   :  { %v391_v36 = vadd.f32 %v1256_v35, %v1508_v34  ;;  %v382_v38 = vpop.f32.mrb[1].mxu0  ;;  %v519_v39 = vadd.f32 %v1288_v37, %v1508_v34  ;;  %v510_v41 = vpop.f32.mrb[1].mxu1 }
  0xdb   :  { %v383_v40 = vadd.f32 %v1508_v34, %v382_v38  ;;  %v1257_v42 = vpop.f32.mrb[2].mxu0  ;;  %v511_v44 = vadd.f32 %v1508_v34, %v510_v41  ;;  %v1289_v46 = vpop.f32.mrb[2].mxu1 }
  0xdc   :  { %v639_v43 = vmax.f32 %v391_v36, 0.0  ;;  %v394_v45 = vadd.f32 %v1257_v42, %v1508_v34  ;;  %v385_v47 = vpop.f32.mrb[3].mxu0  ;;  %v671_v48 = vmax.f32 %v519_v39, 0.0  ;;  %v522_v50 = vadd.f32 %v1289_v46, %v1508_v34  ;;  %v513_v52 = vpop.f32.mrb[3].mxu1 }
  0xdd   :  { %v637_v49 = vmax.f32 %v383_v40, 0.0  ;;  %v386_v51 = vadd.f32 %v1508_v34, %v385_v47  ;;  %v669_v54 = vmax.f32 %v511_v44, 0.0  ;;  %v514_v56 = vadd.f32 %v1508_v34, %v513_v52 }
  0xde   :  { %v1157_v53 = vpack.c.bf16 %v639_v43, %v639_v43  ;;  %v640_v55 = vmax.f32 %v394_v45, 0.0  ;;  %v1189_v57 = vpack.c.bf16 %v671_v48, %v671_v48  ;;  %v672_v59 = vmax.f32 %v522_v50, 0.0 }
  0xdf   :  { %v1155_v58 = vpack.c.bf16 %v637_v49, %v637_v49  ;;  %v638_v60 = vmax.f32 %v386_v51, 0.0  ;;  %v1187_v61 = vpack.c.bf16 %v669_v54, %v669_v54  ;;  %v670_v63 = vmax.f32 %v514_v56, 0.0 }
  0xe0   :  { %960 = vst.msk [vmem:[%s1833_s3 + $0x8] sm:$0xf] %vm957_vm2, %v1157_v53  ;;  %v1158_v62 = vpack.c.bf16 %v640_v55, %v640_v55  ;;  %992 = vst.msk [vmem:[%s1833_s3 + $0x88] sm:$0xf] %vm957_vm2, %v1189_v57  ;;  %v1190_v0 = vpack.c.bf16 %v672_v59, %v672_v59 }
  0xe1   :  { %958 = vst.msk [vmem:[%s1833_s3] sm:$0xf] %vm957_vm2, %v1155_v58  ;;  %v1156_v1 = vpack.c.bf16 %v638_v60, %v638_v60  ;;  %v1260_v2 = vpop.f32.mrb[4].mxu0  ;;  %990 = vst.msk [vmem:[%s1833_s3 + $0x80] sm:$0xf] %vm957_vm2, %v1187_v61  ;;  %v1188_v3 = vpack.c.bf16 %v670_v63, %v670_v63  ;;  %v1292_v5 = vpop.f32.mrb[4].mxu1 }
  0xe2   :  { %961 = vst.msk [vmem:[%s1833_s3 + $0xc] sm:$0xf] %vm957_vm2, %v1158_v62  ;;  %v407_v4 = vadd.f32 %v1260_v2, %v1508_v34  ;;  %v398_v6 = vpop.f32.mrb[5].mxu0  ;;  %993 = vst.msk [vmem:[%s1833_s3 + $0x8c] sm:$0xf] %vm957_vm2, %v1190_v0  ;;  %v535_v7 = vadd.f32 %v1292_v5, %v1508_v34  ;;  %v526_v9 = vpop.f32.mrb[5].mxu1 }
  0xe3   :  { %959 = vst.msk [vmem:[%s1833_s3 + $0x4] sm:$0xf] %vm957_vm2, %v1156_v1  ;;  %v399_v8 = vadd.f32 %v1508_v34, %v398_v6  ;;  %v1261_v10 = vpop.f32.mrb[6].mxu0  ;;  %991 = vst.msk [vmem:[%s1833_s3 + $0x84] sm:$0xf] %vm957_vm2, %v1188_v3  ;;  %v527_v12 = vadd.f32 %v1508_v34, %v526_v9  ;;  %v1293_v14 = vpop.f32.mrb[6].mxu1 }
  0xe4   :  { %v643_v11 = vmax.f32 %v407_v4, 0.0  ;;  %v410_v13 = vadd.f32 %v1261_v10, %v1508_v34  ;;  %v401_v15 = vpop.f32.mrb[7].mxu0  ;;  %v675_v16 = vmax.f32 %v535_v7, 0.0  ;;  %v538_v18 = vadd.f32 %v1293_v14, %v1508_v34  ;;  %v529_v20 = vpop.f32.mrb[7].mxu1 }
  0xe5   :  { %v641_v17 = vmax.f32 %v399_v8, 0.0  ;;  %v402_v19 = vadd.f32 %v1508_v34, %v401_v15  ;;  %v673_v22 = vmax.f32 %v527_v12, 0.0  ;;  %v530_v24 = vadd.f32 %v1508_v34, %v529_v20 }
  0xe6   :  { %v1161_v21 = vpack.c.bf16 %v643_v11, %v643_v11  ;;  %v644_v23 = vmax.f32 %v410_v13, 0.0  ;;  %v1193_v25 = vpack.c.bf16 %v675_v16, %v675_v16  ;;  %v676_v27 = vmax.f32 %v538_v18, 0.0 }
  0xe7   :  { %v1159_v26 = vpack.c.bf16 %v641_v17, %v641_v17  ;;  %v642_v28 = vmax.f32 %v402_v19, 0.0  ;;  %v1191_v29 = vpack.c.bf16 %v673_v22, %v673_v22  ;;  %v674_v31 = vmax.f32 %v530_v24, 0.0 }
  0xe8   :  { %964 = vst.msk [vmem:[%s1833_s3 + $0x18] sm:$0xf] %vm957_vm2, %v1161_v21  ;;  %v1162_v30 = vpack.c.bf16 %v644_v23, %v644_v23  ;;  %996 = vst.msk [vmem:[%s1833_s3 + $0x98] sm:$0xf] %vm957_vm2, %v1193_v25  ;;  %v1194_v32 = vpack.c.bf16 %v676_v27, %v676_v27 }
  0xe9   :  { %962 = vst.msk [vmem:[%s1833_s3 + $0x10] sm:$0xf] %vm957_vm2, %v1159_v26  ;;  %v1160_v33 = vpack.c.bf16 %v642_v28, %v642_v28  ;;  %v1264_v35 = vpop.f32.mrb[8].mxu0  ;;  %994 = vst.msk [vmem:[%s1833_s3 + $0x90] sm:$0xf] %vm957_vm2, %v1191_v29  ;;  %v1192_v36 = vpack.c.bf16 %v674_v31, %v674_v31  ;;  %v1296_v38 = vpop.f32.mrb[8].mxu1 }
  0xea   :  { %965 = vst.msk [vmem:[%s1833_s3 + $0x1c] sm:$0xf] %vm957_vm2, %v1162_v30  ;;  %v423_v37 = vadd.f32 %v1264_v35, %v1508_v34  ;;  %v414_v39 = vpop.f32.mrb[9].mxu0  ;;  %997 = vst.msk [vmem:[%s1833_s3 + $0x9c] sm:$0xf] %vm957_vm2, %v1194_v32  ;;  %v551_v40 = vadd.f32 %v1296_v38, %v1508_v34  ;;  %v542_v42 = vpop.f32.mrb[9].mxu1 }
  0xeb   :  { %963 = vst.msk [vmem:[%s1833_s3 + $0x14] sm:$0xf] %vm957_vm2, %v1160_v33  ;;  %v415_v41 = vadd.f32 %v1508_v34, %v414_v39  ;;  %v1265_v43 = vpop.f32.mrb[10].mxu0  ;;  %995 = vst.msk [vmem:[%s1833_s3 + $0x94] sm:$0xf] %vm957_vm2, %v1192_v36  ;;  %v543_v45 = vadd.f32 %v1508_v34, %v542_v42  ;;  %v1297_v47 = vpop.f32.mrb[10].mxu1 }
  0xec   :  { %v647_v44 = vmax.f32 %v423_v37, 0.0  ;;  %v426_v46 = vadd.f32 %v1265_v43, %v1508_v34  ;;  %v417_v48 = vpop.f32.mrb[11].mxu0  ;;  %v679_v49 = vmax.f32 %v551_v40, 0.0  ;;  %v554_v51 = vadd.f32 %v1297_v47, %v1508_v34  ;;  %v545_v53 = vpop.f32.mrb[11].mxu1 }
  0xed   :  { %v645_v50 = vmax.f32 %v415_v41, 0.0  ;;  %v418_v52 = vadd.f32 %v1508_v34, %v417_v48  ;;  %v677_v55 = vmax.f32 %v543_v45, 0.0  ;;  %v546_v57 = vadd.f32 %v1508_v34, %v545_v53 }
  0xee   :  { %v1165_v54 = vpack.c.bf16 %v647_v44, %v647_v44  ;;  %v648_v56 = vmax.f32 %v426_v46, 0.0  ;;  %v1197_v58 = vpack.c.bf16 %v679_v49, %v679_v49  ;;  %v680_v60 = vmax.f32 %v554_v51, 0.0 }
  0xef   :  { %v1163_v59 = vpack.c.bf16 %v645_v50, %v645_v50  ;;  %v646_v61 = vmax.f32 %v418_v52, 0.0  ;;  %v1195_v62 = vpack.c.bf16 %v677_v55, %v677_v55  ;;  %v678_v0 = vmax.f32 %v546_v57, 0.0 }
  0xf0   :  { %968 = vst.msk [vmem:[%s1833_s3 + $0x28] sm:$0xf] %vm957_vm2, %v1165_v54  ;;  %v1166_v63 = vpack.c.bf16 %v648_v56, %v648_v56  ;;  %1000 = vst.msk [vmem:[%s1833_s3 + $0xa8] sm:$0xf] %vm957_vm2, %v1197_v58  ;;  %v1198_v1 = vpack.c.bf16 %v680_v60, %v680_v60 }
  0xf1   :  { %966 = vst.msk [vmem:[%s1833_s3 + $0x20] sm:$0xf] %vm957_vm2, %v1163_v59  ;;  %v1164_v2 = vpack.c.bf16 %v646_v61, %v646_v61  ;;  %v1268_v3 = vpop.f32.mrb[12].mxu0  ;;  %998 = vst.msk [vmem:[%s1833_s3 + $0xa0] sm:$0xf] %vm957_vm2, %v1195_v62  ;;  %v1196_v4 = vpack.c.bf16 %v678_v0, %v678_v0  ;;  %v1300_v6 = vpop.f32.mrb[12].mxu1 }
  0xf2   :  { %969 = vst.msk [vmem:[%s1833_s3 + $0x2c] sm:$0xf] %vm957_vm2, %v1166_v63  ;;  %v439_v5 = vadd.f32 %v1268_v3, %v1508_v34  ;;  %v430_v7 = vpop.f32.mrb[13].mxu0  ;;  %1001 = vst.msk [vmem:[%s1833_s3 + $0xac] sm:$0xf] %vm957_vm2, %v1198_v1  ;;  %v567_v8 = vadd.f32 %v1300_v6, %v1508_v34  ;;  %v558_v10 = vpop.f32.mrb[13].mxu1 }
  0xf3   :  { %967 = vst.msk [vmem:[%s1833_s3 + $0x24] sm:$0xf] %vm957_vm2, %v1164_v2  ;;  %v431_v9 = vadd.f32 %v1508_v34, %v430_v7  ;;  %v1269_v11 = vpop.f32.mrb[14].mxu0  ;;  %999 = vst.msk [vmem:[%s1833_s3 + $0xa4] sm:$0xf] %vm957_vm2, %v1196_v4  ;;  %v559_v13 = vadd.f32 %v1508_v34, %v558_v10  ;;  %v1301_v15 = vpop.f32.mrb[14].mxu1 }
  0xf4   :  { %v651_v12 = vmax.f32 %v439_v5, 0.0  ;;  %v442_v14 = vadd.f32 %v1269_v11, %v1508_v34  ;;  %v433_v16 = vpop.f32.mrb[15].mxu0  ;;  %v683_v17 = vmax.f32 %v567_v8, 0.0  ;;  %v570_v19 = vadd.f32 %v1301_v15, %v1508_v34  ;;  %v561_v21 = vpop.f32.mrb[15].mxu1 }
  0xf5   :  { %v649_v18 = vmax.f32 %v431_v9, 0.0  ;;  %v434_v20 = vadd.f32 %v1508_v34, %v433_v16  ;;  %v681_v23 = vmax.f32 %v559_v13, 0.0  ;;  %v562_v25 = vadd.f32 %v1508_v34, %v561_v21 }
  0xf6   :  { %v1169_v22 = vpack.c.bf16 %v651_v12, %v651_v12  ;;  %v652_v24 = vmax.f32 %v442_v14, 0.0  ;;  %v1201_v26 = vpack.c.bf16 %v683_v17, %v683_v17  ;;  %v684_v28 = vmax.f32 %v570_v19, 0.0 }
  0xf7   :  { %v1167_v27 = vpack.c.bf16 %v649_v18, %v649_v18  ;;  %v650_v29 = vmax.f32 %v434_v20, 0.0  ;;  %v1199_v30 = vpack.c.bf16 %v681_v23, %v681_v23  ;;  %v682_v32 = vmax.f32 %v562_v25, 0.0 }
  0xf8   :  { %972 = vst.msk [vmem:[%s1833_s3 + $0x38] sm:$0xf] %vm957_vm2, %v1169_v22  ;;  %v1170_v31 = vpack.c.bf16 %v652_v24, %v652_v24  ;;  %1004 = vst.msk [vmem:[%s1833_s3 + $0xb8] sm:$0xf] %vm957_vm2, %v1201_v26  ;;  %v1202_v33 = vpack.c.bf16 %v684_v28, %v684_v28 }
  0xf9   :  { %970 = vst.msk [vmem:[%s1833_s3 + $0x30] sm:$0xf] %vm957_vm2, %v1167_v27  ;;  %v1168_v35 = vpack.c.bf16 %v650_v29, %v650_v29  ;;  %v1272_v36 = vpop.f32.mrb[16].mxu0  ;;  %1002 = vst.msk [vmem:[%s1833_s3 + $0xb0] sm:$0xf] %vm957_vm2, %v1199_v30  ;;  %v1200_v37 = vpack.c.bf16 %v682_v32, %v682_v32  ;;  %v1304_v39 = vpop.f32.mrb[16].mxu1 }
  0xfa   :  { %973 = vst.msk [vmem:[%s1833_s3 + $0x3c] sm:$0xf] %vm957_vm2, %v1170_v31  ;;  %v455_v38 = vadd.f32 %v1272_v36, %v1508_v34  ;;  %v446_v40 = vpop.f32.mrb[17].mxu0  ;;  %1005 = vst.msk [vmem:[%s1833_s3 + $0xbc] sm:$0xf] %vm957_vm2, %v1202_v33  ;;  %v583_v41 = vadd.f32 %v1304_v39, %v1508_v34  ;;  %v574_v43 = vpop.f32.mrb[17].mxu1 }
  0xfb   :  { %971 = vst.msk [vmem:[%s1833_s3 + $0x34] sm:$0xf] %vm957_vm2, %v1168_v35  ;;  %v447_v42 = vadd.f32 %v1508_v34, %v446_v40  ;;  %v1273_v44 = vpop.f32.mrb[18].mxu0  ;;  %1003 = vst.msk [vmem:[%s1833_s3 + $0xb4] sm:$0xf] %vm957_vm2, %v1200_v37  ;;  %v575_v46 = vadd.f32 %v1508_v34, %v574_v43  ;;  %v1305_v48 = vpop.f32.mrb[18].mxu1 }
  0xfc   :  { %v655_v45 = vmax.f32 %v455_v38, 0.0  ;;  %v458_v47 = vadd.f32 %v1273_v44, %v1508_v34  ;;  %v449_v49 = vpop.f32.mrb[19].mxu0  ;;  %v687_v50 = vmax.f32 %v583_v41, 0.0  ;;  %v586_v52 = vadd.f32 %v1305_v48, %v1508_v34  ;;  %v577_v54 = vpop.f32.mrb[19].mxu1 }
  0xfd   :  { %v653_v51 = vmax.f32 %v447_v42, 0.0  ;;  %v450_v53 = vadd.f32 %v1508_v34, %v449_v49  ;;  %v685_v56 = vmax.f32 %v575_v46, 0.0  ;;  %v578_v58 = vadd.f32 %v1508_v34, %v577_v54 }
  0xfe   :  { %v1173_v55 = vpack.c.bf16 %v655_v45, %v655_v45  ;;  %v656_v57 = vmax.f32 %v458_v47, 0.0  ;;  %v1205_v59 = vpack.c.bf16 %v687_v50, %v687_v50  ;;  %v688_v61 = vmax.f32 %v586_v52, 0.0 }
  0xff   :  { %v1171_v60 = vpack.c.bf16 %v653_v51, %v653_v51  ;;  %v654_v62 = vmax.f32 %v450_v53, 0.0  ;;  %v1203_v63 = vpack.c.bf16 %v685_v56, %v685_v56  ;;  %v686_v1 = vmax.f32 %v578_v58, 0.0 }
 0x100   :  { %976 = vst.msk [vmem:[%s1833_s3 + $0x48] sm:$0xf] %vm957_vm2, %v1173_v55  ;;  %v1174_v0 = vpack.c.bf16 %v656_v57, %v656_v57  ;;  %1008 = vst.msk [vmem:[%s1833_s3 + $0xc8] sm:$0xf] %vm957_vm2, %v1205_v59  ;;  %v1206_v2 = vpack.c.bf16 %v688_v61, %v688_v61 }
 0x101   :  { %974 = vst.msk [vmem:[%s1833_s3 + $0x40] sm:$0xf] %vm957_vm2, %v1171_v60  ;;  %v1172_v3 = vpack.c.bf16 %v654_v62, %v654_v62  ;;  %v1276_v4 = vpop.f32.mrb[20].mxu0  ;;  %1006 = vst.msk [vmem:[%s1833_s3 + $0xc0] sm:$0xf] %vm957_vm2, %v1203_v63  ;;  %v1204_v5 = vpack.c.bf16 %v686_v1, %v686_v1  ;;  %v1308_v7 = vpop.f32.mrb[20].mxu1 }
 0x102   :  { %977 = vst.msk [vmem:[%s1833_s3 + $0x4c] sm:$0xf] %vm957_vm2, %v1174_v0  ;;  %v471_v6 = vadd.f32 %v1276_v4, %v1508_v34  ;;  %v462_v8 = vpop.f32.mrb[21].mxu0  ;;  %1009 = vst.msk [vmem:[%s1833_s3 + $0xcc] sm:$0xf] %vm957_vm2, %v1206_v2  ;;  %v599_v9 = vadd.f32 %v1308_v7, %v1508_v34  ;;  %v590_v11 = vpop.f32.mrb[21].mxu1 }
 0x103   :  { %975 = vst.msk [vmem:[%s1833_s3 + $0x44] sm:$0xf] %vm957_vm2, %v1172_v3  ;;  %v463_v10 = vadd.f32 %v1508_v34, %v462_v8  ;;  %v1277_v12 = vpop.f32.mrb[22].mxu0  ;;  %1007 = vst.msk [vmem:[%s1833_s3 + $0xc4] sm:$0xf] %vm957_vm2, %v1204_v5  ;;  %v591_v14 = vadd.f32 %v1508_v34, %v590_v11  ;;  %v1309_v16 = vpop.f32.mrb[22].mxu1 }
 0x104   :  { %v659_v13 = vmax.f32 %v471_v6, 0.0  ;;  %v474_v15 = vadd.f32 %v1277_v12, %v1508_v34  ;;  %v465_v17 = vpop.f32.mrb[23].mxu0  ;;  %v691_v18 = vmax.f32 %v599_v9, 0.0  ;;  %v602_v20 = vadd.f32 %v1309_v16, %v1508_v34  ;;  %v593_v22 = vpop.f32.mrb[23].mxu1 }
 0x105   :  { %v657_v19 = vmax.f32 %v463_v10, 0.0  ;;  %v466_v21 = vadd.f32 %v1508_v34, %v465_v17  ;;  %v689_v24 = vmax.f32 %v591_v14, 0.0  ;;  %v594_v26 = vadd.f32 %v1508_v34, %v593_v22 }
 0x106   :  { %v1177_v23 = vpack.c.bf16 %v659_v13, %v659_v13  ;;  %v660_v25 = vmax.f32 %v474_v15, 0.0  ;;  %v1209_v27 = vpack.c.bf16 %v691_v18, %v691_v18  ;;  %v692_v29 = vmax.f32 %v602_v20, 0.0 }
 0x107   :  { %v1175_v28 = vpack.c.bf16 %v657_v19, %v657_v19  ;;  %v658_v30 = vmax.f32 %v466_v21, 0.0  ;;  %v1207_v31 = vpack.c.bf16 %v689_v24, %v689_v24  ;;  %v690_v33 = vmax.f32 %v594_v26, 0.0 }
 0x108   :  { %980 = vst.msk [vmem:[%s1833_s3 + $0x58] sm:$0xf] %vm957_vm2, %v1177_v23  ;;  %v1178_v32 = vpack.c.bf16 %v660_v25, %v660_v25  ;;  %1012 = vst.msk [vmem:[%s1833_s3 + $0xd8] sm:$0xf] %vm957_vm2, %v1209_v27  ;;  %v1210_v35 = vpack.c.bf16 %v692_v29, %v692_v29 }
 0x109   :  { %978 = vst.msk [vmem:[%s1833_s3 + $0x50] sm:$0xf] %vm957_vm2, %v1175_v28  ;;  %v1176_v36 = vpack.c.bf16 %v658_v30, %v658_v30  ;;  %v1280_v37 = vpop.f32.mrb[24].mxu0  ;;  %1010 = vst.msk [vmem:[%s1833_s3 + $0xd0] sm:$0xf] %vm957_vm2, %v1207_v31  ;;  %v1208_v38 = vpack.c.bf16 %v690_v33, %v690_v33  ;;  %v1312_v40 = vpop.f32.mrb[24].mxu1 }
 0x10a   :  { %981 = vst.msk [vmem:[%s1833_s3 + $0x5c] sm:$0xf] %vm957_vm2, %v1178_v32  ;;  %v487_v39 = vadd.f32 %v1280_v37, %v1508_v34  ;;  %v478_v41 = vpop.f32.mrb[25].mxu0  ;;  %1013 = vst.msk [vmem:[%s1833_s3 + $0xdc] sm:$0xf] %vm957_vm2, %v1210_v35  ;;  %v615_v42 = vadd.f32 %v1312_v40, %v1508_v34  ;;  %v606_v44 = vpop.f32.mrb[25].mxu1 }
 0x10b   :  { %979 = vst.msk [vmem:[%s1833_s3 + $0x54] sm:$0xf] %vm957_vm2, %v1176_v36  ;;  %v479_v43 = vadd.f32 %v1508_v34, %v478_v41  ;;  %v1281_v45 = vpop.f32.mrb[26].mxu0  ;;  %1011 = vst.msk [vmem:[%s1833_s3 + $0xd4] sm:$0xf] %vm957_vm2, %v1208_v38  ;;  %v607_v47 = vadd.f32 %v1508_v34, %v606_v44  ;;  %v1313_v49 = vpop.f32.mrb[26].mxu1 }
 0x10c   :  { %v663_v46 = vmax.f32 %v487_v39, 0.0  ;;  %v490_v48 = vadd.f32 %v1281_v45, %v1508_v34  ;;  %v481_v50 = vpop.f32.mrb[27].mxu0  ;;  %v695_v51 = vmax.f32 %v615_v42, 0.0  ;;  %v618_v53 = vadd.f32 %v1313_v49, %v1508_v34  ;;  %v609_v55 = vpop.f32.mrb[27].mxu1 }
 0x10d   :  { %v661_v52 = vmax.f32 %v479_v43, 0.0  ;;  %v482_v54 = vadd.f32 %v1508_v34, %v481_v50  ;;  %v693_v57 = vmax.f32 %v607_v47, 0.0  ;;  %v610_v59 = vadd.f32 %v1508_v34, %v609_v55 }
 0x10e   :  { %v1181_v56 = vpack.c.bf16 %v663_v46, %v663_v46  ;;  %v664_v58 = vmax.f32 %v490_v48, 0.0  ;;  %v1213_v60 = vpack.c.bf16 %v695_v51, %v695_v51  ;;  %v696_v62 = vmax.f32 %v618_v53, 0.0 }
 0x10f   :  { %v1179_v61 = vpack.c.bf16 %v661_v52, %v661_v52  ;;  %v662_v63 = vmax.f32 %v482_v54, 0.0  ;;  %v1211_v0 = vpack.c.bf16 %v693_v57, %v693_v57  ;;  %v694_v2 = vmax.f32 %v610_v59, 0.0 }
 0x110   :  { %984 = vst.msk [vmem:[%s1833_s3 + $0x68] sm:$0xf] %vm957_vm2, %v1181_v56  ;;  %v1182_v1 = vpack.c.bf16 %v664_v58, %v664_v58  ;;  %1016 = vst.msk [vmem:[%s1833_s3 + $0xe8] sm:$0xf] %vm957_vm2, %v1213_v60  ;;  %v1214_v3 = vpack.c.bf16 %v696_v62, %v696_v62 }
 0x111   :  { %982 = vst.msk [vmem:[%s1833_s3 + $0x60] sm:$0xf] %vm957_vm2, %v1179_v61  ;;  %v1180_v4 = vpack.c.bf16 %v662_v63, %v662_v63  ;;  %v1284_v5 = vpop.f32.mrb[28].mxu0  ;;  %1014 = vst.msk [vmem:[%s1833_s3 + $0xe0] sm:$0xf] %vm957_vm2, %v1211_v0  ;;  %v1212_v6 = vpack.c.bf16 %v694_v2, %v694_v2  ;;  %v1316_v8 = vpop.f32.mrb[28].mxu1 }
 0x112   :  { %985 = vst.msk [vmem:[%s1833_s3 + $0x6c] sm:$0xf] %vm957_vm2, %v1182_v1  ;;  %v503_v7 = vadd.f32 %v1284_v5, %v1508_v34  ;;  %v494_v9 = vpop.f32.mrb[29].mxu0  ;;  %1017 = vst.msk [vmem:[%s1833_s3 + $0xec] sm:$0xf] %vm957_vm2, %v1214_v3  ;;  %v631_v10 = vadd.f32 %v1316_v8, %v1508_v34  ;;  %v622_v12 = vpop.f32.mrb[29].mxu1 }
 0x113   :  { %983 = vst.msk [vmem:[%s1833_s3 + $0x64] sm:$0xf] %vm957_vm2, %v1180_v4  ;;  %v495_v11 = vadd.f32 %v1508_v34, %v494_v9  ;;  %v1285_v13 = vpop.f32.mrb[30].mxu0  ;;  %1015 = vst.msk [vmem:[%s1833_s3 + $0xe4] sm:$0xf] %vm957_vm2, %v1212_v6  ;;  %v623_v15 = vadd.f32 %v1508_v34, %v622_v12  ;;  %v1317_v17 = vpop.f32.mrb[30].mxu1 }
 0x114   :  { %v667_v14 = vmax.f32 %v503_v7, 0.0  ;;  %v506_v16 = vadd.f32 %v1285_v13, %v1508_v34  ;;  %v497_v18 = vpop.f32.mrb[31].mxu0  ;;  %v699_v19 = vmax.f32 %v631_v10, 0.0  ;;  %v634_v21 = vadd.f32 %v1317_v17, %v1508_v34  ;;  %v625_v23 = vpop.f32.mrb[31].mxu1 }
 0x115   :  { %v665_v20 = vmax.f32 %v495_v11, 0.0  ;;  %v498_v22 = vadd.f32 %v1508_v34, %v497_v18  ;;  %v697_v25 = vmax.f32 %v623_v15, 0.0  ;;  %v626_v27 = vadd.f32 %v1508_v34, %v625_v23 }
 0x116   :  { %v1185_v24 = vpack.c.bf16 %v667_v14, %v667_v14  ;;  %v668_v26 = vmax.f32 %v506_v16, 0.0  ;;  %v1217_v28 = vpack.c.bf16 %v699_v19, %v699_v19  ;;  %v700_v30 = vmax.f32 %v634_v21, 0.0 }
 0x117   :  { %v1183_v29 = vpack.c.bf16 %v665_v20, %v665_v20  ;;  %v666_v31 = vmax.f32 %v498_v22, 0.0  ;;  %v1215_v32 = vpack.c.bf16 %v697_v25, %v697_v25  ;;  %v698_v35 = vmax.f32 %v626_v27, 0.0 }
 0x118   :  { %988 = vst.msk [vmem:[%s1833_s3 + $0x78] sm:$0xf] %vm957_vm2, %v1185_v24  ;;  %v1186_v33 = vpack.c.bf16 %v668_v26, %v668_v26  ;;  %1020 = vst.msk [vmem:[%s1833_s3 + $0xf8] sm:$0xf] %vm957_vm2, %v1217_v28  ;;  %v1218_v34 = vpack.c.bf16 %v700_v30, %v700_v30 }
 0x119   :  { %986 = vst.msk [vmem:[%s1833_s3 + $0x70] sm:$0xf] %vm957_vm2, %v1183_v29  ;;  %v1184_v36 = vpack.c.bf16 %v666_v31, %v666_v31  ;;  %1018 = vst.msk [vmem:[%s1833_s3 + $0xf0] sm:$0xf] %vm957_vm2, %v1215_v32  ;;  %v1216_v37 = vpack.c.bf16 %v698_v35, %v698_v35 }
 0x11a   :  { %989 = vst.msk [vmem:[%s1833_s3 + $0x7c] sm:$0xf] %vm957_vm2, %v1186_v33  ;;  %1021 = vst.msk [vmem:[%s1833_s3 + $0xfc] sm:$0xf] %vm957_vm2, %v1218_v34 }
 0x11b   :  { %987 = vst.msk [vmem:[%s1833_s3 + $0x74] sm:$0xf] %vm957_vm2, %v1184_v36  ;;  %1019 = vst.msk [vmem:[%s1833_s3 + $0xf4] sm:$0xf] %vm957_vm2, %v1216_v37 }

// kernel: db_cism_even_odd_lines_forward.22
= control target key start
LH: loop header
LB: loop body
LE: loop exit
PB: predicated region body
PF: predicated region fallthrough
CT: control target
= control target key end

     0   :  { %s478_s12 = smov 0   ;;  %s526_s0 = inlined_call_operand.vmem [shape: bf16[2,2,64], index: 0, kind: input, shape index: {}]   ;;  %s527_s1 = inlined_call_operand.vmem [shape: f32[4,2], index: 1, kind: input, shape index: {}]   ;;  %s528_s2 = inlined_call_operand.vmem [shape: f32[64,128], index: 2, kind: input, shape index: {}]   ;;  %s529_s3 = inlined_call_operand.vmem [shape: bf16[2,4,128], index: 3, kind: output, shape index: {}]  }
   0x1 LB: > { %s378_s13 = sadd.s32 4294967295, %s453_s12   ;;  %p382_p0 = scmp.ge.s32.totalorder %s453_s12, 1  ;;  %s453_s12 = sphi %s478_s12, %s13_s12  }
   0x2   : > { %p135_p1 = scmp.lt.s32.totalorder %s453_s12, 3 }
   0x4   : > { %p136_p2 = pnand %p382_p0, %p135_p1 }
   0x5   : > { %p156_p3 = scmp.lt.s32.totalorder (!%p136_p2), %s378_s13, 1  ;;  %v455_v0 = vmov (!%p136_p2), 0.0   ;;  %vm456_vm0 = vmmov (!%p136_p2), 0   ;;  %v244_v1 = vld [vmem:[%s528_s2] sm:$0xff] (!%p136_p2)  ;;  %v245_v2 = vld [vmem:[%s528_s2 + $0x8] sm:$0xff] (!%p136_p2)  ;;  %v246_v3 = vld [vmem:[%s528_s2 + $0x10] sm:$0xff] (!%p136_p2) }
   0x6   : > { %139 = sbr.rel (%p136_p2) target bundleno = 446 (0x1be), region = 32  ;;  %400 = vmatprep.subr.mxu0 (!%p136_p2), %v455_v0  ;;  %402 = vmatprep.mubr.msk.f32.mxu0 (!%p136_p2), %vm456_vm0, %v455_v0  ;;  %v457_v4 = vmov (!%p136_p2), 0.0|0.0   ;;  %v425_v5 = vpack.c.bf16 (!%p136_p2), %v245_v2, %v244_v1  ;;  %v247_v6 = vld [vmem:[%s528_s2 + $0x18] sm:$0xff] (!%p136_p2)  ;;  %vm170_vm1 = vcmask (!%p136_p2), 1041408   ;;  %v248_v9 = vld [vmem:[%s528_s2 + $0x20] sm:$0xff] (!%p136_p2)  ;;  %v249_v10 = vld [vmem:[%s528_s2 + $0x28] sm:$0xff] (!%p136_p2) }
   0x7   : > { %424 = vmatprep.subr.bf16.mxu1 (!%p136_p2), %v457_v4  ;;  %421 = vmatprep.mubr.msk.f32.mxu1 (!%p136_p2), %vm456_vm0, %v455_v0  ;;  %v428_v7 = vpack.c.bf16 (!%p136_p2), %v247_v6, %v246_v3  ;;  %v165_v12 = vld [vmem:[%s527_s1] sm:$0xf] (!%p136_p2)  ;;  %vm166_vm2 = vcmask (!%p136_p2), 15360   ;;  %v431_v13 = vpack.c.bf16 (!%p136_p2), %v249_v10, %v248_v9  ;;  %v250_v14 = vld [vmem:[%s528_s2 + $0x30] sm:$0xff] (!%p136_p2)  ;;  %v251_v15 = vld [vmem:[%s528_s2 + $0x38] sm:$0xff] (!%p136_p2)  ;;  %vm252_vm3 = vcmask (!%p136_p2), 523264  }
   0x8   : > { %426 = vmatpush3.bf16.msra.mxu1 (!%p136_p2), %v425_v5  ;;  %v434_v16 = vpack.c.bf16 (!%p136_p2), %v251_v15, %v250_v14 }
   0x9   : > { %427 = vmatprep.subr.bf16.mxu1 (!%p136_p2), %v457_v4 }
   0xc   : > { %429 = vmatpush3.bf16.msra.mxu1 (!%p136_p2), %v428_v7 }
   0xd   : > { %s531_s13 = smov (!%p156_p3, %s378_s13), 1  ;;  %430 = vmatprep.subr.bf16.mxu1 %v457_v4 }
   0xe   : > { %s158_s24 = scalar_lea.vmem %s526_s0, %s531_s13  ;;  %s383_s8 = sshll.u32 %s531_s13, 1 }
   0xf   : > { %v163_v8 = vld [vmem:[%s158_s24] sm:$0x1]  ;;  %s162_s11 = scalar_lea.vmem %s529_s3, %s383_s8 }
  0x10   : > { %v164_v11 = vunpack.c.l.bf16 %v163_v8  ;;  %432 = vmatpush3.bf16.msra.mxu1 %v431_v13 }
  0x11   : > { %433 = vmatprep.subr.bf16.mxu1 %v457_v4 }
  0x12   : > { %401 = vmatpush3.msk.msra.mxu0 %vm170_vm1, %v164_v11 }
  0x13   : > { %403 = vmatmul.mubr.msk.f32.vlgmr.msra.gmra.mrb[0].mxu0 %vm166_vm2, %v165_v12 }
  0x14   : > { %435 = vmatpush3.bf16.msra.mxu1 %v434_v16 }
  0xe6   : > { %v240_v17 = vpop.f32.mrb[0].mxu0 }
  0xe7   : > { %v404_v18 = vpop.f32.mrb[1].mxu0  ;;  %422 = vmatmul.mubr.msk.f32.vlgmr.msra.gmra.mrb[0].mxu1 %vm252_vm3, %v240_v17 }
 0x1ba   : > { %v322_v19 = vpop.f32.mrb[0].mxu1 }
 0x1bb   : > { %v326_v20 = vpack.c.bf16 %v322_v19, %v322_v19  ;;  %v423_v21 = vpop.f32.mrb[1].mxu1 }
 0x1bd   : > { %327 = vst [vmem:[%s162_s11] sm:$0x3] %v326_v20 }
 0x1be PF: > { %s13_s12 = sadd.s32 1, %s453_s12  }
 0x1bf   : > { %p10_p4 = scmp.ge.s32.totalorder %s13_s12, 4  }
 0x1c1   :  { %12 = sbr.rel (!%p10_p4) target bundleno = 1 (0x1), region = 62 }

// kernel: db_cism_even_odd_lines_forward.20
= control target key start
LH: loop header
LB: loop body
LE: loop exit
PB: predicated region body
PF: predicated region fallthrough
CT: control target
= control target key end

     0   :  { %vm52_vm0 = vcmask 261120   ;;  %vm124_vm1 = vcmask 257024   ;;  %s211_s1 = inlined_call_operand.vmem [shape: bf16[32,32], index: 1, kind: input, shape index: {}]   ;;  %s212_s0 = inlined_call_operand.vmem [shape: bf16[32,32], index: 0, kind: input, shape index: {}]   ;;  %s213_s2 = inlined_call_operand.vmem [shape: f32[1,32], index: 2, kind: input, shape index: {}]   ;;  %s214_s3 = inlined_call_operand.vmem [shape: bf16[32,32], index: 3, kind: output, shape index: {}]  }
   0x1   :  { %v160_v0 = vld [vmem:[%s211_s1] sm:$0xff]   ;;  %v161_v1 = vld [vmem:[%s211_s1 + $0x8] sm:$0xff]  }
   0x2   :  { %152 = vmatprep.subr.bf16.mxu0 %v160_v0  ;;  %v162_v2 = vld [vmem:[%s212_s0] sm:$0xff]   ;;  %v163_v3 = vld [vmem:[%s212_s0 + $0x8] sm:$0xff]  }
   0x3   :  { %153 = vmatpush3.bf16.msra.mxu0 %v160_v0  ;;  %156 = vmatprep.mubr.msk.bf16.mxu0 %vm52_vm0, %v162_v2  ;;  %v133_v4 = vld [vmem:[%s213_s2] ss:$0 sm:$0xff] }
   0x4   :  { %154 = vmatprep.subr.bf16.mxu0 %v161_v1 }
   0x7   :  { %155 = vmatpush3.bf16.msra.mxu0 %v161_v1 }
   0xa   :  { %157 = vmatmul.mubr.msk.bf16.vlgmr.msra.gmra.mrb[0].mxu0 %vm52_vm0, %v163_v3 }
  0xdd   :  { %v158_v5 = vpop.f32.mrb[0].mxu0 }
  0xde   :  { %v102_v6 = vadd.f32 %v158_v5, %v133_v4  ;;  %v93_v7 = vpop.f32.mrb[1].mxu0 }
  0xdf   :  { %v94_v8 = vadd.f32 %v133_v4, %v93_v7  ;;  %v159_v9 = vpop.f32.mrb[2].mxu0 }
  0xe0   :  { %v146_v10 = vpack.c.bf16 %v102_v6, %v102_v6  ;;  %v105_v11 = vadd.f32 %v159_v9, %v133_v4  ;;  %v96_v12 = vpop.f32.mrb[3].mxu0 }
  0xe1   :  { %v144_v13 = vpack.c.bf16 %v94_v8, %v94_v8  ;;  %v97_v14 = vadd.f32 %v133_v4, %v96_v12 }
  0xe2   :  { %127 = vst.msk [vmem:[%s214_s3 + $0x8] sm:$0xf] %vm124_vm1, %v146_v10  ;;  %v147_v15 = vpack.c.bf16 %v105_v11, %v105_v11 }
  0xe3   :  { %125 = vst.msk [vmem:[%s214_s3] sm:$0xf] %vm124_vm1, %v144_v13  ;;  %v145_v16 = vpack.c.bf16 %v97_v14, %v97_v14 }
  0xe4   :  { %128 = vst.msk [vmem:[%s214_s3 + $0xc] sm:$0xf] %vm124_vm1, %v147_v15 }
  0xe5   :  { %126 = vst.msk [vmem:[%s214_s3 + $0x4] sm:$0xf] %vm124_vm1, %v145_v16 }

// kernel: db_cism_even_odd_lines_forward.19
= control target key start
LH: loop header
LB: loop body
LE: loop exit
PB: predicated region body
PF: predicated region fallthrough
CT: control target
= control target key end

     0   :  { %v135_v0 = vmov 0.0   ;;  %vm136_vm0 = vmmov 0   ;;  %vm55_vm1 = vcmask 523264   ;;  %vm100_vm2 = vcmask 257024   ;;  %s178_s1 = inlined_call_operand.vmem [shape: bf16[64,32], index: 1, kind: input, shape index: {}]   ;;  %s179_s0 = inlined_call_operand.vmem [shape: bf16[8,64], index: 0, kind: input, shape index: {}]   ;;  %s180_s2 = inlined_call_operand.vmem [shape: f32[1,32], index: 2, kind: input, shape index: {}]   ;;  %s181_s3 = inlined_call_operand.vmem [shape: bf16[8,32], index: 3, kind: output, shape index: {}]  }
   0x1   :  { %117 = vmatprep.subr.bf16.mxu0 %v135_v0  ;;  %v131_v1 = vld [vmem:[%s178_s1] sm:$0xff]   ;;  %125 = vmatprep.mubr.msk.bf16.mxu0 %vm136_vm0, %v135_v0  ;;  %v132_v2 = vld [vmem:[%s178_s1 + $0x8] sm:$0xff]   ;;  %v133_v3 = vld [vmem:[%s178_s1 + $0x10] sm:$0xff]  }
   0x2   :  { %118 = vmatpush3.bf16.msra.mxu0 %v131_v1  ;;  %v134_v4 = vld [vmem:[%s178_s1 + $0x18] sm:$0xff]   ;;  %v15_v5 = vld [vmem:[%s179_s0] sm:$0xf] }
   0x3   :  { %119 = vmatprep.subr.bf16.mxu0 %v135_v0  ;;  %v106_v6 = vld [vmem:[%s180_s2] ss:$0 sm:$0xff] }
   0x6   :  { %120 = vmatpush3.bf16.msra.mxu0 %v132_v2 }
   0x7   :  { %121 = vmatprep.subr.bf16.mxu0 %v135_v0 }
   0xa   :  { %122 = vmatpush3.bf16.msra.mxu0 %v133_v3 }
   0xb   :  { %123 = vmatprep.subr.bf16.mxu0 %v135_v0 }
   0xe   :  { %124 = vmatpush3.bf16.msra.mxu0 %v134_v4 }
  0x11   :  { %126 = vmatmul.mubr.msk.bf16.vlgmr.msra.gmra.mrb[0].mxu0 %vm55_vm1, %v15_v5 }
  0xe4   :  { %v93_v7 = vpop.f32.mrb[0].mxu0 }
  0xe5   :  { %v94_v8 = vadd.f32 %v106_v6, %v93_v7  ;;  %v127_v9 = vpop.f32.mrb[1].mxu0 }
  0xe6   :  { %v96_v10 = vpop.f32.mrb[2].mxu0 }
  0xe7   :  { %v99_v11 = vpack.c.bf16 %v94_v8, %v94_v8  ;;  %v128_v12 = vpop.f32.mrb[3].mxu0 }
  0xe9   :  { %101 = vst.msk [vmem:[%s181_s3] sm:$0xf] %vm100_vm2, %v99_v11 }

// kernel: db_cism_even_odd_lines_forward.21
= control target key start
LH: loop header
LB: loop body
LE: loop exit
PB: predicated region body
PF: predicated region fallthrough
CT: control target
= control target key end

     0   :  { %vm86_vm0 = vcmask 130048   ;;  %vm272_vm1 = vcmask 257024   ;;  %s503_s1 = inlined_call_operand.vmem [shape: bf16[16,32], index: 1, kind: input, shape index: {}]   ;;  %s504_s0 = inlined_call_operand.vmem [shape: bf16[128,16], index: 0, kind: input, shape index: {}]   ;;  %s505_s2 = inlined_call_operand.vmem [shape: f32[1,32], index: 2, kind: input, shape index: {}]   ;;  %s506_s3 = inlined_call_operand.vmem [shape: bf16[128,32], index: 3, kind: output, shape index: {}]  }
   0x1   :  { %v372_v0 = vld [vmem:[%s503_s1] sm:$0xff]   ;;  %v375_v3 = vld [vmem:[%s504_s0 + $0x8] sm:$0xff]   ;;  %v377_v5 = vld [vmem:[%s504_s0 + $0x10] sm:$0xff]  }
   0x2   :  { %v373_v1 = vld [vmem:[%s504_s0] sm:$0xff]   ;;  %352 = vmatprep.subr.bf16.mxu0 %v372_v0  ;;  %370 = vmatprep.subr.bf16.mxu1 %v372_v0  ;;  %v376_v4 = vld [vmem:[%s504_s0 + $0x28] sm:$0xff]   ;;  %v378_v6 = vld [vmem:[%s504_s0 + $0x30] sm:$0xff]  }
   0x3   :  { %v374_v2 = vld [vmem:[%s504_s0 + $0x20] sm:$0xff]   ;;  %353 = vmatpush3.bf16.msra.mxu0 %v372_v0  ;;  %371 = vmatpush3.bf16.msra.mxu1 %v372_v0  ;;  %v379_v7 = vld [vmem:[%s504_s0 + $0x18] sm:$0xff]  }
   0x4   :  { %354 = vmatprep.mubr.msk.bf16.mxu0 %vm86_vm0, %v373_v1  ;;  %362 = vmatprep.mubr.msk.bf16.mxu1 %vm86_vm0, %v374_v2  ;;  %v380_v8 = vld [vmem:[%s504_s0 + $0x38] sm:$0xff]   ;;  %v293_v9 = vld [vmem:[%s505_s2] ss:$0 sm:$0xff] }
   0x6   :  { %355 = vmatmul.mubr.msk.bf16.vlgmr.msra.gmra.mrb[0].mxu0 %vm86_vm0, %v375_v3  ;;  %363 = vmatmul.mubr.msk.bf16.vlgmr.msra.gmra.mrb[0].mxu1 %vm86_vm0, %v376_v4 }
   0x7   :  { %358 = vmatprep.mubr.msk.bf16.mxu0 %vm86_vm0, %v377_v5  ;;  %366 = vmatprep.mubr.msk.bf16.mxu1 %vm86_vm0, %v378_v6 }
   0xe   :  { %359 = vmatmul.mubr.msk.bf16.gmra.mrb[4].mxu0 %vm86_vm0, %v379_v7  ;;  %367 = vmatmul.mubr.msk.bf16.gmra.mrb[4].mxu1 %vm86_vm0, %v380_v8 }
  0xd9   :  { %v356_v10 = vpop.f32.mrb[0].mxu0  ;;  %v364_v11 = vpop.f32.mrb[0].mxu1 }
  0xda   :  { %v154_v12 = vadd.f32 %v356_v10, %v293_v9  ;;  %v186_v13 = vadd.f32 %v364_v11, %v293_v9  ;;  %v145_v14 = vpop.f32.mrb[1].mxu0  ;;  %v177_v15 = vpop.f32.mrb[1].mxu1 }
  0xdb   :  { %v146_v16 = vadd.f32 %v293_v9, %v145_v14  ;;  %v178_v17 = vadd.f32 %v293_v9, %v177_v15  ;;  %v357_v18 = vpop.f32.mrb[2].mxu0  ;;  %v365_v19 = vpop.f32.mrb[2].mxu1 }
  0xdc   :  { %v329_v20 = vpack.c.bf16 %v154_v12, %v154_v12  ;;  %v337_v21 = vpack.c.bf16 %v186_v13, %v186_v13  ;;  %v157_v22 = vadd.f32 %v357_v18, %v293_v9  ;;  %v189_v23 = vadd.f32 %v365_v19, %v293_v9  ;;  %v148_v24 = vpop.f32.mrb[3].mxu0  ;;  %v180_v25 = vpop.f32.mrb[3].mxu1 }
  0xdd   :  { %v327_v26 = vpack.c.bf16 %v146_v16, %v146_v16  ;;  %v335_v27 = vpack.c.bf16 %v178_v17, %v178_v17  ;;  %v149_v28 = vadd.f32 %v293_v9, %v148_v24  ;;  %v181_v29 = vadd.f32 %v293_v9, %v180_v25 }
  0xde   :  { %275 = vst.msk [vmem:[%s506_s3 + $0x8] sm:$0xf] %vm272_vm1, %v329_v20  ;;  %283 = vst.msk [vmem:[%s506_s3 + $0x28] sm:$0xf] %vm272_vm1, %v337_v21  ;;  %v330_v30 = vpack.c.bf16 %v157_v22, %v157_v22  ;;  %v338_v31 = vpack.c.bf16 %v189_v23, %v189_v23 }
  0xdf   :  { %273 = vst.msk [vmem:[%s506_s3] sm:$0xf] %vm272_vm1, %v327_v26  ;;  %281 = vst.msk [vmem:[%s506_s3 + $0x20] sm:$0xf] %vm272_vm1, %v335_v27  ;;  %v328_v32 = vpack.c.bf16 %v149_v28, %v149_v28  ;;  %v336_v33 = vpack.c.bf16 %v181_v29, %v181_v29 }
  0xe0   :  { %276 = vst.msk [vmem:[%s506_s3 + $0xc] sm:$0xf] %vm272_vm1, %v330_v30  ;;  %284 = vst.msk [vmem:[%s506_s3 + $0x2c] sm:$0xf] %vm272_vm1, %v338_v31 }
  0xe1   :  { %274 = vst.msk [vmem:[%s506_s3 + $0x4] sm:$0xf] %vm272_vm1, %v328_v32  ;;  %282 = vst.msk [vmem:[%s506_s3 + $0x24] sm:$0xf] %vm272_vm1, %v336_v33  ;;  %v360_v34 = vpop.f32.mrb[4].mxu0  ;;  %v368_v35 = vpop.f32.mrb[4].mxu1 }
  0xe2   :  { %v170_v36 = vadd.f32 %v360_v34, %v293_v9  ;;  %v202_v37 = vadd.f32 %v368_v35, %v293_v9  ;;  %v161_v38 = vpop.f32.mrb[5].mxu0  ;;  %v193_v39 = vpop.f32.mrb[5].mxu1 }
  0xe3   :  { %v162_v40 = vadd.f32 %v293_v9, %v161_v38  ;;  %v194_v41 = vadd.f32 %v293_v9, %v193_v39  ;;  %v361_v42 = vpop.f32.mrb[6].mxu0  ;;  %v369_v43 = vpop.f32.mrb[6].mxu1 }
  0xe4   :  { %v333_v44 = vpack.c.bf16 %v170_v36, %v170_v36  ;;  %v341_v45 = vpack.c.bf16 %v202_v37, %v202_v37  ;;  %v173_v46 = vadd.f32 %v361_v42, %v293_v9  ;;  %v205_v47 = vadd.f32 %v369_v43, %v293_v9  ;;  %v164_v48 = vpop.f32.mrb[7].mxu0  ;;  %v196_v49 = vpop.f32.mrb[7].mxu1 }
  0xe5   :  { %v331_v50 = vpack.c.bf16 %v162_v40, %v162_v40  ;;  %v339_v51 = vpack.c.bf16 %v194_v41, %v194_v41  ;;  %v165_v52 = vadd.f32 %v293_v9, %v164_v48  ;;  %v197_v53 = vadd.f32 %v293_v9, %v196_v49 }
  0xe6   :  { %279 = vst.msk [vmem:[%s506_s3 + $0x18] sm:$0xf] %vm272_vm1, %v333_v44  ;;  %287 = vst.msk [vmem:[%s506_s3 + $0x38] sm:$0xf] %vm272_vm1, %v341_v45  ;;  %v334_v54 = vpack.c.bf16 %v173_v46, %v173_v46  ;;  %v342_v55 = vpack.c.bf16 %v205_v47, %v205_v47 }
  0xe7   :  { %277 = vst.msk [vmem:[%s506_s3 + $0x10] sm:$0xf] %vm272_vm1, %v331_v50  ;;  %285 = vst.msk [vmem:[%s506_s3 + $0x30] sm:$0xf] %vm272_vm1, %v339_v51  ;;  %v332_v56 = vpack.c.bf16 %v165_v52, %v165_v52  ;;  %v340_v57 = vpack.c.bf16 %v197_v53, %v197_v53 }
  0xe8   :  { %280 = vst.msk [vmem:[%s506_s3 + $0x1c] sm:$0xf] %vm272_vm1, %v334_v54  ;;  %288 = vst.msk [vmem:[%s506_s3 + $0x3c] sm:$0xf] %vm272_vm1, %v342_v55 }
  0xe9   :  { %278 = vst.msk [vmem:[%s506_s3 + $0x14] sm:$0xf] %vm272_vm1, %v332_v56  ;;  %286 = vst.msk [vmem:[%s506_s3 + $0x34] sm:$0xf] %vm272_vm1, %v340_v57 }

// kernel: db_cism_even_odd_lines_forward.23
= control target key start
LH: loop header
LB: loop body
LE: loop exit
PB: predicated region body
PF: predicated region fallthrough
CT: control target
= control target key end

     0   :  { %s510_s12 = smov 0   ;;  %s630_s0 = inlined_call_operand.vmem [shape: bf16[2,4,128], index: 0, kind: input, shape index: {}]   ;;  %s631_s1 = inlined_call_operand.vmem [shape: f32[8,4], index: 1, kind: input, shape index: {}]   ;;  %s632_s2 = inlined_call_operand.vmem [shape: f32[128,256], index: 2, kind: input, shape index: {}]   ;;  %s633_s3 = inlined_call_operand.vmem [shape: bf16[2,8,256], index: 3, kind: output, shape index: {}]  }
   0x1 LB: > { %s416_s13 = sadd.s32 4294967295, %s486_s12   ;;  %p420_p0 = scmp.ge.s32.totalorder %s486_s12, 1  ;;  %s486_s12 = sphi %s510_s12, %s13_s12  }
   0x2   : > { %p136_p1 = scmp.lt.s32.totalorder %s486_s12, 3 }
   0x4   : > { %p137_p2 = pnand %p420_p0, %p136_p1 }
   0x5   : > { %p159_p3 = scmp.lt.s32.totalorder (!%p137_p2), %s416_s13, 1  ;;  %v488_v0 = vmov (!%p137_p2), 0.0   ;;  %vm489_vm0 = vmmov (!%p137_p2), 0   ;;  %v250_v1 = vld [vmem:[%s632_s2 + $0x8] sm:$0xff] (!%p137_p2)  ;;  %v252_v2 = vld [vmem:[%s632_s2 + $0x18] sm:$0xff] (!%p137_p2)  ;;  %v249_v3 = vld [vmem:[%s632_s2] sm:$0xff] (!%p137_p2) }
   0x6   : > { %140 = sbr.rel (%p137_p2) target bundleno = 448 (0x1c0), region = 32  ;;  %433 = vmatprep.subr.mxu0 (!%p137_p2), %v488_v0  ;;  %435 = vmatprep.mubr.msk.f32.mxu0 (!%p137_p2), %vm489_vm0, %v488_v0  ;;  %v438_v4 = vpack.c.bf16 (!%p137_p2), %v252_v2, %v250_v1  ;;  %v251_v5 = vld [vmem:[%s632_s2 + $0x10] sm:$0xff] (!%p137_p2)  ;;  %v254_v6 = vld [vmem:[%s632_s2 + $0x28] sm:$0xff] (!%p137_p2)  ;;  %v256_v7 = vld [vmem:[%s632_s2 + $0x38] sm:$0xff] (!%p137_p2)  ;;  %vm175_vm1 = vcmask (!%p137_p2), 1043456   ;;  %vm171_vm2 = vcmask (!%p137_p2), 31744  }
   0x7   : > { %345 = vmatprep.mubr.f32.mxu1 (!%p137_p2), %v488_v0  ;;  %v440_v8 = vpack.c.bf16 (!%p137_p2), %v251_v5, %v249_v3  ;;  %v442_v9 = vpack.c.bf16 (!%p137_p2), %v256_v7, %v254_v6  ;;  %v253_v10 = vld [vmem:[%s632_s2 + $0x20] sm:$0xff] (!%p137_p2)  ;;  %v255_v11 = vld [vmem:[%s632_s2 + $0x30] sm:$0xff] (!%p137_p2)  ;;  %v258_v12 = vld [vmem:[%s632_s2 + $0x48] sm:$0xff] (!%p137_p2) }
   0x8   : > { %439 = vmatprep.subr.bf16.mxu1 (!%p137_p2), %v438_v4  ;;  %v260_v13 = vld [vmem:[%s632_s2 + $0x58] sm:$0xff] (!%p137_p2)  ;;  %v444_v14 = vpack.c.bf16 (!%p137_p2), %v255_v11, %v253_v10  ;;  %v257_v17 = vld [vmem:[%s632_s2 + $0x40] sm:$0xff] (!%p137_p2)  ;;  %v259_v18 = vld [vmem:[%s632_s2 + $0x50] sm:$0xff] (!%p137_p2) }
   0x9   : > { %441 = vmatpush1.bf16.msra.mxu1 (!%p137_p2), %v440_v8  ;;  %v446_v16 = vpack.c.bf16 (!%p137_p2), %v260_v13, %v258_v12  ;;  %v170_v20 = vld [vmem:[%s631_s1] sm:$0xff] (!%p137_p2)  ;;  %v262_v21 = vld [vmem:[%s632_s2 + $0x68] sm:$0xff] (!%p137_p2)  ;;  %v264_v22 = vld [vmem:[%s632_s2 + $0x78] sm:$0xff] (!%p137_p2)  ;;  %v448_v23 = vpack.c.bf16 (!%p137_p2), %v259_v18, %v257_v17 }
   0xa   : > { %443 = vmatprep.subr.bf16.mxu1 (!%p137_p2), %v442_v9  ;;  %v450_v24 = vpack.c.bf16 (!%p137_p2), %v264_v22, %v262_v21  ;;  %v261_v25 = vld [vmem:[%s632_s2 + $0x60] sm:$0xff] (!%p137_p2)  ;;  %v263_v26 = vld [vmem:[%s632_s2 + $0x70] sm:$0xff] (!%p137_p2)  ;;  %v266_v27 = vld [vmem:[%s632_s2 + $0x88] sm:$0xff] (!%p137_p2) }
   0xb   : > { %v268_v28 = vld [vmem:[%s632_s2 + $0x98] sm:$0xff] (!%p137_p2)  ;;  %v452_v29 = vpack.c.bf16 (!%p137_p2), %v263_v26, %v261_v25  ;;  %v265_v31 = vld [vmem:[%s632_s2 + $0x80] sm:$0xff] (!%p137_p2)  ;;  %v267_v32 = vld [vmem:[%s632_s2 + $0x90] sm:$0xff] (!%p137_p2) }
   0xc   : > { %v454_v30 = vpack.c.bf16 (!%p137_p2), %v268_v28, %v266_v27  ;;  %v270_v33 = vld [vmem:[%s632_s2 + $0xa8] sm:$0xff] (!%p137_p2)  ;;  %v272_v34 = vld [vmem:[%s632_s2 + $0xb8] sm:$0xff] (!%p137_p2)  ;;  %v456_v35 = vpack.c.bf16 (!%p137_p2), %v267_v32, %v265_v31  ;;  %v269_v37 = vld [vmem:[%s632_s2 + $0xa0] sm:$0xff] (!%p137_p2) }
   0xd   : > { %s635_s13 = smov (!%p159_p3, %s416_s13), 1  ;;  %445 = vmatpush1.bf16.msra.mxu1 %v444_v14  ;;  %v458_v36 = vpack.c.bf16 %v272_v34, %v270_v33  ;;  %v271_v38 = vld [vmem:[%s632_s2 + $0xb0] sm:$0xff]  ;;  %v274_v39 = vld [vmem:[%s632_s2 + $0xc8] sm:$0xff]  ;;  %v276_v40 = vld [vmem:[%s632_s2 + $0xd8] sm:$0xff] }
   0xe   : > { %s421_s5 = sshll.u32 %s635_s13, 1  ;;  %447 = vmatprep.subr.bf16.mxu1 %v446_v16  ;;  %v460_v41 = vpack.c.bf16 %v271_v38, %v269_v37  ;;  %v462_v42 = vpack.c.bf16 %v276_v40, %v274_v39  ;;  %v273_v43 = vld [vmem:[%s632_s2 + $0xc0] sm:$0xff]  ;;  %v275_v44 = vld [vmem:[%s632_s2 + $0xd0] sm:$0xff]  ;;  %v278_v45 = vld [vmem:[%s632_s2 + $0xe8] sm:$0xff]  ;;  %s429_s7 = sshll.u32 %s635_s13, 3 }
   0xf   : > { %s162_s10 = scalar_lea.vmem %s630_s0, %s421_s5  ;;  %v280_v46 = vld [vmem:[%s632_s2 + $0xf8] sm:$0xff]  ;;  %v464_v47 = vpack.c.bf16 %v275_v44, %v273_v43  ;;  %v277_v49 = vld [vmem:[%s632_s2 + $0xe0] sm:$0xff]  ;;  %v279_v50 = vld [vmem:[%s632_s2 + $0xf0] sm:$0xff] }
  0x10   : > { %v168_v15 = vld [vmem:[%s162_s10] sm:$0x3]  ;;  %v466_v48 = vpack.c.bf16 %v280_v46, %v278_v45  ;;  %v468_v51 = vpack.c.bf16 %v279_v50, %v277_v49  ;;  %s167_s10 = scalar_lea.vmem %s633_s3, %s429_s7 }
  0x11   : > { %v169_v19 = vunpack.c.l.bf16 %v168_v15  ;;  %449 = vmatpush1.bf16.msra.mxu1 %v448_v23 }
  0x12   : > { %451 = vmatprep.subr.bf16.mxu1 %v450_v24 }
  0x13   : > { %434 = vmatpush3.msk.msra.mxu0 %vm175_vm1, %v169_v19 }
  0x14   : > { %436 = vmatmul.mubr.msk.f32.vlgmr.msra.gmra.mrb[0].mxu0 %vm171_vm2, %v170_v20 }
  0x15   : > { %453 = vmatpush1.bf16.msra.mxu1 %v452_v29 }
  0x16   : > { %455 = vmatprep.subr.bf16.mxu1 %v454_v30 }
  0x19   : > { %457 = vmatpush1.bf16.msra.mxu1 %v456_v35 }
  0x1a   : > { %459 = vmatprep.subr.bf16.mxu1 %v458_v36 }
  0x1d   : > { %461 = vmatpush1.bf16.msra.mxu1 %v460_v41 }
  0x1e   : > { %463 = vmatprep.subr.bf16.mxu1 %v462_v42 }
  0x21   : > { %465 = vmatpush1.bf16.msra.mxu1 %v464_v47 }
  0x22   : > { %467 = vmatprep.subr.bf16.mxu1 %v466_v48 }
  0x25   : > { %469 = vmatpush1.bf16.msra.mxu1 %v468_v51 }
  0xe7   : > { %v245_v52 = vpop.f32.mrb[0].mxu0 }
  0xe8   : > { %v437_v53 = vpop.f32.mrb[1].mxu0  ;;  %346 = vmatmul.mubr.f32.vlgmr.msra.gmra.mrb[0].mxu1 %v245_v52 }
 0x1bb   : > { %v347_v54 = vpop.f32.mrb[0].mxu1 }
 0x1bc   : > { %v349_v55 = vpop.f32.mrb[1].mxu1 }
 0x1bd   : > { %v430_v56 = vpack.c.bf16 %v349_v55, %v347_v54 }
 0x1bf   : > { %360 = vst [vmem:[%s167_s10] sm:$0xff] %v430_v56 }
 0x1c0 PF: > { %s13_s12 = sadd.s32 1, %s486_s12  }
 0x1c1   : > { %p10_p4 = scmp.ge.s32.totalorder %s13_s12, 4  }
 0x1c3   :  { %12 = sbr.rel (!%p10_p4) target bundleno = 1 (0x1), region = 62 }

// kernel: db_cism_even_odd_lines_forward.25
= control target key start
LH: loop header
LB: loop body
LE: loop exit
PB: predicated region body
PF: predicated region fallthrough
CT: control target
= control target key end

     0   :  { %vm52_vm0 = vcmask 261120   ;;  %vm128_vm1 = vcmask 60416   ;;  %s215_s1 = inlined_call_operand.vmem [shape: bf16[32,8], index: 1, kind: input, shape index: {}]   ;;  %s216_s0 = inlined_call_operand.vmem [shape: bf16[32,32], index: 0, kind: input, shape index: {}]   ;;  %s217_s2 = inlined_call_operand.vmem [shape: f32[1,8], index: 2, kind: input, shape index: {}]   ;;  %s218_s3 = inlined_call_operand.vmem [shape: bf16[32,8], index: 3, kind: output, shape index: {}]  }
   0x1   :  { %v164_v0 = vld [vmem:[%s215_s1] sm:$0xff]   ;;  %v165_v1 = vld [vmem:[%s215_s1 + $0x8] sm:$0xff]  }
   0x2   :  { %156 = vmatprep.subr.bf16.mxu0 %v164_v0  ;;  %v166_v2 = vld [vmem:[%s216_s0] sm:$0xff]   ;;  %v167_v3 = vld [vmem:[%s216_s0 + $0x8] sm:$0xff]  }
   0x3   :  { %157 = vmatpush3.bf16.msra.mxu0 %v164_v0  ;;  %160 = vmatprep.mubr.msk.bf16.mxu0 %vm52_vm0, %v166_v2  ;;  %v137_v4 = vld [vmem:[%s217_s2] ss:$0 sm:$0xff] }
   0x4   :  { %158 = vmatprep.subr.bf16.mxu0 %v165_v1 }
   0x7   :  { %159 = vmatpush3.bf16.msra.mxu0 %v165_v1 }
   0xa   :  { %161 = vmatmul.mubr.msk.bf16.vlgmr.msra.gmra.mrb[0].mxu0 %vm52_vm0, %v167_v3 }
  0xdd   :  { %v162_v5 = vpop.f32.mrb[0].mxu0 }
  0xde   :  { %v102_v6 = vadd.f32 %v162_v5, %v137_v4  ;;  %v93_v7 = vpop.f32.mrb[1].mxu0 }
  0xdf   :  { %v94_v8 = vadd.f32 %v137_v4, %v93_v7  ;;  %v163_v9 = vpop.f32.mrb[2].mxu0 }
  0xe0   :  { %v110_v10 = vmax.f32 %v102_v6, 0.0  ;;  %v105_v11 = vadd.f32 %v163_v9, %v137_v4  ;;  %v96_v12 = vpop.f32.mrb[3].mxu0 }
  0xe1   :  { %v108_v13 = vmax.f32 %v94_v8, 0.0  ;;  %v97_v14 = vadd.f32 %v137_v4, %v96_v12 }
  0xe2   :  { %v150_v15 = vpack.c.bf16 %v110_v10, %v110_v10  ;;  %v111_v16 = vmax.f32 %v105_v11, 0.0 }
  0xe3   :  { %v148_v17 = vpack.c.bf16 %v108_v13, %v108_v13  ;;  %v109_v18 = vmax.f32 %v97_v14, 0.0 }
  0xe4   :  { %131 = vst.msk [vmem:[%s218_s3 + $0x8] sm:$0xf] %vm128_vm1, %v150_v15  ;;  %v151_v19 = vpack.c.bf16 %v111_v16, %v111_v16 }
  0xe5   :  { %129 = vst.msk [vmem:[%s218_s3] sm:$0xf] %vm128_vm1, %v148_v17  ;;  %v149_v20 = vpack.c.bf16 %v109_v18, %v109_v18 }
  0xe6   :  { %132 = vst.msk [vmem:[%s218_s3 + $0xc] sm:$0xf] %vm128_vm1, %v151_v19 }
  0xe7   :  { %130 = vst.msk [vmem:[%s218_s3 + $0x4] sm:$0xf] %vm128_vm1, %v149_v20 }

// kernel: db_cism_even_odd_lines_forward.26
= control target key start
LH: loop header
LB: loop body
LE: loop exit
PB: predicated region body
PF: predicated region fallthrough
CT: control target
= control target key end

     0   :  { %vm94_vm0 = vcmask 261120   ;;  %vm296_vm1 = vcmask 60416   ;;  %s537_s1 = inlined_call_operand.vmem [shape: bf16[32,8], index: 1, kind: input, shape index: {}]   ;;  %s538_s0 = inlined_call_operand.vmem [shape: bf16[128,32], index: 0, kind: input, shape index: {}]   ;;  %s539_s2 = inlined_call_operand.vmem [shape: f32[1,8], index: 2, kind: input, shape index: {}]   ;;  %s540_s3 = inlined_call_operand.vmem [shape: bf16[128,8], index: 3, kind: output, shape index: {}]  }
   0x1   :  { %v402_v0 = vld [vmem:[%s537_s1] sm:$0xff]   ;;  %v403_v1 = vld [vmem:[%s537_s1 + $0x8] sm:$0xff]   ;;  %v408_v6 = vld [vmem:[%s538_s0 + $0x10] sm:$0xff]  }
   0x2   :  { %378 = vmatprep.subr.bf16.mxu0 %v402_v0  ;;  %398 = vmatprep.subr.bf16.mxu1 %v402_v0  ;;  %v404_v2 = vld [vmem:[%s538_s0] sm:$0xff]   ;;  %v406_v4 = vld [vmem:[%s538_s0 + $0x8] sm:$0xff]   ;;  %v409_v7 = vld [vmem:[%s538_s0 + $0x30] sm:$0xff]  }
   0x3   :  { %379 = vmatpush3.bf16.msra.mxu0 %v402_v0  ;;  %400 = vmatpush3.bf16.msra.mxu1 %v402_v0  ;;  %v405_v3 = vld [vmem:[%s538_s0 + $0x20] sm:$0xff]   ;;  %v407_v5 = vld [vmem:[%s538_s0 + $0x28] sm:$0xff]   ;;  %v410_v8 = vld [vmem:[%s538_s0 + $0x18] sm:$0xff]  }
   0x4   :  { %380 = vmatprep.subr.bf16.mxu0 %v403_v1  ;;  %399 = vmatprep.subr.bf16.mxu1 %v403_v1  ;;  %v411_v9 = vld [vmem:[%s538_s0 + $0x38] sm:$0xff]   ;;  %v317_v10 = vld [vmem:[%s539_s2] ss:$0 sm:$0xff] }
   0x5   :  { %382 = vmatprep.mubr.msk.bf16.mxu0 %vm94_vm0, %v404_v2  ;;  %390 = vmatprep.mubr.msk.bf16.mxu1 %vm94_vm0, %v405_v3 }
   0x7   :  { %381 = vmatpush3.bf16.msra.mxu0 %v403_v1  ;;  %401 = vmatpush3.bf16.msra.mxu1 %v403_v1 }
   0xa   :  { %383 = vmatmul.mubr.msk.bf16.vlgmr.msra.gmra.mrb[0].mxu0 %vm94_vm0, %v406_v4  ;;  %391 = vmatmul.mubr.msk.bf16.vlgmr.msra.gmra.mrb[0].mxu1 %vm94_vm0, %v407_v5 }
   0xb   :  { %386 = vmatprep.mubr.msk.bf16.mxu0 %vm94_vm0, %v408_v6  ;;  %394 = vmatprep.mubr.msk.bf16.mxu1 %vm94_vm0, %v409_v7 }
  0x12   :  { %387 = vmatmul.mubr.msk.bf16.gmra.mrb[4].mxu0 %vm94_vm0, %v410_v8  ;;  %395 = vmatmul.mubr.msk.bf16.gmra.mrb[4].mxu1 %vm94_vm0, %v411_v9 }
  0xdd   :  { %v384_v11 = vpop.f32.mrb[0].mxu0  ;;  %v392_v12 = vpop.f32.mrb[0].mxu1 }
  0xde   :  { %v162_v13 = vadd.f32 %v384_v11, %v317_v10  ;;  %v194_v14 = vadd.f32 %v392_v12, %v317_v10  ;;  %v153_v15 = vpop.f32.mrb[1].mxu0  ;;  %v185_v16 = vpop.f32.mrb[1].mxu1 }
  0xdf   :  { %v154_v17 = vadd.f32 %v317_v10, %v153_v15  ;;  %v186_v18 = vadd.f32 %v317_v10, %v185_v16  ;;  %v385_v19 = vpop.f32.mrb[2].mxu0  ;;  %v393_v20 = vpop.f32.mrb[2].mxu1 }
  0xe0   :  { %v218_v21 = vmax.f32 %v162_v13, 0.0  ;;  %v226_v22 = vmax.f32 %v194_v14, 0.0  ;;  %v165_v23 = vadd.f32 %v385_v19, %v317_v10  ;;  %v197_v24 = vadd.f32 %v393_v20, %v317_v10  ;;  %v156_v25 = vpop.f32.mrb[3].mxu0  ;;  %v188_v26 = vpop.f32.mrb[3].mxu1 }
  0xe1   :  { %v216_v27 = vmax.f32 %v154_v17, 0.0  ;;  %v224_v28 = vmax.f32 %v186_v18, 0.0  ;;  %v157_v29 = vadd.f32 %v317_v10, %v156_v25  ;;  %v189_v30 = vadd.f32 %v317_v10, %v188_v26 }
  0xe2   :  { %v354_v31 = vpack.c.bf16 %v218_v21, %v218_v21  ;;  %v362_v32 = vpack.c.bf16 %v226_v22, %v226_v22  ;;  %v219_v33 = vmax.f32 %v165_v23, 0.0  ;;  %v227_v34 = vmax.f32 %v197_v24, 0.0 }
  0xe3   :  { %v352_v35 = vpack.c.bf16 %v216_v27, %v216_v27  ;;  %v360_v36 = vpack.c.bf16 %v224_v28, %v224_v28  ;;  %v217_v37 = vmax.f32 %v157_v29, 0.0  ;;  %v225_v38 = vmax.f32 %v189_v30, 0.0 }
  0xe4   :  { %299 = vst.msk [vmem:[%s540_s3 + $0x8] sm:$0xf] %vm296_vm1, %v354_v31  ;;  %307 = vst.msk [vmem:[%s540_s3 + $0x28] sm:$0xf] %vm296_vm1, %v362_v32  ;;  %v355_v39 = vpack.c.bf16 %v219_v33, %v219_v33  ;;  %v363_v40 = vpack.c.bf16 %v227_v34, %v227_v34 }
  0xe5   :  { %297 = vst.msk [vmem:[%s540_s3] sm:$0xf] %vm296_vm1, %v352_v35  ;;  %305 = vst.msk [vmem:[%s540_s3 + $0x20] sm:$0xf] %vm296_vm1, %v360_v36  ;;  %v353_v41 = vpack.c.bf16 %v217_v37, %v217_v37  ;;  %v361_v42 = vpack.c.bf16 %v225_v38, %v225_v38  ;;  %v388_v43 = vpop.f32.mrb[4].mxu0  ;;  %v396_v44 = vpop.f32.mrb[4].mxu1 }
  0xe6   :  { %300 = vst.msk [vmem:[%s540_s3 + $0xc] sm:$0xf] %vm296_vm1, %v355_v39  ;;  %308 = vst.msk [vmem:[%s540_s3 + $0x2c] sm:$0xf] %vm296_vm1, %v363_v40  ;;  %v178_v45 = vadd.f32 %v388_v43, %v317_v10  ;;  %v210_v46 = vadd.f32 %v396_v44, %v317_v10  ;;  %v169_v47 = vpop.f32.mrb[5].mxu0  ;;  %v201_v48 = vpop.f32.mrb[5].mxu1 }
  0xe7   :  { %298 = vst.msk [vmem:[%s540_s3 + $0x4] sm:$0xf] %vm296_vm1, %v353_v41  ;;  %306 = vst.msk [vmem:[%s540_s3 + $0x24] sm:$0xf] %vm296_vm1, %v361_v42  ;;  %v170_v49 = vadd.f32 %v317_v10, %v169_v47  ;;  %v202_v50 = vadd.f32 %v317_v10, %v201_v48  ;;  %v389_v51 = vpop.f32.mrb[6].mxu0  ;;  %v397_v52 = vpop.f32.mrb[6].mxu1 }
  0xe8   :  { %v222_v53 = vmax.f32 %v178_v45, 0.0  ;;  %v230_v54 = vmax.f32 %v210_v46, 0.0  ;;  %v181_v55 = vadd.f32 %v389_v51, %v317_v10  ;;  %v213_v56 = vadd.f32 %v397_v52, %v317_v10  ;;  %v172_v57 = vpop.f32.mrb[7].mxu0  ;;  %v204_v58 = vpop.f32.mrb[7].mxu1 }
  0xe9   :  { %v220_v59 = vmax.f32 %v170_v49, 0.0  ;;  %v228_v60 = vmax.f32 %v202_v50, 0.0  ;;  %v173_v61 = vadd.f32 %v317_v10, %v172_v57  ;;  %v205_v62 = vadd.f32 %v317_v10, %v204_v58 }
  0xea   :  { %v358_v63 = vpack.c.bf16 %v222_v53, %v222_v53  ;;  %v366_v0 = vpack.c.bf16 %v230_v54, %v230_v54  ;;  %v223_v1 = vmax.f32 %v181_v55, 0.0  ;;  %v231_v2 = vmax.f32 %v213_v56, 0.0 }
  0xeb   :  { %v356_v3 = vpack.c.bf16 %v220_v59, %v220_v59  ;;  %v364_v4 = vpack.c.bf16 %v228_v60, %v228_v60  ;;  %v221_v5 = vmax.f32 %v173_v61, 0.0  ;;  %v229_v6 = vmax.f32 %v205_v62, 0.0 }
  0xec   :  { %303 = vst.msk [vmem:[%s540_s3 + $0x18] sm:$0xf] %vm296_vm1, %v358_v63  ;;  %311 = vst.msk [vmem:[%s540_s3 + $0x38] sm:$0xf] %vm296_vm1, %v366_v0  ;;  %v359_v7 = vpack.c.bf16 %v223_v1, %v223_v1  ;;  %v367_v8 = vpack.c.bf16 %v231_v2, %v231_v2 }
  0xed   :  { %301 = vst.msk [vmem:[%s540_s3 + $0x10] sm:$0xf] %vm296_vm1, %v356_v3  ;;  %309 = vst.msk [vmem:[%s540_s3 + $0x30] sm:$0xf] %vm296_vm1, %v364_v4  ;;  %v357_v9 = vpack.c.bf16 %v221_v5, %v221_v5  ;;  %v365_v10 = vpack.c.bf16 %v229_v6, %v229_v6 }
  0xee   :  { %304 = vst.msk [vmem:[%s540_s3 + $0x1c] sm:$0xf] %vm296_vm1, %v359_v7  ;;  %312 = vst.msk [vmem:[%s540_s3 + $0x3c] sm:$0xf] %vm296_vm1, %v367_v8 }
  0xef   :  { %302 = vst.msk [vmem:[%s540_s3 + $0x14] sm:$0xf] %vm296_vm1, %v357_v9  ;;  %310 = vst.msk [vmem:[%s540_s3 + $0x34] sm:$0xf] %vm296_vm1, %v365_v10 }

// kernel: db_cism_even_odd_lines_forward.27
= control target key start
LH: loop header
LB: loop body
LE: loop exit
PB: predicated region body
PF: predicated region fallthrough
CT: control target
= control target key end

     0   :  { %s464_s12 = smov 0   ;;  %s496_s0 = inlined_call_operand.vmem [shape: bf16[2,4,32], index: 0, kind: input, shape index: {}]   ;;  %s497_s1 = inlined_call_operand.vmem [shape: f32[8,4], index: 1, kind: input, shape index: {}]   ;;  %s498_s2 = inlined_call_operand.vmem [shape: f32[32,64], index: 2, kind: input, shape index: {}]   ;;  %s499_s3 = inlined_call_operand.vmem [shape: bf16[2,8,64], index: 3, kind: output, shape index: {}]  }
   0x1 LB: > { %s381_s13 = sadd.s32 4294967295, %s439_s12   ;;  %p385_p0 = scmp.ge.s32.totalorder %s439_s12, 1  ;;  %s439_s12 = sphi %s464_s12, %s13_s12  }
   0x2   : > { %p136_p1 = scmp.lt.s32.totalorder %s439_s12, 3 }
   0x4   : > { %p137_p2 = pnand %p385_p0, %p136_p1 }
   0x5   : > { %p158_p3 = scmp.lt.s32.totalorder (!%p137_p2), %s381_s13, 1  ;;  %v441_v0 = vmov (!%p137_p2), 0.0   ;;  %vm442_vm0 = vmmov (!%p137_p2), 0   ;;  %v247_v1 = vld [vmem:[%s498_s2] sm:$0xff] (!%p137_p2)  ;;  %v248_v2 = vld [vmem:[%s498_s2 + $0x8] sm:$0xff] (!%p137_p2)  ;;  %v249_v3 = vld [vmem:[%s498_s2 + $0x10] sm:$0xff] (!%p137_p2) }
   0x6   : > { %140 = sbr.rel (%p137_p2) target bundleno = 447 (0x1bf), region = 32  ;;  %400 = vmatprep.subr.mxu0 (!%p137_p2), %v441_v0  ;;  %402 = vmatprep.mubr.msk.f32.mxu0 (!%p137_p2), %vm442_vm0, %v441_v0  ;;  %v443_v4 = vmov (!%p137_p2), 0.0|0.0   ;;  %v417_v5 = vpack.c.bf16 (!%p137_p2), %v248_v2, %v247_v1  ;;  %v250_v6 = vld [vmem:[%s498_s2 + $0x18] sm:$0xff] (!%p137_p2)  ;;  %vm173_vm1 = vcmask (!%p137_p2), 1043456   ;;  %v168_v10 = vld [vmem:[%s497_s1] sm:$0xff] (!%p137_p2)  ;;  %vm169_vm2 = vcmask (!%p137_p2), 31744  }
   0x7   : > { %416 = vmatprep.subr.bf16.mxu1 (!%p137_p2), %v443_v4  ;;  %413 = vmatprep.mubr.msk.f32.mxu1 (!%p137_p2), %vm442_vm0, %v441_v0  ;;  %v420_v7 = vpack.c.bf16 (!%p137_p2), %v250_v6, %v249_v3  ;;  %vm251_vm3 = vcmask (!%p137_p2), 261120   ;;  %vm326_vm4 = vcmask (!%p137_p2), 519168  }
   0x8   : > { %418 = vmatpush3.bf16.msra.mxu1 (!%p137_p2), %v417_v5 }
   0x9   : > { %419 = vmatprep.subr.bf16.mxu1 (!%p137_p2), %v443_v4 }
   0xc   : > { %421 = vmatpush3.bf16.msra.mxu1 (!%p137_p2), %v420_v7 }
   0xd   : > { %s501_s13 = smov (!%p158_p3, %s381_s13), 1 }
   0xe   : > { %s386_s22 = sshll.u32 %s501_s13, 1  ;;  %s387_s28 = sshll.u32 %s501_s13, 2 }
   0xf   : > { %s161_s25 = scalar_lea.vmem %s496_s0, %s386_s22  ;;  %s165_s4 = scalar_lea.vmem %s499_s3, %s387_s28 }
  0x10   : > { %v166_v8 = vld [vmem:[%s161_s25] sm:$0x3] }
  0x11   : > { %v167_v9 = vunpack.c.l.bf16 %v166_v8 }
  0x13   : > { %401 = vmatpush3.msk.msra.mxu0 %vm173_vm1, %v167_v9 }
  0x14   : > { %403 = vmatmul.mubr.msk.f32.vlgmr.msra.gmra.mrb[0].mxu0 %vm169_vm2, %v168_v10 }
  0xe7   : > { %v243_v11 = vpop.f32.mrb[0].mxu0 }
  0xe8   : > { %v404_v12 = vpop.f32.mrb[1].mxu0  ;;  %414 = vmatmul.mubr.msk.f32.vlgmr.msra.gmra.mrb[0].mxu1 %vm251_vm3, %v243_v11 }
 0x1bb   : > { %v321_v13 = vpop.f32.mrb[0].mxu1 }
 0x1bc   : > { %v325_v14 = vpack.c.bf16 %v321_v13, %v321_v13  ;;  %v415_v15 = vpop.f32.mrb[1].mxu1 }
 0x1be   : > { %327 = vst.msk [vmem:[%s165_s4] sm:$0xf] %vm326_vm4, %v325_v14 }
 0x1bf PF: > { %s13_s12 = sadd.s32 1, %s439_s12  }
 0x1c0   : > { %p10_p4 = scmp.ge.s32.totalorder %s13_s12, 4  }
 0x1c2   :  { %12 = sbr.rel (!%p10_p4) target bundleno = 1 (0x1), region = 62 }

// kernel: db_cism_even_odd_lines_forward.24
= control target key start
LH: loop header
LB: loop body
LE: loop exit
PB: predicated region body
PF: predicated region fallthrough
CT: control target
= control target key end

     0   :  { %v110_v0 = vmov 0.0   ;;  %vm111_vm0 = vmmov 0   ;;  %vm39_vm1 = vcmask 261120   ;;  %vm85_vm2 = vcmask 60416   ;;  %s147_s1 = inlined_call_operand.vmem [shape: bf16[32,8], index: 1, kind: input, shape index: {}]   ;;  %s148_s0 = inlined_call_operand.vmem [shape: bf16[8,32], index: 0, kind: input, shape index: {}]   ;;  %s149_s2 = inlined_call_operand.vmem [shape: f32[1,8], index: 2, kind: input, shape index: {}]   ;;  %s150_s3 = inlined_call_operand.vmem [shape: bf16[8,8], index: 3, kind: output, shape index: {}]  }
   0x1   :  { %98 = vmatprep.subr.bf16.mxu0 %v110_v0  ;;  %v108_v1 = vld [vmem:[%s147_s1] sm:$0xff]   ;;  %102 = vmatprep.mubr.msk.bf16.mxu0 %vm111_vm0, %v110_v0  ;;  %v109_v2 = vld [vmem:[%s147_s1 + $0x8] sm:$0xff]  }
   0x2   :  { %99 = vmatpush3.bf16.msra.mxu0 %v108_v1  ;;  %v15_v3 = vld [vmem:[%s148_s0] sm:$0xf] }
   0x3   :  { %100 = vmatprep.subr.bf16.mxu0 %v110_v0  ;;  %v91_v4 = vld [vmem:[%s149_s2] ss:$0 sm:$0xff] }
   0x6   :  { %101 = vmatpush3.bf16.msra.mxu0 %v109_v2 }
   0x9   :  { %103 = vmatmul.mubr.msk.bf16.vlgmr.msra.gmra.mrb[0].mxu0 %vm39_vm1, %v15_v3 }
  0xdc   :  { %v77_v5 = vpop.f32.mrb[0].mxu0 }
  0xdd   :  { %v78_v6 = vadd.f32 %v91_v4, %v77_v5  ;;  %v104_v7 = vpop.f32.mrb[1].mxu0 }
  0xde   :  { %v80_v8 = vpop.f32.mrb[2].mxu0 }
  0xdf   :  { %v83_v9 = vmax.f32 %v78_v6, 0.0  ;;  %v105_v10 = vpop.f32.mrb[3].mxu0 }
  0xe1   :  { %v84_v11 = vpack.c.bf16 %v83_v9, %v83_v9 }
  0xe3   :  { %86 = vst.msk [vmem:[%s150_s3] sm:$0xf] %vm85_vm2, %v84_v11 }

// kernel: db_cism_even_odd_lines_forward.28
= control target key start
LH: loop header
LB: loop body
LE: loop exit
PB: predicated region body
PF: predicated region fallthrough
CT: control target
= control target key end

     0   :  { %s446_s12 = smov 0   ;;  %s472_s0 = inlined_call_operand.vmem [shape: bf16[2,2,16], index: 0, kind: input, shape index: {}]   ;;  %s473_s1 = inlined_call_operand.vmem [shape: f32[8,2], index: 1, kind: input, shape index: {}]   ;;  %s474_s2 = inlined_call_operand.vmem [shape: f32[16,64], index: 2, kind: input, shape index: {}]   ;;  %s475_s3 = inlined_call_operand.vmem [shape: bf16[2,8,64], index: 3, kind: output, shape index: {}]  }
   0x1 LB: > { %s373_s13 = sadd.s32 4294967295, %s421_s12   ;;  %p377_p0 = scmp.ge.s32.totalorder %s421_s12, 1  ;;  %s421_s12 = sphi %s446_s12, %s13_s12  }
   0x2   : > { %p135_p1 = scmp.lt.s32.totalorder %s421_s12, 3 }
   0x4   : > { %p136_p2 = pnand %p377_p0, %p135_p1 }
   0x5   : > { %p156_p3 = scmp.lt.s32.totalorder (!%p136_p2), %s373_s13, 1  ;;  %v423_v0 = vmov (!%p136_p2), 0.0   ;;  %vm424_vm0 = vmmov (!%p136_p2), 0   ;;  %v244_v1 = vld [vmem:[%s474_s2] sm:$0xff] (!%p136_p2)  ;;  %v245_v2 = vld [vmem:[%s474_s2 + $0x8] sm:$0xff] (!%p136_p2)  ;;  %v425_v3 = vmov (!%p136_p2), 0.0|0.0  }
   0x6   : > { %139 = sbr.rel (%p136_p2) target bundleno = 446 (0x1be), region = 32  ;;  %389 = vmatprep.subr.mxu0 (!%p136_p2), %v423_v0  ;;  %391 = vmatprep.mubr.msk.f32.mxu0 (!%p136_p2), %vm424_vm0, %v423_v0  ;;  %v402_v4 = vpack.c.bf16 (!%p136_p2), %v245_v2, %v244_v1  ;;  %vm170_vm1 = vcmask (!%p136_p2), 1041408   ;;  %v165_v7 = vld [vmem:[%s473_s1] sm:$0xff] (!%p136_p2)  ;;  %vm166_vm2 = vcmask (!%p136_p2), 15360   ;;  %vm246_vm3 = vcmask (!%p136_p2), 130048  }
   0x7   : > { %401 = vmatprep.subr.bf16.mxu1 (!%p136_p2), %v425_v3  ;;  %398 = vmatprep.mubr.msk.f32.mxu1 (!%p136_p2), %vm424_vm0, %v423_v0  ;;  %vm321_vm4 = vcmask (!%p136_p2), 519168  }
   0x8   : > { %403 = vmatpush3.bf16.msra.mxu1 (!%p136_p2), %v402_v4 }
   0xd   : > { %s477_s13 = smov (!%p156_p3, %s373_s13), 1 }
   0xe   : > { %s158_s20 = scalar_lea.vmem %s472_s0, %s477_s13  ;;  %s378_s23 = sshll.u32 %s477_s13, 2 }
   0xf   : > { %v163_v5 = vld [vmem:[%s158_s20] sm:$0x1]  ;;  %s162_s26 = scalar_lea.vmem %s475_s3, %s378_s23 }
  0x10   : > { %v164_v6 = vunpack.c.l.bf16 %v163_v5 }
  0x12   : > { %390 = vmatpush3.msk.msra.mxu0 %vm170_vm1, %v164_v6 }
  0x13   : > { %392 = vmatmul.mubr.msk.f32.vlgmr.msra.gmra.mrb[0].mxu0 %vm166_vm2, %v165_v7 }
  0xe6   : > { %v240_v8 = vpop.f32.mrb[0].mxu0 }
  0xe7   : > { %v393_v9 = vpop.f32.mrb[1].mxu0  ;;  %399 = vmatmul.mubr.msk.f32.vlgmr.msra.gmra.mrb[0].mxu1 %vm246_vm3, %v240_v8 }
 0x1ba   : > { %v316_v10 = vpop.f32.mrb[0].mxu1 }
 0x1bb   : > { %v320_v11 = vpack.c.bf16 %v316_v10, %v316_v10  ;;  %v400_v12 = vpop.f32.mrb[1].mxu1 }
 0x1bd   : > { %322 = vst.msk [vmem:[%s162_s26] sm:$0xf] %vm321_vm4, %v320_v11 }
 0x1be PF: > { %s13_s12 = sadd.s32 1, %s421_s12  }
 0x1bf   : > { %p10_p4 = scmp.ge.s32.totalorder %s13_s12, 4  }
 0x1c1   :  { %12 = sbr.rel (!%p10_p4) target bundleno = 1 (0x1), region = 62 }

// kernel: db_cism_even_odd_lines_forward.29
= control target key start
LH: loop header
LB: loop body
LE: loop exit
PB: predicated region body
PF: predicated region fallthrough
CT: control target
= control target key end

     0   :  { %vm96_vm0 = vcmask 195584   ;;  %vm121_vm1 = vcmask 1043456   ;;  %vm269_vm2 = vcmask 261120   ;;  %vm487_vm3 = vcmask 15360   ;;  %s861_s1 = inlined_call_operand.vmem [shape: bf16[24,32], index: 1, kind: input, shape index: {}]   ;;  %s862_s0 = inlined_call_operand.vmem [shape: bf16[128,24], index: 0, kind: input, shape index: {}]   ;;  %s863_s3 = inlined_call_operand.vmem [shape: bf16[32,2], index: 3, kind: input, shape index: {}]   ;;  %s864_s2 = inlined_call_operand.vmem [shape: f32[1,32], index: 2, kind: input, shape index: {}]   ;;  %s865_s4 = inlined_call_operand.vmem [shape: f32[1,2], index: 4, kind: input, shape index: {}]   ;;  %s866_s5 = inlined_call_operand.vmem [shape: f32[128,2], index: 5, kind: output, shape index: {}]  }
   0x1   :  { %v615_v0 = vld [vmem:[%s861_s1] sm:$0xff]   ;;  %v616_v1 = vld [vmem:[%s861_s1 + $0x8] ss:$0 sps:$4 sm:$0xff]   ;;  %v619_v5 = vld [vmem:[%s862_s0 + $0x10] sm:$0xff]  }
   0x2   :  { %v617_v2 = vld [vmem:[%s862_s0] sm:$0xff]   ;;  %574 = vmatprep.subr.bf16.mxu0 %v615_v0  ;;  %v123_v3 = vsel %vm121_vm1, %v616_v1, 0  ;;  %v618_v4 = vld [vmem:[%s862_s0 + $0x8] sm:$0xff]   ;;  %v620_v6 = vld [vmem:[%s862_s0 + $0x18] sm:$0xff]  }
   0x3   :  { %575 = vmatpush3.bf16.msra.mxu0 %v615_v0  ;;  %578 = vmatprep.mubr.msk.bf16.mxu0 %vm96_vm0, %v617_v2  ;;  %v621_v7 = vld [vmem:[%s862_s0 + $0x20] sm:$0xff]   ;;  %v622_v8 = vld [vmem:[%s862_s0 + $0x28] sm:$0xff]   ;;  %v623_v9 = vld [vmem:[%s862_s0 + $0x30] sm:$0xff]  }
   0x4   :  { %614 = vmatprep.subr.msk.bf16.mxu0 %vm121_vm1, %v616_v1  ;;  %v624_v10 = vld [vmem:[%s862_s0 + $0x38] sm:$0xff]   ;;  %v625_v11 = vld [vmem:[%s863_s3] sm:$0xff]   ;;  %v626_v12 = vld [vmem:[%s863_s3 + $0x8] sm:$0xff]  }
   0x5   :  { %594 = vmatprep.subr.bf16.mxu1 %v625_v11  ;;  %v508_v13 = vld [vmem:[%s864_s2] ss:$0 sm:$0xff] }
   0x6   :  { %595 = vmatpush3.bf16.msra.mxu1 %v625_v11 }
   0x7   :  { %577 = vmatpush3.bf16.msra.mxu0 %v123_v3  ;;  %596 = vmatprep.subr.bf16.mxu1 %v626_v12 }
   0xa   :  { %579 = vmatmul.mubr.msk.bf16.vlgmr.msra.gmra.mrb[0].mxu0 %vm96_vm0, %v618_v4  ;;  %597 = vmatpush3.bf16.msra.mxu1 %v626_v12 }
   0xb   :  { %582 = vmatprep.mubr.msk.bf16.mxu0 %vm96_vm0, %v619_v5 }
  0x12   :  { %583 = vmatmul.mubr.msk.bf16.gmra.mrb[4].mxu0 %vm96_vm0, %v620_v6  ;;  %v779_v6 = vld [vmem:[%s865_s4] ss:$0 sm:$0xff] }
  0x13   :  { %586 = vmatprep.mubr.msk.bf16.mxu0 %vm96_vm0, %v621_v7 }
  0x1a   :  { %587 = vmatmul.mubr.msk.bf16.gmra.mrb[8].mxu0 %vm96_vm0, %v622_v8 }
  0x1b   :  { %590 = vmatprep.mubr.msk.bf16.mxu0 %vm96_vm0, %v623_v9 }
  0x22   :  { %591 = vmatmul.mubr.msk.bf16.gmra.mrb[12].mxu0 %vm96_vm0, %v624_v10 }
  0xdd   :  { %v580_v14 = vpop.f32.mrb[0].mxu0 }
  0xde   :  { %v168_v15 = vadd.f32 %v580_v14, %v508_v13  ;;  %v159_v16 = vpop.f32.mrb[1].mxu0 }
  0xdf   :  { %v160_v17 = vadd.f32 %v508_v13, %v159_v16  ;;  %v581_v18 = vpop.f32.mrb[2].mxu0 }
  0xe0   :  { %v171_v19 = vadd.f32 %v581_v18, %v508_v13  ;;  %v162_v20 = vpop.f32.mrb[3].mxu0  ;;  %v224_v22 = vmax.f32 %v168_v15, 0.0 }
  0xe1   :  { %v163_v21 = vadd.f32 %v508_v13, %v162_v20  ;;  %v222_v24 = vmax.f32 %v160_v17, 0.0 }
  0xe2   :  { %v225_v23 = vmax.f32 %v171_v19, 0.0 }
  0xe3   :  { %v223_v25 = vmax.f32 %v163_v21, 0.0 }
  0xe4   :  { %v239_v26 = vpack.c.bf16 %v225_v23, %v224_v22 }
  0xe5   :  { %v584_v27 = vpop.f32.mrb[4].mxu0  ;;  %v238_v28 = vpack.c.bf16 %v223_v25, %v222_v24 }
  0xe6   :  { %v184_v29 = vadd.f32 %v584_v27, %v508_v13  ;;  %v175_v30 = vpop.f32.mrb[5].mxu0 }
  0xe7   :  { %v176_v31 = vadd.f32 %v508_v13, %v175_v30  ;;  %v585_v32 = vpop.f32.mrb[6].mxu0  ;;  %598 = vmatprep.mubr.msk.bf16.mxu1 %vm269_vm2, %v238_v28 }
  0xe8   :  { %v187_v33 = vadd.f32 %v585_v32, %v508_v13  ;;  %v178_v34 = vpop.f32.mrb[7].mxu0  ;;  %599 = vmatmul.mubr.msk.bf16.vlgmr.msra.gmra.mrb[0].mxu1 %vm269_vm2, %v239_v26  ;;  %v228_v36 = vmax.f32 %v184_v29, 0.0 }
  0xe9   :  { %v179_v35 = vadd.f32 %v508_v13, %v178_v34  ;;  %v226_v38 = vmax.f32 %v176_v31, 0.0 }
  0xea   :  { %v229_v37 = vmax.f32 %v187_v33, 0.0 }
  0xeb   :  { %v227_v39 = vmax.f32 %v179_v35, 0.0 }
  0xec   :  { %v241_v40 = vpack.c.bf16 %v229_v37, %v228_v36 }
  0xed   :  { %v240_v41 = vpack.c.bf16 %v227_v39, %v226_v38  ;;  %v588_v42 = vpop.f32.mrb[8].mxu0 }
  0xee   :  { %v200_v43 = vadd.f32 %v588_v42, %v508_v13  ;;  %v191_v44 = vpop.f32.mrb[9].mxu0 }
  0xef   :  { %v192_v45 = vadd.f32 %v508_v13, %v191_v44  ;;  %v589_v46 = vpop.f32.mrb[10].mxu0  ;;  %602 = vmatprep.mubr.msk.bf16.mxu1 %vm269_vm2, %v240_v41 }
  0xf0   :  { %v203_v47 = vadd.f32 %v589_v46, %v508_v13  ;;  %v194_v48 = vpop.f32.mrb[11].mxu0  ;;  %603 = vmatmul.mubr.msk.bf16.gmra.mrb[4].mxu1 %vm269_vm2, %v241_v40  ;;  %v232_v50 = vmax.f32 %v200_v43, 0.0 }
  0xf1   :  { %v195_v49 = vadd.f32 %v508_v13, %v194_v48  ;;  %v230_v52 = vmax.f32 %v192_v45, 0.0 }
  0xf2   :  { %v233_v51 = vmax.f32 %v203_v47, 0.0 }
  0xf3   :  { %v231_v53 = vmax.f32 %v195_v49, 0.0 }
  0xf4   :  { %v243_v54 = vpack.c.bf16 %v233_v51, %v232_v50 }
  0xf5   :  { %v242_v55 = vpack.c.bf16 %v231_v53, %v230_v52  ;;  %v592_v56 = vpop.f32.mrb[12].mxu0 }
  0xf6   :  { %v216_v57 = vadd.f32 %v592_v56, %v508_v13  ;;  %v207_v58 = vpop.f32.mrb[13].mxu0 }
  0xf7   :  { %v208_v59 = vadd.f32 %v508_v13, %v207_v58  ;;  %v593_v60 = vpop.f32.mrb[14].mxu0  ;;  %606 = vmatprep.mubr.msk.bf16.mxu1 %vm269_vm2, %v242_v55 }
  0xf8   :  { %v219_v61 = vadd.f32 %v593_v60, %v508_v13  ;;  %v210_v62 = vpop.f32.mrb[15].mxu0  ;;  %607 = vmatmul.mubr.msk.bf16.gmra.mrb[8].mxu1 %vm269_vm2, %v243_v54  ;;  %v236_v0 = vmax.f32 %v216_v57, 0.0 }
  0xf9   :  { %v211_v63 = vadd.f32 %v508_v13, %v210_v62  ;;  %v234_v2 = vmax.f32 %v208_v59, 0.0 }
  0xfa   :  { %v237_v1 = vmax.f32 %v219_v61, 0.0 }
  0xfb   :  { %v235_v3 = vmax.f32 %v211_v63, 0.0 }
  0xfc   :  { %v245_v4 = vpack.c.bf16 %v237_v1, %v236_v0 }
  0xfd   :  { %v244_v5 = vpack.c.bf16 %v235_v3, %v234_v2 }
  0xff   :  { %610 = vmatprep.mubr.msk.bf16.mxu1 %vm269_vm2, %v244_v5 }
 0x100   :  { %611 = vmatmul.mubr.msk.bf16.gmra.mrb[12].mxu1 %vm269_vm2, %v245_v4 }
 0x1bb   :  { %v600_v7 = vpop.f32.mrb[0].mxu1 }
 0x1bc   :  { %v337_v8 = vadd.f32 %v600_v7, %v779_v6  ;;  %v328_v9 = vpop.f32.mrb[1].mxu1 }
 0x1bd   :  { %v329_v10 = vadd.f32 %v779_v6, %v328_v9  ;;  %v601_v11 = vpop.f32.mrb[2].mxu1 }
 0x1be   :  { %v540_v12 = vmul.f32 -1.442695, %v337_v8  ;;  %v340_v13 = vadd.f32 %v601_v11, %v779_v6  ;;  %v331_v14 = vpop.f32.mrb[3].mxu1 }
 0x1bf   :  { %v538_v15 = vmul.f32 -1.442695, %v329_v10  ;;  %v332_v16 = vadd.f32 %v779_v6, %v331_v14 }
 0x1c0   :  { %627 = vpow2.f32 %v540_v12  ;;  %v541_v17 = vmul.f32 -1.442695, %v340_v13 }
 0x1c1   :  { %629 = vpow2.f32 %v538_v15  ;;  %v539_v18 = vmul.f32 -1.442695, %v332_v16 }
 0x1c2   :  { %631 = vpow2.f32 %v541_v17 }
 0x1c3   :  { %633 = vpow2.f32 %v539_v18  ;;  %v604_v19 = vpop.f32.mrb[4].mxu1 }
 0x1c4   :  { %v353_v20 = vadd.f32 %v604_v19, %v779_v6  ;;  %v344_v21 = vpop.f32.mrb[5].mxu1 }
 0x1c5   :  { %v345_v22 = vadd.f32 %v779_v6, %v344_v21  ;;  %v605_v23 = vpop.f32.mrb[6].mxu1 }
 0x1c6   :  { %v544_v24 = vmul.f32 -1.442695, %v353_v20  ;;  %v356_v25 = vadd.f32 %v605_v23, %v779_v6  ;;  %v347_v26 = vpop.f32.mrb[7].mxu1 }
 0x1c7   :  { %v542_v27 = vmul.f32 -1.442695, %v345_v22  ;;  %v348_v28 = vadd.f32 %v779_v6, %v347_v26 }
 0x1c8   :  { %635 = vpow2.f32 %v544_v24  ;;  %v545_v29 = vmul.f32 -1.442695, %v356_v25 }
 0x1c9   :  { %637 = vpow2.f32 %v542_v27  ;;  %v543_v30 = vmul.f32 -1.442695, %v348_v28 }
 0x1ca   :  { %v628_v31 = vpop.eup %627  ;;  %639 = vpow2.f32 %v545_v29 }
 0x1cb   :  { %v630_v32 = vpop.eup %629  ;;  %v441_v33 = vadd.f32 1.0, %v628_v31  ;;  %641 = vpow2.f32 %v543_v30  ;;  %v608_v34 = vpop.f32.mrb[8].mxu1 }
 0x1cc   :  { %v632_v35 = vpop.eup %631  ;;  %v439_v36 = vadd.f32 1.0, %v630_v32  ;;  %v369_v37 = vadd.f32 %v608_v34, %v779_v6  ;;  %v360_v38 = vpop.f32.mrb[9].mxu1 }
 0x1cd   :  { %v634_v39 = vpop.eup %633  ;;  %643 = vrcp.f32 %v441_v33  ;;  %v442_v40 = vadd.f32 1.0, %v632_v35  ;;  %v361_v41 = vadd.f32 %v779_v6, %v360_v38  ;;  %v609_v42 = vpop.f32.mrb[10].mxu1 }
 0x1ce   :  { %645 = vrcp.f32 %v439_v36  ;;  %v440_v43 = vadd.f32 1.0, %v634_v39  ;;  %v548_v44 = vmul.f32 -1.442695, %v369_v37  ;;  %v372_v45 = vadd.f32 %v609_v42, %v779_v6  ;;  %v363_v46 = vpop.f32.mrb[11].mxu1 }
 0x1cf   :  { %647 = vrcp.f32 %v442_v40  ;;  %v546_v47 = vmul.f32 -1.442695, %v361_v41  ;;  %v364_v48 = vadd.f32 %v779_v6, %v363_v46 }
 0x1d0   :  { %649 = vrcp.f32 %v440_v43  ;;  %v549_v49 = vmul.f32 -1.442695, %v372_v45 }
 0x1d1   :  { %651 = vpow2.f32 %v548_v44  ;;  %v547_v50 = vmul.f32 -1.442695, %v364_v48 }
 0x1d2   :  { %v636_v51 = vpop.eup %635  ;;  %653 = vpow2.f32 %v546_v47 }
 0x1d3   :  { %v638_v52 = vpop.eup %637  ;;  %v445_v53 = vadd.f32 1.0, %v636_v51  ;;  %655 = vpow2.f32 %v549_v49  ;;  %v612_v54 = vpop.f32.mrb[12].mxu1 }
 0x1d4   :  { %v640_v55 = vpop.eup %639  ;;  %v443_v56 = vadd.f32 1.0, %v638_v52  ;;  %657 = vpow2.f32 %v547_v50  ;;  %v385_v57 = vadd.f32 %v612_v54, %v779_v6  ;;  %v376_v58 = vpop.f32.mrb[13].mxu1 }
 0x1d5   :  { %v642_v59 = vpop.eup %641  ;;  %659 = vrcp.f32 %v445_v53  ;;  %v446_v60 = vadd.f32 1.0, %v640_v55  ;;  %v377_v61 = vadd.f32 %v779_v6, %v376_v58  ;;  %v613_v62 = vpop.f32.mrb[14].mxu1 }
 0x1d6   :  { %661 = vrcp.f32 %v443_v56  ;;  %v444_v63 = vadd.f32 1.0, %v642_v59  ;;  %v552_v0 = vmul.f32 -1.442695, %v385_v57  ;;  %v388_v1 = vadd.f32 %v613_v62, %v779_v6  ;;  %v379_v2 = vpop.f32.mrb[15].mxu1 }
 0x1d7   :  { %v644_v3 = vpop.eup %643  ;;  %663 = vrcp.f32 %v446_v60  ;;  %v550_v4 = vmul.f32 -1.442695, %v377_v61  ;;  %v380_v5 = vadd.f32 %v779_v6, %v379_v2 }
 0x1d8   :  { %v646_v7 = vpop.eup %645  ;;  %490 = vst.msk [vmem:[%s866_s5 + $0x10] sm:$0xff] %vm487_vm3, %v644_v3  ;;  %665 = vrcp.f32 %v444_v63  ;;  %v553_v8 = vmul.f32 -1.442695, %v388_v1 }
 0x1d9   :  { %v648_v9 = vpop.eup %647  ;;  %488 = vst.msk [vmem:[%s866_s5] sm:$0xff] %vm487_vm3, %v646_v7  ;;  %667 = vpow2.f32 %v552_v0  ;;  %v551_v10 = vmul.f32 -1.442695, %v380_v5 }
 0x1da   :  { %v650_v11 = vpop.eup %649  ;;  %491 = vst.msk [vmem:[%s866_s5 + $0x18] sm:$0xff] %vm487_vm3, %v648_v9  ;;  %669 = vpow2.f32 %v550_v4 }
 0x1db   :  { %v652_v6 = vpop.eup %651  ;;  %489 = vst.msk [vmem:[%s866_s5 + $0x8] sm:$0xff] %vm487_vm3, %v650_v11  ;;  %671 = vpow2.f32 %v553_v8 }
 0x1dc   :  { %v654_v12 = vpop.eup %653  ;;  %v449_v13 = vadd.f32 1.0, %v652_v6  ;;  %673 = vpow2.f32 %v551_v10 }
 0x1dd   :  { %v656_v14 = vpop.eup %655  ;;  %v447_v15 = vadd.f32 1.0, %v654_v12 }
 0x1de   :  { %v658_v16 = vpop.eup %657  ;;  %675 = vrcp.f32 %v449_v13  ;;  %v450_v17 = vadd.f32 1.0, %v656_v14 }
 0x1df   :  { %v660_v18 = vpop.eup %659  ;;  %677 = vrcp.f32 %v447_v15  ;;  %v448_v19 = vadd.f32 1.0, %v658_v16 }
 0x1e0   :  { %v662_v20 = vpop.eup %661  ;;  %494 = vst.msk [vmem:[%s866_s5 + $0x30] sm:$0xff] %vm487_vm3, %v660_v18  ;;  %679 = vrcp.f32 %v450_v17 }
 0x1e1   :  { %v664_v21 = vpop.eup %663  ;;  %492 = vst.msk [vmem:[%s866_s5 + $0x20] sm:$0xff] %vm487_vm3, %v662_v20  ;;  %681 = vrcp.f32 %v448_v19 }
 0x1e2   :  { %v666_v22 = vpop.eup %665  ;;  %495 = vst.msk [vmem:[%s866_s5 + $0x38] sm:$0xff] %vm487_vm3, %v664_v21 }
 0x1e3   :  { %v668_v23 = vpop.eup %667  ;;  %493 = vst.msk [vmem:[%s866_s5 + $0x28] sm:$0xff] %vm487_vm3, %v666_v22 }
 0x1e4   :  { %v670_v24 = vpop.eup %669  ;;  %v453_v25 = vadd.f32 1.0, %v668_v23 }
 0x1e5   :  { %v672_v26 = vpop.eup %671  ;;  %v451_v27 = vadd.f32 1.0, %v670_v24 }
 0x1e6   :  { %v674_v28 = vpop.eup %673  ;;  %683 = vrcp.f32 %v453_v25  ;;  %v454_v29 = vadd.f32 1.0, %v672_v26 }
 0x1e7   :  { %685 = vrcp.f32 %v451_v27  ;;  %v452_v30 = vadd.f32 1.0, %v674_v28 }
 0x1e8   :  { %v676_v31 = vpop.eup %675  ;;  %687 = vrcp.f32 %v454_v29 }
 0x1e9   :  { %v678_v32 = vpop.eup %677  ;;  %498 = vst.msk [vmem:[%s866_s5 + $0x50] sm:$0xff] %vm487_vm3, %v676_v31  ;;  %689 = vrcp.f32 %v452_v30 }
 0x1ea   :  { %v680_v33 = vpop.eup %679  ;;  %496 = vst.msk [vmem:[%s866_s5 + $0x40] sm:$0xff] %vm487_vm3, %v678_v32 }
 0x1eb   :  { %v682_v34 = vpop.eup %681  ;;  %499 = vst.msk [vmem:[%s866_s5 + $0x58] sm:$0xff] %vm487_vm3, %v680_v33 }
 0x1ec   :  { %497 = vst.msk [vmem:[%s866_s5 + $0x48] sm:$0xff] %vm487_vm3, %v682_v34 }
 0x1f0   :  { %v684_v35 = vpop.eup %683 }
 0x1f1   :  { %v686_v36 = vpop.eup %685  ;;  %502 = vst.msk [vmem:[%s866_s5 + $0x70] sm:$0xff] %vm487_vm3, %v684_v35 }
 0x1f2   :  { %v688_v37 = vpop.eup %687  ;;  %500 = vst.msk [vmem:[%s866_s5 + $0x60] sm:$0xff] %vm487_vm3, %v686_v36 }
 0x1f3   :  { %v690_v38 = vpop.eup %689  ;;  %503 = vst.msk [vmem:[%s866_s5 + $0x78] sm:$0xff] %vm487_vm3, %v688_v37 }
 0x1f4   :  { %501 = vst.msk [vmem:[%s866_s5 + $0x68] sm:$0xff] %vm487_vm3, %v690_v38 }

// kernel: db_cism_even_odd_lines_forward.31
= control target key start
LH: loop header
LB: loop body
LE: loop exit
PB: predicated region body
PF: predicated region fallthrough
CT: control target
= control target key end

     0   :  { %8 = vsyncpa [#allocation3], 0  ;;  %s678_s0 = inlined_call_operand.vmem [shape: f32[2,8,8], index: 0, kind: input, shape index: {}]   ;;  %s679_s1 = inlined_call_operand.vmem [shape: f32[8,16], index: 1, kind: input, shape index: {}]   ;;  %s680_s2 = inlined_call_operand.vmem [shape: f32[16,8], index: 2, kind: input, shape index: {}]   ;;  %s681_s3 = inlined_call_operand.hbm [shape: f32[2,1,16,16], index: 3, kind: output, shape index: {}]  }
   0x1   :  { %10 = vsyncpa [#allocation3 + $0x1], 0  ;;  %s566_s12 = smov 0   ;;  %s568_s13 = smov 0  }
   0x2   :  { %s570_s14 = smov 0   ;;  %s572_s15 = smov 0  }
   0x3 LB: > { %s587_s16 = sadd.s32 4294967295, %s539_s15   ;;  %s404_s17 = sadd.s32 4294967294, %s539_s15   ;;  %s539_s15 = sphi %s572_s15, %s687_s15   ;;  %s535_s14 = sphi %s570_s14, %s686_s14   ;;  %s531_s13 = sphi %s568_s13, %s685_s13   ;;  %s527_s12 = sphi %s566_s12, %s684_s12  }
   0x4   : > { %s591_s18 = sadd.s32 1, %s539_s15   ;;  %s91_s19 = sadd.s32 1, %s535_s14 }
   0x5   : > { %s88_s20 = ssub.s32 %s539_s15, %s591_s18  ;;  %p101_p0 = scmp.ne.s32.totalorder %s535_s14, %s531_s13 }
   0x6   : > { %p89_p1 = scmp.eq.s32.totalorder %s88_s20, 0  ;;  %p102_p2 = scmp.eq.s32.totalorder %s587_s16, 1 }
   0x7   : > { %p107_p3 = scmp.ne.s32.totalorder %s531_s13, %s527_s12  ;;  %p108_p4 = scmp.eq.s32.totalorder %s404_s17, 1 }
   0x8   : > { %s602_s21 = scalar_select %p89_p1, %s535_s14, %s91_s19  }
   0x9   : > { %p604_p5 = por %p102_p2, %p101_p0  ;;  %p608_p6 = por %p108_p4, %p107_p3 }
   0xa   : > { %p407_p7 = scmp.ge.s32.totalorder %s539_s15, 1  ;;  %p139_p8 = scmp.lt.s32.totalorder %s539_s15, 3 }
   0xc   : > { %p140_p9 = pnand %p407_p7, %p139_p8 }
   0xd   : > { %v167_v0 = vld [vmem:[%s679_s1] sm:$0xff] (!%p140_p9)  ;;  %p162_p10 = scmp.lt.s32.totalorder (!%p140_p9), %s587_s16, 1  ;;  %v541_v1 = vmov (!%p140_p9), 0.0   ;;  %vm542_vm0 = vmmov (!%p140_p9), 0   ;;  %vm168_vm1 = vcmask (!%p140_p9), 64512   ;;  %v243_v5 = vld [vmem:[%s680_s2 + $0x8] sm:$0xff] (!%p140_p9) }
   0xe   : > { %143 = sbr.rel (%p140_p9) target bundleno = 468 (0x1d4), region = 32  ;;  %424 = vmatprep.subr.mxu0 (!%p140_p9), %v541_v1  ;;  %426 = vmatprep.mubr.msk.f32.mxu0 (!%p140_p9), %vm542_vm0, %v541_v1  ;;  %v242_v3 = vld [vmem:[%s680_s2] sm:$0xff] (!%p140_p9)  ;;  %s159_s8 = sand.u32 (!%p140_p9), 1, %s531_s13   ;;  %vm325_vm2 = vcmask (!%p140_p9), 130048  }
   0xf   : > { %425 = vmatpush3.msra.mxu0 (!%p140_p9), %v167_v0  ;;  %431 = vmatprep.mubr.msk.f32.mxu1 (!%p140_p9), %vm168_vm1, %v242_v3  ;;  %s408_s9 = sshll.u32 (!%p140_p9), %s159_s8, 4  ;;  %s418_s17 = sshll.u32 (!%p140_p9), %s587_s16, 8 }
  0x10   : > { %s161_s10 = scalar_lea.vmem (!%p140_p9), [#allocation2], %s408_s9  ;;  %s635_s24 = scalar_lea.hbm (!%p140_p9), %s681_s3, %s418_s17 }
  0x11   : > { %s342_s11 = sshll.u32 (!%p140_p9), %s161_s10, 4  ;;  %s637_s25 = scalar_lea.sflag (!%p140_p9), [#allocation3], %s159_s8  ;;  %s630_s11 = int_to_ptr.vmem [resolvable:$true] %s342_s11 }
  0x15   : > { %s163_s26 = scalar_select %p162_p10, %s587_s16, 1 }
  0x16   : > { %s543_s16 = smov [#allocation2]  }
  0x17   : > { %s409_s27 = sshll.u32 %s163_s26, 3  ;;  %s477_s26 = scalar_lea.vmem %s630_s11, 256 }
  0x18   : > { %s165_s30 = scalar_lea.vmem %s678_s0, %s409_s27  ;;  %p478_p11 = scmp.ne.s32.totalorder %s630_s11, %s477_s26 }
  0x19   : > { %v166_v2 = vld [vmem:[%s165_s30] sm:$0xff]  ;;  %s481_s27 = sshll.u32 %s543_s16, 4  ;;  %s482_s27 = int_to_ptr.vmem [resolvable:$false] %s481_s27 }
  0x1a   : > { %427 = vmatmul.mubr.msk.f32.vlgmr.msra.gmra.mrb[0].mxu0 %vm168_vm1, %v166_v2  ;;  %p479_p12 = pnand %p478_p11, %p604_p5  ;;  %s483_s28 = scalar_lea.vmem %s482_s27, 512 }
  0x1b   : > { %p484_p0 = scmp.lt.s32.totalorder %s630_s11, %s482_s27  ;;  %p485_p1 = scmp.lt.s32.totalorder %s483_s28, %s477_s26 }
  0x1c   : > { %p480_p13 = pneg %p479_p12 }
  0x1d   : > { %p486_p2 = por %p485_p1, %p484_p0 }
  0x1f   : > { %p487_p3 = pnand %p486_p2, %p480_p13 }
  0xed   : > { %v238_v4 = vpop.f32.mrb[0].mxu0 }
  0xee   : > { %v428_v6 = vpop.f32.mrb[1].mxu0  ;;  %429 = vmatprep.subr.mxu1 %v238_v4 }
  0xef   : > { %430 = vmatpush3.msra.mxu1 %v238_v4 }
  0xf0   : > { %432 = vmatmul.mubr.msk.f32.vlgmr.msra.gmra.mrb[0].mxu1 %vm168_vm1, %v243_v5 }
 0x1c3   : > { %v433_v7 = vpop.f32.mrb[0].mxu1 }
 0x1c4   : > { %327 = vst.msk [vmem:[%s161_s10 + $0x8] sm:$0xff] %vm325_vm2, %v433_v7  ;;  %v316_v8 = vpop.f32.mrb[1].mxu1 }
 0x1c5   : > { %326 = vst.msk [vmem:[%s161_s10] sm:$0xff] %vm325_vm2, %v316_v8 }
 0x1c6   : > { %490 = shalt.err (!%p487_p3)
}
 0x1c7   : > { %s491_s29 = scalar_lea.hbm %s635_s24, 256  ;;  %s495_s5 = scalar_lea.hbm %s681_s3, 512 }
 0x1c8   : > { %p492_p4 = scmp.ne.s32.totalorder %s635_s24, %s491_s29  ;;  %p496_p9 = scmp.lt.u32.totalorder %s635_s24, %s681_s3 }
 0x1c9   : > { %p497_p10 = scmp.lt.u32.totalorder %s495_s5, %s491_s29  ;;  %p499_p12 = scmp.lt.u32.totalorder %s491_s29, %s635_s24 }
 0x1ca   : > { %p493_p7 = pnand %p492_p4, %p604_p5 }
 0x1cb   : > { %p498_p11 = por %p497_p10, %p496_p9 }
 0x1cc   : > { %p494_p8 = pneg %p493_p7 }
 0x1cd   : > { %p500_p13 = por %p499_p12, %p498_p11 }
 0x1cf   : > { %p501_p0 = pnand %p500_p13, %p494_p8 }
 0x1d1   : > { %504 = shalt.err (!%p501_p0)
}
 0x1d2   : > { %s544_s8 = smov 128   ;;  %s545_s9 = smov 8  }
 0x1d3   : > { %434 = dma.vmem_to_hbm [thread:$0]  (%p604_p5), %s630_s11, 256, %s635_s24, %s637_s25, %s544_s8, %s544_s8, %s545_s9  }
 0x1d4 PF: > { %p440_p1 = scmp.ge.s32.totalorder %s539_s15, 2  ;;  %s357_s10 = sand.u32 1, %s527_s12  }
 0x1d5   : > { %s358_s17 = scalar_lea.sflag [#allocation3], %s357_s10 }
 0x1d6   : > { %p437_p2 = pnand %p440_p1, %p608_p6 }
 0x1d8   : > { %522 = dma.done.wait (!%p437_p2), %s358_s17, 256  }
 0x1d9   : > { %524 = vsyncadd (!%p437_p2), %s358_s17, 4294967040  ;;  %p13_p3 = scmp.ge.s32.totalorder %s591_s18, 4   ;;  %s684_s12 = smov %s531_s13 }
 0x1da   : > { %s685_s13 = smov %s535_s14  ;;  %s686_s14 = smov %s602_s21 }
 0x1db   : > { %s687_s15 = smov %s591_s18  ;;  %15 = sbr.rel (!%p13_p3) target bundleno = 3 (0x3), region = 67 }
 0x1e2   :  { %363 = vsyncpa [#allocation3], 1 }
 0x1e3   :  { %365 = vsyncpa [#allocation3 + $0x1], 1 }

</bundles_post_ra>
